<compile_context>
chip_gen: v6e
topology: v6e:2x2x1
jax: 0.10.0
libtpu: 0.0.40
codegen_flags: <defaults>
</compile_context>

<pallas_src>
import functools
import math

import jax
import jax.numpy as jnp
from jax import lax
from jax.experimental import pallas as pl
from jax.experimental.pallas import tpu as pltpu

EPS = 1e-5


def _encoder_layer_kernel(
    x_ref,
    wqkv_ref, bqkv_ref, wo_ref, bo_ref,
    w1_ref, b1_ref, w2_ref, b2_ref,
    g1_ref, g2_ref,
    o_ref,
    *, num_heads,
):
    Bblk, S, H = x_ref.shape
    dh = H // num_heads
    M = Bblk * S

    # Flatten the batch block: all matmuls below see M rows (MXU row-dense).
    x = x_ref[...].astype(jnp.float32).reshape(M, H)

    # ---------- Sublayer 1: ScaleNorm -> multi-head self-attention -> + x ----------
    # ScaleNorm: g * x / max(||x||, eps) == g * x * rsqrt(max(sum x^2, eps^2))
    ss1 = jnp.sum(x * x, axis=-1, keepdims=True)
    xn = x * (g1_ref[0, 0] * lax.rsqrt(jnp.maximum(ss1, EPS * EPS)))

    # Fused lane-dense QKV projection (bf16 on the MXU, f32 accumulation).
    # 1/sqrt(dh) is pre-folded into the Wq/bq columns of wqkv/bqkv.
    qkv = jnp.dot(xn.astype(jnp.bfloat16), wqkv_ref[...],
                  preferred_element_type=jnp.float32) + bqkv_ref[...]
    q = qkv[:, 0 * H:1 * H].reshape(Bblk, S, H).astype(jnp.bfloat16)
    k = qkv[:, 1 * H:2 * H].reshape(Bblk, S, H).astype(jnp.bfloat16)
    v = qkv[:, 2 * H:3 * H].reshape(Bblk, S, H).astype(jnp.bfloat16)

    # Per-head attention: short static unroll, leading-batch 3D einsums only.
    # Softmax max/exp/sum and the normalization stay in f32 and are exact.
    pv_heads = []
    for h in range(num_heads):
        sl = slice(h * dh, (h + 1) * dh)
        s = jnp.einsum("bqd,bkd->bqk", q[:, :, sl], k[:, :, sl],
                       preferred_element_type=jnp.float32)       # (Bblk,S,S)
        m = jnp.max(s, axis=-1, keepdims=True)
        e = jnp.exp(s - m)
        inv = 1.0 / jnp.sum(e, axis=-1, keepdims=True)            # exact reciprocal
        pv = jnp.einsum("bqk,bkd->bqd", e.astype(jnp.bfloat16), v[:, :, sl],
                        preferred_element_type=jnp.float32) * inv  # (Bblk,S,dh)
        pv_heads.append(pv)

    # Head-concat is exactly the original layout -> single depth-H Wo matmul.
    ctx = jnp.concatenate(pv_heads, axis=-1).reshape(M, H)
    attn = jnp.dot(ctx.astype(jnp.bfloat16), wo_ref[...],
                   preferred_element_type=jnp.float32) + bo_ref[...]
    y1 = attn + x                                                  # residual (x exact f32)

    # ---------- Sublayer 2: ScaleNorm -> position-wise feed-forward -> + y1 --------
    ss2 = jnp.sum(y1 * y1, axis=-1, keepdims=True)
    yn = y1 * (g2_ref[0, 0] * lax.rsqrt(jnp.maximum(ss2, EPS * EPS)))

    h1 = jnp.dot(yn.astype(jnp.bfloat16), w1_ref[...],
                 preferred_element_type=jnp.float32) + b1_ref[...]
    h1 = jnp.maximum(h1, 0.0)                                      # ReLU
    ff = jnp.dot(h1.astype(jnp.bfloat16), w2_ref[...],
                 preferred_element_type=jnp.float32) + b2_ref[...]

    o_ref[...] = (ff + y1).reshape(Bblk, S, H).astype(o_ref.dtype)  # residual


def prepare_kernel_params(params, *, num_heads):
    """One-time weight-layout prep (hoisted out of the forward path).

    Builds the fused bf16 Wqkv (with 1/sqrt(dh) folded into the Q columns) and
    casts the other matmul weights to bf16. Biases / ScaleNorm gains stay f32.
    """
    H = params["wq"].shape[0]
    dh = H // num_heads
    scale = 1.0 / math.sqrt(dh)
    wqkv = jnp.concatenate(
        [params["wq"] * scale, params["wk"], params["wv"]], axis=1
    ).astype(jnp.bfloat16)                                          # (H, 3H)
    bqkv = jnp.concatenate(
        [params["bq"] * scale, params["bk"], params["bv"]], axis=1
    )                                                               # (1, 3H) f32
    return dict(
        wqkv=wqkv, bqkv=bqkv,
        wo=params["wo"].astype(jnp.bfloat16), bo=params["bo"],
        w1=params["w1"].astype(jnp.bfloat16), b1=params["b1"],
        w2=params["w2"].astype(jnp.bfloat16), b2=params["b2"],
        g1=params["g1"], g2=params["g2"],
    )


def encoder_layer(x, kparams, *, num_heads: int, block_batch: int | None = None):
    """x: (B, S, H) float32.  kparams: output of prepare_kernel_params."""
    B, S, H = x.shape
    F = kparams["w1"].shape[1]
    if block_batch is None:
        block_batch = B
    assert B % block_batch == 0
    assert H % num_heads == 0
    assert S % 8 == 0 and H % 128 == 0, "lane/sublane-dense shapes expected"

    def const_spec(shape):  # block == full array, constant across the batch grid
        n = len(shape)
        # NOTE: if H/F grow, add pipeline_mode=pl.Buffered(1) here so the
        # grid-invariant weights are single-buffered (VMEM matters on v7x).
        return pl.BlockSpec(shape, lambda b, n=n: (0,) * n)

    smem_scalar = pl.BlockSpec(memory_space=pltpu.MemorySpace.SMEM)

    kernel = functools.partial(_encoder_layer_kernel, num_heads=num_heads)

    return pl.pallas_call(
        kernel,
        out_shape=jax.ShapeDtypeStruct((B, S, H), x.dtype),
        grid_spec=pltpu.PrefetchScalarGridSpec(
            num_scalar_prefetch=0,
            grid=(B // block_batch,),
            in_specs=[
                pl.BlockSpec((block_batch, S, H), lambda b: (b, 0, 0)),   # x
                const_spec((H, 3 * H)), const_spec((1, 3 * H)),           # wqkv, bqkv
                const_spec((H, H)), const_spec((1, H)),                   # wo, bo
                const_spec((H, F)), const_spec((1, F)),                   # w1, b1
                const_spec((F, H)), const_spec((1, H)),                   # w2, b2
                smem_scalar, smem_scalar,                                 # g1, g2
            ],
            out_specs=pl.BlockSpec((block_batch, S, H), lambda b: (b, 0, 0)),
        ),
        compiler_params=pltpu.CompilerParams(
            dimension_semantics=("parallel",),
            # No vmem_limit_bytes: footprint is << default scoped limit, and
            # requesting 64 MiB would be the whole physical VMEM on v7x.
        ),
    )(
        x,
        kparams["wqkv"], kparams["bqkv"],
        kparams["wo"], kparams["bo"],
        kparams["w1"], kparams["b1"],
        kparams["w2"], kparams["b2"],
        kparams["g1"], kparams["g2"],
    )


def init_params(key, hidden_size, inner_size):
    """Deterministic synthetic parameters (PyTorch-Linear-like uniform init)."""
    keys = jax.random.split(key, 12)

    def lin(kw, kb, fan_in, fan_out):
        bound = 1.0 / math.sqrt(fan_in)
        w = jax.random.uniform(kw, (fan_in, fan_out), jnp.float32, -bound, bound)
        b = jax.random.uniform(kb, (1, fan_out), jnp.float32, -bound, bound)
        return w, b

    H, F = hidden_size, inner_size
    wq, bq = lin(keys[0], keys[1], H, H)
    wk, bk = lin(keys[2], keys[3], H, H)
    wv, bv = lin(keys[4], keys[5], H, H)
    wo, bo = lin(keys[6], keys[7], H, H)
    w1, b1 = lin(keys[8], keys[9], H, F)
    w2, b2 = lin(keys[10], keys[11], F, H)
    g = jnp.full((1, 1), math.sqrt(H), jnp.float32)  # ScaleNorm init
    return dict(wq=wq, bq=bq, wk=wk, bk=bk, wv=wv, bv=bv, wo=wo, bo=bo,
                w1=w1, b1=b1, w2=w2, b2=b2, g1=g, g2=g)


def encoder_layer_ref(x, p, *, num_heads):
    """Pure-JAX f32 reference (matches the PyTorch module in eval mode)."""
    def scalenorm(z, g):
        n = jnp.sqrt(jnp.sum(z * z, axis=-1, keepdims=True))
        return z * (g[0, 0] / jnp.maximum(n, EPS))

    B, S, H = x.shape
    dh = H // num_heads
    xn = scalenorm(x, p["g1"])
    q = xn @ p["wq"] + p["bq"][0]
    k = xn @ p["wk"] + p["bk"][0]
    v = xn @ p["wv"] + p["bv"][0]
    q = q.reshape(B, S, num_heads, dh).transpose(0, 2, 1, 3)
    k = k.reshape(B, S, num_heads, dh).transpose(0, 2, 1, 3)
    v = v.reshape(B, S, num_heads, dh).transpose(0, 2, 1, 3)
    s = jnp.einsum("bhqd,bhkd->bhqk", q, k) / math.sqrt(dh)
    pmat = jax.nn.softmax(s, axis=-1)
    a = jnp.einsum("bhqk,bhkd->bhqd", pmat, v).transpose(0, 2, 1, 3).reshape(B, S, H)
    y1 = a @ p["wo"] + p["bo"][0] + x
    yn = scalenorm(y1, p["g2"])
    ff = jnp.maximum(yn @ p["w1"] + p["b1"][0], 0.0) @ p["w2"] + p["b2"][0]
    return ff + y1


if __name__ == "__main__":
    # Small shapes; H a multiple of 128 (lane-dense), S a multiple of 8.
    # block_batch=8 -> M = 128 rows per grid step; grid=(2,) keeps both v7x cores busy.
    B, S, H, NH, F = 16, 16, 128, 4, 256
    BLOCK_BATCH = 8

    key = jax.random.PRNGKey(0)
    kx, kp = jax.random.split(key)
    x = jax.random.normal(kx, (B, S, H), jnp.float32)
    params = init_params(kp, H, F)
    kparams = prepare_kernel_params(params, num_heads=NH)   # one-time layout prep

    out = encoder_layer(x, kparams, num_heads=NH, block_batch=BLOCK_BATCH)
    out = jax.block_until_ready(out)

    ref = encoder_layer_ref(x, params, num_heads=NH)
    assert out.shape == (B, S, H)
    # Tolerance covers bf16 MXU operands (f32 accumulation); softmax itself is exact.
    assert jnp.allclose(out, ref, atol=2e-2, rtol=2e-2), "mismatch vs reference"

    print("KERNEL_OK")
</pallas_src>

<mosaic_0001>
module attributes {stable_mosaic.version = 11 : i64} {
  func.func @_encoder_layer_kernel(%arg0: i32, %arg1: memref<8x16x128xf32, #tpu.memory_space<vmem>>, %arg2: memref<128x384xbf16, #tpu.memory_space<vmem>>, %arg3: memref<1x384xf32, #tpu.memory_space<vmem>>, %arg4: memref<128x128xbf16, #tpu.memory_space<vmem>>, %arg5: memref<1x128xf32, #tpu.memory_space<vmem>>, %arg6: memref<128x256xbf16, #tpu.memory_space<vmem>>, %arg7: memref<1x256xf32, #tpu.memory_space<vmem>>, %arg8: memref<256x128xbf16, #tpu.memory_space<vmem>>, %arg9: memref<1x128xf32, #tpu.memory_space<vmem>>, %arg10: memref<1x1xf32, #tpu.memory_space<smem>>, %arg11: memref<1x1xf32, #tpu.memory_space<smem>>, %arg12: memref<8x16x128xf32, #tpu.memory_space<vmem>>) attributes {dimension_semantics = [#tpu.dimension_semantics<parallel>], iteration_bounds = array<i64: 2>, scalar_prefetch = 0 : i64, scratch_operands = 0 : i64, tpu.core_type = #tpu.core_type<tc>, window_params = [{transform_indices = @transform_0, window_bounds = array<i64: 8, 16, 128>}, {pipeline_mode = #tpu.pipeline_mode<synchronous>, transform_indices = @transform_1, window_bounds = array<i64: 128, 384>}, {pipeline_mode = #tpu.pipeline_mode<synchronous>, transform_indices = @transform_2, window_bounds = array<i64: 1, 384>}, {pipeline_mode = #tpu.pipeline_mode<synchronous>, transform_indices = @transform_3, window_bounds = array<i64: 128, 128>}, {pipeline_mode = #tpu.pipeline_mode<synchronous>, transform_indices = @transform_4, window_bounds = array<i64: 1, 128>}, {pipeline_mode = #tpu.pipeline_mode<synchronous>, transform_indices = @transform_5, window_bounds = array<i64: 128, 256>}, {pipeline_mode = #tpu.pipeline_mode<synchronous>, transform_indices = @transform_6, window_bounds = array<i64: 1, 256>}, {pipeline_mode = #tpu.pipeline_mode<synchronous>, transform_indices = @transform_7, window_bounds = array<i64: 256, 128>}, {pipeline_mode = #tpu.pipeline_mode<synchronous>, transform_indices = @transform_8, window_bounds = array<i64: 1, 128>}, {transform_indices = @transform_9, window_bounds = array<i64: 1, 1>}, {transform_indices = @transform_10, window_bounds = array<i64: 1, 1>}, {transform_indices = @transform_11, window_bounds = array<i64: 8, 16, 128>}]} {
    %c0 = arith.constant 0 : index
    %c0_0 = arith.constant 0 : index
    %c0_1 = arith.constant 0 : index
    %0 = vector.load %arg1[%c0, %c0_0, %c0_1] : memref<8x16x128xf32, #tpu.memory_space<vmem>>, vector<8x16x128xf32>
    %1 = vector.shape_cast %0 : vector<8x16x128xf32> to vector<128x128xf32>
    %2 = arith.mulf %1, %1 : vector<128x128xf32>
    %cst = arith.constant dense<0.000000e+00> : vector<128xf32>
    %3 = vector.multi_reduction <add>, %2, %cst [1] : vector<128x128xf32> to vector<128xf32>
    %4 = vector.shape_cast %3 : vector<128xf32> to vector<128x1xf32>
    %c0_2 = arith.constant 0 : index
    %c0_3 = arith.constant 0 : index
    %5 = memref.load %arg10[%c0_2, %c0_3] : memref<1x1xf32, #tpu.memory_space<smem>>
    %cst_4 = arith.constant 1.000000e-10 : f32
    %6 = vector.broadcast %cst_4 : f32 to vector<128x1xf32>
    %7 = arith.maximumf %4, %6 : vector<128x1xf32>
    %8 = math.rsqrt %7 : vector<128x1xf32>
    %9 = vector.broadcast %5 : f32 to vector<128x1xf32>
    %10 = arith.mulf %9, %8 : vector<128x1xf32>
    %11 = vector.broadcast %10 : vector<128x1xf32> to vector<128x128xf32>
    %12 = arith.mulf %1, %11 : vector<128x128xf32>
    %13 = arith.truncf %12 : vector<128x128xf32> to vector<128x128xbf16>
    %c0_5 = arith.constant 0 : index
    %c0_6 = arith.constant 0 : index
    %14 = vector.load %arg2[%c0_5, %c0_6] : memref<128x384xbf16, #tpu.memory_space<vmem>>, vector<128x384xbf16>
    %cst_7 = arith.constant dense<0.000000e+00> : vector<128x384xf32>
    %15 = tpu.matmul %13, %14, %cst_7 {dimension_numbers = #tpu.dot_dimension_numbers<[1], [0], [0], [1], [0, 0, 1, 1], [], []>} : vector<128x128xbf16>, vector<128x384xbf16>, vector<128x384xf32> -> vector<128x384xf32>
    %c0_8 = arith.constant 0 : index
    %c0_9 = arith.constant 0 : index
    %16 = vector.load %arg3[%c0_8, %c0_9] : memref<1x384xf32, #tpu.memory_space<vmem>>, vector<1x384xf32>
    %17 = vector.broadcast %16 : vector<1x384xf32> to vector<128x384xf32>
    %18 = arith.addf %15, %17 : vector<128x384xf32>
    %19 = vector.extract_strided_slice %18 {offsets = [0, 0], sizes = [128, 128], strides = [1, 1]} : vector<128x384xf32> to vector<128x128xf32>
    %20 = vector.shape_cast %19 : vector<128x128xf32> to vector<8x16x128xf32>
    %21 = arith.truncf %20 : vector<8x16x128xf32> to vector<8x16x128xbf16>
    %22 = vector.extract_strided_slice %18 {offsets = [0, 128], sizes = [128, 128], strides = [1, 1]} : vector<128x384xf32> to vector<128x128xf32>
    %23 = vector.shape_cast %22 : vector<128x128xf32> to vector<8x16x128xf32>
    %24 = arith.truncf %23 : vector<8x16x128xf32> to vector<8x16x128xbf16>
    %25 = vector.extract_strided_slice %18 {offsets = [0, 256], sizes = [128, 128], strides = [1, 1]} : vector<128x384xf32> to vector<128x128xf32>
    %26 = vector.shape_cast %25 : vector<128x128xf32> to vector<8x16x128xf32>
    %27 = arith.truncf %26 : vector<8x16x128xf32> to vector<8x16x128xbf16>
    %28 = vector.extract_strided_slice %21 {offsets = [0, 0, 0], sizes = [8, 16, 32], strides = [1, 1, 1]} : vector<8x16x128xbf16> to vector<8x16x32xbf16>
    %29 = vector.extract_strided_slice %24 {offsets = [0, 0, 0], sizes = [8, 16, 32], strides = [1, 1, 1]} : vector<8x16x128xbf16> to vector<8x16x32xbf16>
    "tpu.trace_start"() <{level = 10 : i32, message = "bqd,bkd->bqk"}> : () -> ()
    %cst_10 = arith.constant dense<0.000000e+00> : vector<8x16x16xf32>
    %30 = tpu.matmul %28, %29, %cst_10 {dimension_numbers = #tpu.dot_dimension_numbers<[2], [2], [1], [1], [0, 0, 0, 1, 1, 1], [0], [0]>} : vector<8x16x32xbf16>, vector<8x16x32xbf16>, vector<8x16x16xf32> -> vector<8x16x16xf32>
    "tpu.trace_stop"() : () -> ()
    %cst_11 = arith.constant dense<0xFF800000> : vector<8x16xf32>
    %31 = vector.multi_reduction <maximumf>, %30, %cst_11 [2] : vector<8x16x16xf32> to vector<8x16xf32>
    %32 = vector.shape_cast %31 : vector<8x16xf32> to vector<8x16x1xf32>
    %33 = vector.broadcast %32 : vector<8x16x1xf32> to vector<8x16x16xf32>
    %34 = arith.subf %30, %33 : vector<8x16x16xf32>
    %35 = math.exp %34 : vector<8x16x16xf32>
    %cst_12 = arith.constant dense<0.000000e+00> : vector<8x16xf32>
    %36 = vector.multi_reduction <add>, %35, %cst_12 [2] : vector<8x16x16xf32> to vector<8x16xf32>
    %37 = vector.shape_cast %36 : vector<8x16xf32> to vector<8x16x1xf32>
    %cst_13 = arith.constant 1.000000e+00 : f32
    %38 = vector.broadcast %cst_13 : f32 to vector<8x16x1xf32>
    %39 = arith.divf %38, %37 : vector<8x16x1xf32>
    %40 = arith.truncf %35 : vector<8x16x16xf32> to vector<8x16x16xbf16>
    %41 = vector.extract_strided_slice %27 {offsets = [0, 0, 0], sizes = [8, 16, 32], strides = [1, 1, 1]} : vector<8x16x128xbf16> to vector<8x16x32xbf16>
    "tpu.trace_start"() <{level = 10 : i32, message = "bqk,bkd->bqd"}> : () -> ()
    %cst_14 = arith.constant dense<0.000000e+00> : vector<8x16x32xf32>
    %42 = tpu.matmul %40, %41, %cst_14 {dimension_numbers = #tpu.dot_dimension_numbers<[2], [1], [1], [2], [0, 0, 0, 1, 1, 2], [0], [0]>} : vector<8x16x16xbf16>, vector<8x16x32xbf16>, vector<8x16x32xf32> -> vector<8x16x32xf32>
    "tpu.trace_stop"() : () -> ()
    %43 = vector.broadcast %39 : vector<8x16x1xf32> to vector<8x16x32xf32>
    %44 = arith.mulf %42, %43 : vector<8x16x32xf32>
    %45 = vector.extract_strided_slice %21 {offsets = [0, 0, 32], sizes = [8, 16, 32], strides = [1, 1, 1]} : vector<8x16x128xbf16> to vector<8x16x32xbf16>
    %46 = vector.extract_strided_slice %24 {offsets = [0, 0, 32], sizes = [8, 16, 32], strides = [1, 1, 1]} : vector<8x16x128xbf16> to vector<8x16x32xbf16>
    "tpu.trace_start"() <{level = 10 : i32, message = "bqd,bkd->bqk"}> : () -> ()
    %cst_15 = arith.constant dense<0.000000e+00> : vector<8x16x16xf32>
    %47 = tpu.matmul %45, %46, %cst_15 {dimension_numbers = #tpu.dot_dimension_numbers<[2], [2], [1], [1], [0, 0, 0, 1, 1, 1], [0], [0]>} : vector<8x16x32xbf16>, vector<8x16x32xbf16>, vector<8x16x16xf32> -> vector<8x16x16xf32>
    "tpu.trace_stop"() : () -> ()
    %cst_16 = arith.constant dense<0xFF800000> : vector<8x16xf32>
    %48 = vector.multi_reduction <maximumf>, %47, %cst_16 [2] : vector<8x16x16xf32> to vector<8x16xf32>
    %49 = vector.shape_cast %48 : vector<8x16xf32> to vector<8x16x1xf32>
    %50 = vector.broadcast %49 : vector<8x16x1xf32> to vector<8x16x16xf32>
    %51 = arith.subf %47, %50 : vector<8x16x16xf32>
    %52 = math.exp %51 : vector<8x16x16xf32>
    %cst_17 = arith.constant dense<0.000000e+00> : vector<8x16xf32>
    %53 = vector.multi_reduction <add>, %52, %cst_17 [2] : vector<8x16x16xf32> to vector<8x16xf32>
    %54 = vector.shape_cast %53 : vector<8x16xf32> to vector<8x16x1xf32>
    %cst_18 = arith.constant 1.000000e+00 : f32
    %55 = vector.broadcast %cst_18 : f32 to vector<8x16x1xf32>
    %56 = arith.divf %55, %54 : vector<8x16x1xf32>
    %57 = arith.truncf %52 : vector<8x16x16xf32> to vector<8x16x16xbf16>
    %58 = vector.extract_strided_slice %27 {offsets = [0, 0, 32], sizes = [8, 16, 32], strides = [1, 1, 1]} : vector<8x16x128xbf16> to vector<8x16x32xbf16>
    "tpu.trace_start"() <{level = 10 : i32, message = "bqk,bkd->bqd"}> : () -> ()
    %cst_19 = arith.constant dense<0.000000e+00> : vector<8x16x32xf32>
    %59 = tpu.matmul %57, %58, %cst_19 {dimension_numbers = #tpu.dot_dimension_numbers<[2], [1], [1], [2], [0, 0, 0, 1, 1, 2], [0], [0]>} : vector<8x16x16xbf16>, vector<8x16x32xbf16>, vector<8x16x32xf32> -> vector<8x16x32xf32>
    "tpu.trace_stop"() : () -> ()
    %60 = vector.broadcast %56 : vector<8x16x1xf32> to vector<8x16x32xf32>
    %61 = arith.mulf %59, %60 : vector<8x16x32xf32>
    %62 = vector.extract_strided_slice %21 {offsets = [0, 0, 64], sizes = [8, 16, 32], strides = [1, 1, 1]} : vector<8x16x128xbf16> to vector<8x16x32xbf16>
    %63 = vector.extract_strided_slice %24 {offsets = [0, 0, 64], sizes = [8, 16, 32], strides = [1, 1, 1]} : vector<8x16x128xbf16> to vector<8x16x32xbf16>
    "tpu.trace_start"() <{level = 10 : i32, message = "bqd,bkd->bqk"}> : () -> ()
    %cst_20 = arith.constant dense<0.000000e+00> : vector<8x16x16xf32>
    %64 = tpu.matmul %62, %63, %cst_20 {dimension_numbers = #tpu.dot_dimension_numbers<[2], [2], [1], [1], [0, 0, 0, 1, 1, 1], [0], [0]>} : vector<8x16x32xbf16>, vector<8x16x32xbf16>, vector<8x16x16xf32> -> vector<8x16x16xf32>
    "tpu.trace_stop"() : () -> ()
    %cst_21 = arith.constant dense<0xFF800000> : vector<8x16xf32>
    %65 = vector.multi_reduction <maximumf>, %64, %cst_21 [2] : vector<8x16x16xf32> to vector<8x16xf32>
    %66 = vector.shape_cast %65 : vector<8x16xf32> to vector<8x16x1xf32>
    %67 = vector.broadcast %66 : vector<8x16x1xf32> to vector<8x16x16xf32>
    %68 = arith.subf %64, %67 : vector<8x16x16xf32>
    %69 = math.exp %68 : vector<8x16x16xf32>
    %cst_22 = arith.constant dense<0.000000e+00> : vector<8x16xf32>
    %70 = vector.multi_reduction <add>, %69, %cst_22 [2] : vector<8x16x16xf32> to vector<8x16xf32>
    %71 = vector.shape_cast %70 : vector<8x16xf32> to vector<8x16x1xf32>
    %cst_23 = arith.constant 1.000000e+00 : f32
    %72 = vector.broadcast %cst_23 : f32 to vector<8x16x1xf32>
    %73 = arith.divf %72, %71 : vector<8x16x1xf32>
    %74 = arith.truncf %69 : vector<8x16x16xf32> to vector<8x16x16xbf16>
    %75 = vector.extract_strided_slice %27 {offsets = [0, 0, 64], sizes = [8, 16, 32], strides = [1, 1, 1]} : vector<8x16x128xbf16> to vector<8x16x32xbf16>
    "tpu.trace_start"() <{level = 10 : i32, message = "bqk,bkd->bqd"}> : () -> ()
    %cst_24 = arith.constant dense<0.000000e+00> : vector<8x16x32xf32>
    %76 = tpu.matmul %74, %75, %cst_24 {dimension_numbers = #tpu.dot_dimension_numbers<[2], [1], [1], [2], [0, 0, 0, 1, 1, 2], [0], [0]>} : vector<8x16x16xbf16>, vector<8x16x32xbf16>, vector<8x16x32xf32> -> vector<8x16x32xf32>
    "tpu.trace_stop"() : () -> ()
    %77 = vector.broadcast %73 : vector<8x16x1xf32> to vector<8x16x32xf32>
    %78 = arith.mulf %76, %77 : vector<8x16x32xf32>
    %79 = vector.extract_strided_slice %21 {offsets = [0, 0, 96], sizes = [8, 16, 32], strides = [1, 1, 1]} : vector<8x16x128xbf16> to vector<8x16x32xbf16>
    %80 = vector.extract_strided_slice %24 {offsets = [0, 0, 96], sizes = [8, 16, 32], strides = [1, 1, 1]} : vector<8x16x128xbf16> to vector<8x16x32xbf16>
    "tpu.trace_start"() <{level = 10 : i32, message = "bqd,bkd->bqk"}> : () -> ()
    %cst_25 = arith.constant dense<0.000000e+00> : vector<8x16x16xf32>
    %81 = tpu.matmul %79, %80, %cst_25 {dimension_numbers = #tpu.dot_dimension_numbers<[2], [2], [1], [1], [0, 0, 0, 1, 1, 1], [0], [0]>} : vector<8x16x32xbf16>, vector<8x16x32xbf16>, vector<8x16x16xf32> -> vector<8x16x16xf32>
    "tpu.trace_stop"() : () -> ()
    %cst_26 = arith.constant dense<0xFF800000> : vector<8x16xf32>
    %82 = vector.multi_reduction <maximumf>, %81, %cst_26 [2] : vector<8x16x16xf32> to vector<8x16xf32>
    %83 = vector.shape_cast %82 : vector<8x16xf32> to vector<8x16x1xf32>
    %84 = vector.broadcast %83 : vector<8x16x1xf32> to vector<8x16x16xf32>
    %85 = arith.subf %81, %84 : vector<8x16x16xf32>
    %86 = math.exp %85 : vector<8x16x16xf32>
    %cst_27 = arith.constant dense<0.000000e+00> : vector<8x16xf32>
    %87 = vector.multi_reduction <add>, %86, %cst_27 [2] : vector<8x16x16xf32> to vector<8x16xf32>
    %88 = vector.shape_cast %87 : vector<8x16xf32> to vector<8x16x1xf32>
    %cst_28 = arith.constant 1.000000e+00 : f32
    %89 = vector.broadcast %cst_28 : f32 to vector<8x16x1xf32>
    %90 = arith.divf %89, %88 : vector<8x16x1xf32>
    %91 = arith.truncf %86 : vector<8x16x16xf32> to vector<8x16x16xbf16>
    %92 = vector.extract_strided_slice %27 {offsets = [0, 0, 96], sizes = [8, 16, 32], strides = [1, 1, 1]} : vector<8x16x128xbf16> to vector<8x16x32xbf16>
    "tpu.trace_start"() <{level = 10 : i32, message = "bqk,bkd->bqd"}> : () -> ()
    %cst_29 = arith.constant dense<0.000000e+00> : vector<8x16x32xf32>
    %93 = tpu.matmul %91, %92, %cst_29 {dimension_numbers = #tpu.dot_dimension_numbers<[2], [1], [1], [2], [0, 0, 0, 1, 1, 2], [0], [0]>} : vector<8x16x16xbf16>, vector<8x16x32xbf16>, vector<8x16x32xf32> -> vector<8x16x32xf32>
    "tpu.trace_stop"() : () -> ()
    %94 = vector.broadcast %90 : vector<8x16x1xf32> to vector<8x16x32xf32>
    %95 = arith.mulf %93, %94 : vector<8x16x32xf32>
    %96 = tpu.concatenate %44, %61, %78, %95 in 2 : vector<8x16x32xf32>, vector<8x16x32xf32>, vector<8x16x32xf32>, vector<8x16x32xf32> -> vector<8x16x128xf32>
    %97 = vector.shape_cast %96 : vector<8x16x128xf32> to vector<128x128xf32>
    %98 = arith.truncf %97 : vector<128x128xf32> to vector<128x128xbf16>
    %c0_30 = arith.constant 0 : index
    %c0_31 = arith.constant 0 : index
    %99 = vector.load %arg4[%c0_30, %c0_31] : memref<128x128xbf16, #tpu.memory_space<vmem>>, vector<128x128xbf16>
    %cst_32 = arith.constant dense<0.000000e+00> : vector<128x128xf32>
    %100 = tpu.matmul %98, %99, %cst_32 {dimension_numbers = #tpu.dot_dimension_numbers<[1], [0], [0], [1], [0, 0, 1, 1], [], []>} : vector<128x128xbf16>, vector<128x128xbf16>, vector<128x128xf32> -> vector<128x128xf32>
    %c0_33 = arith.constant 0 : index
    %c0_34 = arith.constant 0 : index
    %101 = vector.load %arg5[%c0_33, %c0_34] : memref<1x128xf32, #tpu.memory_space<vmem>>, vector<1x128xf32>
    %102 = vector.broadcast %101 : vector<1x128xf32> to vector<128x128xf32>
    %103 = arith.addf %100, %102 : vector<128x128xf32>
    %104 = arith.addf %103, %1 : vector<128x128xf32>
    %105 = arith.mulf %104, %104 : vector<128x128xf32>
    %cst_35 = arith.constant dense<0.000000e+00> : vector<128xf32>
    %106 = vector.multi_reduction <add>, %105, %cst_35 [1] : vector<128x128xf32> to vector<128xf32>
    %107 = vector.shape_cast %106 : vector<128xf32> to vector<128x1xf32>
    %c0_36 = arith.constant 0 : index
    %c0_37 = arith.constant 0 : index
    %108 = memref.load %arg11[%c0_36, %c0_37] : memref<1x1xf32, #tpu.memory_space<smem>>
    %cst_38 = arith.constant 1.000000e-10 : f32
    %109 = vector.broadcast %cst_38 : f32 to vector<128x1xf32>
    %110 = arith.maximumf %107, %109 : vector<128x1xf32>
    %111 = math.rsqrt %110 : vector<128x1xf32>
    %112 = vector.broadcast %108 : f32 to vector<128x1xf32>
    %113 = arith.mulf %112, %111 : vector<128x1xf32>
    %114 = vector.broadcast %113 : vector<128x1xf32> to vector<128x128xf32>
    %115 = arith.mulf %104, %114 : vector<128x128xf32>
    %116 = arith.truncf %115 : vector<128x128xf32> to vector<128x128xbf16>
    %c0_39 = arith.constant 0 : index
    %c0_40 = arith.constant 0 : index
    %117 = vector.load %arg6[%c0_39, %c0_40] : memref<128x256xbf16, #tpu.memory_space<vmem>>, vector<128x256xbf16>
    %cst_41 = arith.constant dense<0.000000e+00> : vector<128x256xf32>
    %118 = tpu.matmul %116, %117, %cst_41 {dimension_numbers = #tpu.dot_dimension_numbers<[1], [0], [0], [1], [0, 0, 1, 1], [], []>} : vector<128x128xbf16>, vector<128x256xbf16>, vector<128x256xf32> -> vector<128x256xf32>
    %c0_42 = arith.constant 0 : index
    %c0_43 = arith.constant 0 : index
    %119 = vector.load %arg7[%c0_42, %c0_43] : memref<1x256xf32, #tpu.memory_space<vmem>>, vector<1x256xf32>
    %120 = vector.broadcast %119 : vector<1x256xf32> to vector<128x256xf32>
    %121 = arith.addf %118, %120 : vector<128x256xf32>
    %cst_44 = arith.constant 0.000000e+00 : f32
    %122 = vector.broadcast %cst_44 : f32 to vector<128x256xf32>
    %123 = arith.maximumf %121, %122 : vector<128x256xf32>
    %124 = arith.truncf %123 : vector<128x256xf32> to vector<128x256xbf16>
    %c0_45 = arith.constant 0 : index
    %c0_46 = arith.constant 0 : index
    %125 = vector.load %arg8[%c0_45, %c0_46] : memref<256x128xbf16, #tpu.memory_space<vmem>>, vector<256x128xbf16>
    %cst_47 = arith.constant dense<0.000000e+00> : vector<128x128xf32>
    %126 = tpu.matmul %124, %125, %cst_47 {dimension_numbers = #tpu.dot_dimension_numbers<[1], [0], [0], [1], [0, 0, 1, 1], [], []>} : vector<128x256xbf16>, vector<256x128xbf16>, vector<128x128xf32> -> vector<128x128xf32>
    %c0_48 = arith.constant 0 : index
    %c0_49 = arith.constant 0 : index
    %127 = vector.load %arg9[%c0_48, %c0_49] : memref<1x128xf32, #tpu.memory_space<vmem>>, vector<1x128xf32>
    %128 = vector.broadcast %127 : vector<1x128xf32> to vector<128x128xf32>
    %129 = arith.addf %126, %128 : vector<128x128xf32>
    %130 = arith.addf %129, %104 : vector<128x128xf32>
    %131 = vector.shape_cast %130 : vector<128x128xf32> to vector<8x16x128xf32>
    %c0_50 = arith.constant 0 : index
    %c0_51 = arith.constant 0 : index
    %c0_52 = arith.constant 0 : index
    %132 = vector.load %arg12[%c0_50, %c0_51, %c0_52] : memref<8x16x128xf32, #tpu.memory_space<vmem>>, vector<8x16x128xf32>
    tpu.vector_store %arg12[%c0_50, %c0_51, %c0_52], %131 {strides = array<i32>} : memref<8x16x128xf32, #tpu.memory_space<vmem>>, vector<8x16x128xf32>,
    return
  }
  func.func @transform_0(%arg0: i32) -> (i32, i32, i32) {
    %c0_i32 = arith.constant 0 : i32
    %c0_i32_0 = arith.constant 0 : i32
    %c0_i32_1 = arith.constant 0 : i32
    return %arg0, %c0_i32, %c0_i32_0 : i32, i32, i32
  }
  func.func @transform_1(%arg0: i32) -> (i32, i32) {
    %c0_i32 = arith.constant 0 : i32
    %c0_i32_0 = arith.constant 0 : i32
    %c0_i32_1 = arith.constant 0 : i32
    return %c0_i32, %c0_i32_0 : i32, i32
  }
  func.func @transform_2(%arg0: i32) -> (i32, i32) {
    %c0_i32 = arith.constant 0 : i32
    %c0_i32_0 = arith.constant 0 : i32
    %c0_i32_1 = arith.constant 0 : i32
    return %c0_i32, %c0_i32_0 : i32, i32
  }
  func.func @transform_3(%arg0: i32) -> (i32, i32) {
    %c0_i32 = arith.constant 0 : i32
    %c0_i32_0 = arith.constant 0 : i32
    %c0_i32_1 = arith.constant 0 : i32
    return %c0_i32, %c0_i32_0 : i32, i32
  }
  func.func @transform_4(%arg0: i32) -> (i32, i32) {
    %c0_i32 = arith.constant 0 : i32
    %c0_i32_0 = arith.constant 0 : i32
    %c0_i32_1 = arith.constant 0 : i32
    return %c0_i32, %c0_i32_0 : i32, i32
  }
  func.func @transform_5(%arg0: i32) -> (i32, i32) {
    %c0_i32 = arith.constant 0 : i32
    %c0_i32_0 = arith.constant 0 : i32
    %c0_i32_1 = arith.constant 0 : i32
    return %c0_i32, %c0_i32_0 : i32, i32
  }
  func.func @transform_6(%arg0: i32) -> (i32, i32) {
    %c0_i32 = arith.constant 0 : i32
    %c0_i32_0 = arith.constant 0 : i32
    %c0_i32_1 = arith.constant 0 : i32
    return %c0_i32, %c0_i32_0 : i32, i32
  }
  func.func @transform_7(%arg0: i32) -> (i32, i32) {
    %c0_i32 = arith.constant 0 : i32
    %c0_i32_0 = arith.constant 0 : i32
    %c0_i32_1 = arith.constant 0 : i32
    return %c0_i32, %c0_i32_0 : i32, i32
  }
  func.func @transform_8(%arg0: i32) -> (i32, i32) {
    %c0_i32 = arith.constant 0 : i32
    %c0_i32_0 = arith.constant 0 : i32
    %c0_i32_1 = arith.constant 0 : i32
    return %c0_i32, %c0_i32_0 : i32, i32
  }
  func.func @transform_9(%arg0: i32) -> (i32, i32) {
    %c0_i32 = arith.constant 0 : i32
    %c0_i32_0 = arith.constant 0 : i32
    %c0_i32_1 = arith.constant 0 : i32
    return %c0_i32, %c0_i32_0 : i32, i32
  }
  func.func @transform_10(%arg0: i32) -> (i32, i32) {
    %c0_i32 = arith.constant 0 : i32
    %c0_i32_0 = arith.constant 0 : i32
    %c0_i32_1 = arith.constant 0 : i32
    return %c0_i32, %c0_i32_0 : i32, i32
  }
  func.func @transform_11(%arg0: i32) -> (i32, i32, i32) {
    %c0_i32 = arith.constant 0 : i32
    %c0_i32_0 = arith.constant 0 : i32
    %c0_i32_1 = arith.constant 0 : i32
    return %arg0, %c0_i32, %c0_i32_0 : i32, i32, i32
  }
}

</mosaic_0001>

<bundles_post_ra>
// kernel: tpu_custom_call.1
= control target key start
LH: loop header
LB: loop body
LE: loop exit
PB: predicated region body
PF: predicated region fallthrough
CT: control target
= control target key end

     0   :  { %s10104_s0 = inlined_call_operand.hbm [shape: f32[16,16,128], index: 0, kind: input, shape index: {}]   ;;  %s10105_s1 = inlined_call_operand.hbm [shape: bf16[128,384], index: 1, kind: input, shape index: {}]   ;;  %s10106_s2 = inlined_call_operand.vmem [shape: f32[1,384], index: 2, kind: input, shape index: {}]   ;;  %s10107_s3 = inlined_call_operand.hbm [shape: bf16[128,128], index: 3, kind: input, shape index: {}]   ;;  %s10108_s4 = inlined_call_operand.vmem [shape: f32[1,128], index: 4, kind: input, shape index: {}]   ;;  %s10109_s5 = inlined_call_operand.hbm [shape: bf16[128,256], index: 5, kind: input, shape index: {}]   ;;  %s10110_s6 = inlined_call_operand.vmem [shape: f32[1,256], index: 6, kind: input, shape index: {}]   ;;  %s10111_s7 = inlined_call_operand.hbm [shape: bf16[256,128], index: 7, kind: input, shape index: {}]   ;;  %s10112_s8 = inlined_call_operand.vmem [shape: f32[1,128], index: 8, kind: input, shape index: {}]   ;;  %s10113_s9 = inlined_call_operand.<no memory space> [shape: f32[1,1], index: 9, kind: input, shape index: {}]   ;;  %s10114_s10 = inlined_call_operand.<no memory space> [shape: f32[1,1], index: 10, kind: input, shape index: {}]   ;;  %s10115_s11 = inlined_call_operand.hbm [shape: f32[16,16,128], index: 11, kind: output, shape index: {}]  }
   0x1   :  { %10146 = sst [smem:[#allocation71_spill]] %s10105_s1 }
   0x2   :  { %10147 = sst [smem:[#allocation72_spill]] %s10107_s3 }
   0x3   :  { %10148 = sst [smem:[#allocation73_spill]] %s10109_s5 }
   0x4   :  { %16 = sst [smem:[#allocation2]] %s10113_s9 }
   0x5   :  { %17 = sst [smem:[#allocation3]] %s10114_s10 }
   0x6   :  { %18 = vsyncpa [#allocation5], 0 }
   0x7   :  { %20 = vsyncpa [#allocation5 + $0x1], 0 }
   0x8   :  { %21 = vsyncpa [#allocation8], 0 }
   0x9   :  { %22 = vsyncpa [#allocation11], 0 }
   0xa   :  { %23 = vsyncpa [#allocation6], 0 }
   0xb   :  { %25 = vsyncpa [#allocation6 + $0x1], 0  ;;  %s7914_s21 = smov 0   ;;  %s7916_s22 = smov 0  }
   0xc   :  { %s7918_s23 = smov 0   ;;  %s7920_s24 = smov 0  }
   0xd LB: > { %s7935_s9 = sadd.s32 4294967295, %s7826_s24   ;;  %s6139_s10 = sadd.s32 4294967294, %s7826_s24   ;;  %s7826_s24 = sphi %s7920_s24, %s10287_s24   ;;  %s7822_s23 = sphi %s7918_s23, %s10286_s23   ;;  %s7818_s22 = sphi %s7916_s22, %s10285_s22   ;;  %s7814_s21 = sphi %s7914_s21, %s10284_s21  }
   0xe   : > { %p51_p0 = scmp.ne.s32.totalorder %s7818_s22, %s7814_s21  ;;  %p10116_p1 = scmp.eq.s32.totalorder %s7935_s9, 0 }
   0xf   : > { %p291_p3 = scmp.eq.s32.totalorder %s6139_s10, 1  ;;  %p6140_p5 = scmp.ge.s32.totalorder %s7826_s24, 1 }
  0x10   : > { %p7944_p4 = por %p10116_p1, %p51_p0  ;;  %p298_p7 = scmp.lt.s32.totalorder %s7826_s24, 3 }
  0x11   : > { %p7949_p6 = por %p291_p3, %p51_p0  ;;  %s7828_s28 = smov [#allocation7]  }
  0x12   : > { %s10149_s25 = scalar_select %p7944_p4, 1, 0 }
  0x13   : > { %s10150_s26 = scalar_select %p7949_p6, 1, 0 }
  0x14   : > { %p7954_p8 = pnand %p6140_p5, %p298_p7  ;;  %s310_s29 = sshll.u32 %s7828_s28, 4  ;;  %s311_s29 = int_to_ptr.vmem [resolvable:$true] %s310_s29 }
  0x15   : > { %s7829_s12 = smov [#allocation10]   ;;  %s7633_s14 = scalar_lea.vmem %s311_s29, 3072 }
  0x16   : > { %s10151_s27 = scalar_select %p7954_p8, 1, 0 }
  0x17   : > { %p7005_p9 = pneg %p7954_p8  ;;  %s342_s13 = sshll.u32 %s7829_s12, 4  ;;  %s343_s13 = int_to_ptr.vmem [resolvable:$true] %s342_s13 }
  0x18   : > { %p7634_p13 = scmp.ne.s32.totalorder %s311_s29, %s7633_s14  ;;  %p7641_p5 = scmp.lt.s32.totalorder %s311_s29, %s311_s29 }
  0x19   : > { %p7963_p11 = pnand %p7005_p9, %p10116_p1  ;;  %p7642_p7 = scmp.lt.s32.totalorder %s7633_s14, %s7633_s14 }
  0x1b   : > { %p7624_p12 = pneg %p7963_p11  ;;  %p7643_p10 = por %p7642_p7, %p7641_p5 }
  0x1d   : > { %p7636_p0 = pnand %p7634_p13, %p7624_p12 }
  0x1f   : > { %p7637_p3 = pneg %p7636_p0 }
  0x21   : > { %p7644_p9 = pnand %p7643_p10, %p7637_p3 }
  0x23   : > { %7647 = shalt.err (!%p7644_p9)
}
  0x24   : > { %s7830_s15 = smov 192   ;;  %s7831_s16 = smov 12  }
  0x25   : > { %s10153_s1 = sld [smem:[#allocation71_spill]]  ;;  %s7659_s19 = scalar_lea.vmem %s343_s13, 2048 }
  0x26   : > { %p7660_p1 = scmp.ne.s32.totalorder %s343_s13, %s7659_s19  ;;  %p7667_p2 = scmp.lt.s32.totalorder %s343_s13, %s343_s13 }
  0x27   : > { %p7668_p6 = scmp.lt.s32.totalorder %s7659_s19, %s7659_s19 }
  0x28   : > { %p7662_p13 = pnand %p7660_p1, %p7624_p12 }
  0x29   : > { %p7669_p5 = por %p7668_p6, %p7667_p2 }
  0x2a   : > { %p7663_p0 = pneg %p7662_p13 }
  0x2b   : > { %7008 = dma.hbm_to_vmem [thread:$0]  (!%p7963_p11), %s10153_s1, 3072, %s311_s29, [#allocation8], %s7830_s15, %s7830_s15, %s7831_s16  }
  0x2c   : > { %p7670_p10 = pnand %p7669_p5, %p7663_p0 }
  0x2e   : > { %7673 = shalt.err (!%p7670_p10)
}
  0x2f   : > { %s10117_s20 = smov 128   ;;  %s10118_s10 = smov 8  }
  0x30   : > { %s10154_s5 = sld [smem:[#allocation73_spill]]  ;;  %s7834_s12 = smov [#allocation9]  }
  0x31   : > { %s326_s14 = sshll.u32 %s7834_s12, 4  ;;  %s327_s14 = int_to_ptr.vmem [resolvable:$true] %s326_s14 }
  0x32   : > { %s7685_s15 = scalar_lea.vmem %s327_s14, 1024  ;;  %p7693_p3 = scmp.lt.s32.totalorder %s327_s14, %s327_s14 }
  0x33   : > { %p7686_p1 = scmp.ne.s32.totalorder %s327_s14, %s7685_s15  ;;  %p7694_p7 = scmp.lt.s32.totalorder %s7685_s15, %s7685_s15 }
  0x35   : > { %p7688_p2 = pnand %p7686_p1, %p7624_p12  ;;  %p7695_p9 = por %p7694_p7, %p7693_p3 }
  0x36   : > { %7014 = dma.hbm_to_vmem [thread:$0]  (!%p7963_p11), %s10154_s5, 2048, %s343_s13, [#allocation11], %s10117_s20, %s10117_s20, %s10118_s10  }
  0x37   : > { %p7689_p6 = pneg %p7688_p2 }
  0x39   : > { %p7696_p13 = pnand %p7695_p9, %p7689_p6 }
  0x3b   : > { %7699 = shalt.err (!%p7696_p13)
}
  0x3c   : > { %s7835_s16 = smov 64   ;;  %s7836_s17 = smov 4  }
  0x3d   : > { %s10155_s3 = sld [smem:[#allocation72_spill]]  ;;  %s7837_s19 = smov [#allocation12]  }
  0x3e   : > { %s358_s28 = sshll.u32 %s7837_s19, 4  ;;  %s359_s28 = int_to_ptr.vmem [resolvable:$true] %s358_s28 }
  0x3f   : > { %s7711_s29 = scalar_lea.vmem %s359_s28, 2048  ;;  %p7719_p1 = scmp.lt.s32.totalorder %s359_s28, %s359_s28 }
  0x40   : > { %p7712_p0 = scmp.ne.s32.totalorder %s359_s28, %s7711_s29  ;;  %p7720_p2 = scmp.lt.s32.totalorder %s7711_s29, %s7711_s29 }
  0x42   : > { %p7714_p5 = pnand %p7712_p0, %p7624_p12  ;;  %p7721_p6 = por %p7720_p2, %p7719_p1 }
  0x43   : > { %7011 = dma.hbm_to_vmem [thread:$0]  (!%p7963_p11), %s10155_s3, 1024, %s327_s14, [#allocation8], %s7835_s16, %s7835_s16, %s7836_s17  }
  0x44   : > { %p7715_p10 = pneg %p7714_p5 }
  0x46   : > { %p7722_p3 = pnand %p7721_p6, %p7715_p10 }
  0x48   : > { %7725 = shalt.err (!%p7722_p3)
}
  0x49   : > { %7017 = dma.hbm_to_vmem [thread:$0]  (!%p7963_p11), %s10111_s7, 2048, %s359_s28, [#allocation11], %s7835_s16, %s7835_s16, %s7836_s17  }
  0x4a   : > { %s8005_s14 = sadd.s32 1, %s7826_s24   ;;  %s38_s13 = sadd.s32 1, %s7822_s23 }
  0x4b   : > { %s35_s30 = ssub.s32 %s7826_s24, %s8005_s14  ;;  %p45_p12 = scmp.ne.s32.totalorder %s7822_s23, %s7818_s22 }
  0x4c   : > { %p36_p7 = scmp.eq.s32.totalorder %s35_s30, 0  ;;  %p46_p9 = scmp.eq.s32.totalorder %s7826_s24, 0 }
  0x4d   : > { %p10156_p13 = scmp.eq.s32.totalorder %s7935_s9, 1  ;;  %p7030_p5 = scmp.lt.s32.totalorder %s7826_s24, 2 }
  0x4e   : > { %s8021_s19 = scalar_select %p36_p7, %s7822_s23, %s38_s13  }
  0x4f   : > { %p8015_p0 = por %p10156_p13, %p45_p12  ;;  %p47_p10 = por %p46_p9, %p45_p12 }
  0x50   : > { %s381_s29 = sand.u32 1, %s7822_s23   ;;  %s6294_s16 = sshll.u32 %s7826_s24, 11 }
  0x51   : > { %s10157_s18 = scalar_select %p8015_p0, 1, 0 }
  0x52   : > { %s6146_s12 = sshll.u32 %s381_s29, 7  ;;  %s8028_s15 = scalar_lea.hbm %s10104_s0, %s6294_s16 }
  0x53   : > { %s385_s30 = scalar_lea.vmem [#allocation4], %s6146_s12  ;;  %p8032_p11 = pnand %p7030_p5, %p47_p10 }
  0x54   : > { %s393_s20 = sshll.u32 %s385_s30, 4  ;;  %s8036_s13 = scalar_lea.sflag [#allocation5], %s381_s29  ;;  %s8030_s20 = int_to_ptr.vmem [resolvable:$true] %s393_s20 }
  0x55   : > { %s7726_s1 = scalar_lea.hbm %s8028_s15, 2048  ;;  %p7728_p2 = pneg %p8032_p11 }
  0x56   : > { %p7727_p1 = scmp.ne.s32.totalorder %s8028_s15, %s7726_s1  ;;  %s7731_s12 = scalar_lea.hbm %s10104_s0, 4096 }
  0x57   : > { %p7732_p12 = scmp.lt.s32.totalorder %s8028_s15, %s10104_s0  ;;  %p7733_p7 = scmp.lt.s32.totalorder %s7731_s12, %s7726_s1 }
  0x58   : > { %p7729_p6 = pnand %p7728_p2, %p7727_p1 }
  0x59   : > { %p7734_p9 = por %p7733_p7, %p7732_p12 }
  0x5a   : > { %p7730_p3 = pneg %p7729_p6 }
  0x5c   : > { %p7735_p13 = pnand %p7734_p9, %p7730_p3 }
  0x5e   : > { %7738 = shalt.err (!%p7735_p13)
}
  0x5f   : > { %s7739_s29 = scalar_lea.vmem %s8030_s20, 2048  ;;  %s7838_s3 = smov [#allocation4]  }
  0x60   : > { %p7740_p5 = scmp.ne.s32.totalorder %s8030_s20, %s7739_s29  ;;  %s7744_s5 = sshll.u32 %s7838_s3, 4  ;;  %s7745_s5 = int_to_ptr.vmem [resolvable:$false] %s7744_s5 }
  0x61   : > { %s7746_s16 = scalar_lea.vmem %s7745_s5, 4096  ;;  %p7747_p6 = scmp.lt.s32.totalorder %s8030_s20, %s7745_s5 }
  0x62   : > { %p7742_p10 = pnand %p7740_p5, %p7728_p2  ;;  %p7748_p0 = scmp.lt.s32.totalorder %s7746_s16, %s7739_s29 }
  0x64   : > { %p7743_p1 = pneg %p7742_p10  ;;  %p7749_p4 = por %p7748_p0, %p7747_p6 }
  0x66   : > { %p7750_p8 = pnand %p7749_p4, %p7743_p1 }
  0x68   : > { %7753 = shalt.err (!%p7750_p8)
}
  0x69   : > { %s10159_s1 = smov 8   ;;  %s10160_s17 = smov 128  }
  0x6a   : > { %7021 = dma.hbm_to_vmem [thread:$0]  (!%p8032_p11), %s8028_s15, 2048, %s8030_s20, %s8036_s13, %s10160_s17, %s10160_s17, %s10159_s1  }
  0x6b   : > { %p10161_p2 = scmp.ne.s32.totalorder %s10151_s27, 0 }
  0x6d   : > { %405 = sbr.rel (%p10161_p2) target bundleno = 3450 (0xd7a), region = 64 }
  0x72   : > { %s8063_s3 = sand.u32 1, %s7818_s22   ;;  %p10162_p4 = scmp.ne.s32.totalorder %s10149_s25, 0 }
  0x73   : > { %s6151_s5 = sshll.u32 %s8063_s3, 7  ;;  %s408_s12 = scalar_lea.sflag [#allocation5], %s8063_s3 }
  0x74   : > { %s8069_s10 = scalar_lea.vmem [#allocation4], %s6151_s5 }
  0x75   : > { %7797 = dma.done.wait (%p10162_p4), %s408_s12, 2048  }
  0x76   : > { %7799 = vsyncadd (%p10162_p4), %s408_s12, 4294965248  ;;  %p10163_p8 = scmp.eq.s32.totalorder %s7935_s9, 0 }
  0x78   : > { %7801 = dma.done.wait (%p10163_p8), [#allocation8], 4096   ;;  %p10164_p0 = pmov %p10163_p8 }
  0x7a   : > { %7803 = vsyncadd (%p10164_p0), [#allocation8], 4294963200  ;;  %p10165_p11 = pmov %p10164_p0 }
  0x7b   : > { %p10166_p3 = pmov %p10164_p0 }
  0x7c   : > { %7805 = dma.done.wait (%p10165_p11), [#allocation11], 4096  }
  0x7d   : > { %7807 = vsyncadd (%p10166_p3), [#allocation11], 4294963200  ;;  %v8084_v0 = vld [vmem:[%s8069_s10] sm:$0xff]  ;;  %v8087_v1 = vld [vmem:[%s8069_s10 + $0x10] sm:$0xff]  ;;  %v10124_v56 = vmov 0   ;;  %s533_s25 = sld [smem:[#allocation2]] }
  0x7e   : > { %v8090_v2 = vld [vmem:[%s8069_s10 + $0x8] sm:$0xff]  ;;  %v485_v3 = vmul.f32 %v8084_v0, %v8084_v0  ;;  %v487_v4 = vmul.f32 %v8087_v1, %v8087_v1  ;;  %v8097_v5 = vld [vmem:[%s8069_s10 + $0x18] sm:$0xff]  ;;  %v8107_v9 = vld [vmem:[%s8069_s10 + $0x20] sm:$0xff]  ;;  %816 = vmatprep.mubr.bf16.mxu0 %v10124_v56  ;;  %vm7841_vm0 = vmmov 0   ;;  %vm1018_vm1 = vcmask 261120   ;;  %s7842_s15 = smov 96  }
  0x7f   : > { %v486_v6 = vmul.f32 %v8090_v2, %v8090_v2  ;;  %v488_v7 = vmul.f32 %v8097_v5, %v8097_v5  ;;  %v8104_v8 = vld [vmem:[%s8069_s10 + $0x28] sm:$0xff]  ;;  %v8110_v10 = vld [vmem:[%s8069_s10 + $0x38] sm:$0xff]  ;;  %v8113_v11 = vld [vmem:[%s8069_s10 + $0x30] sm:$0xff]  ;;  %v489_v15 = vmul.f32 %v8107_v9, %v8107_v9  ;;  %vm1395_vm2 = vcmask 130048   ;;  %s7843_s13 = smov 64   ;;  %s7844_s28 = smov 32  }
  0x80   : > { %501 = vadd.xlane.f32.xlu0 %v485_v3  ;;  %505 = vadd.xlane.f32.xlu1 %v487_v4  ;;  %v7206_v12 = vld [vmem:[#allocation7 + $0xac] ss:$12 sps:$4 sm:$0xff]   ;;  %v7208_v13 = vld [vmem:[#allocation7 + $0xa8] ss:$12 sps:$4 sm:$0xff]   ;;  %v490_v14 = vmul.f32 %v8104_v8, %v8104_v8  ;;  %v7209_v16 = vld [vmem:[#allocation7 + $0xb0] ss:$12 sps:$4 sm:$0xff]   ;;  %v492_v22 = vmul.f32 %v8110_v10, %v8110_v10  ;;  %v491_v23 = vmul.f32 %v8113_v11, %v8113_v11 }
  0x81   : > { %784 = vmatprep.subr.bf16.mxu0 %v7206_v12  ;;  %v7210_v17 = vld [vmem:[#allocation7 + $0x94] ss:$12 sps:$4 sm:$0xff]   ;;  %v7212_v18 = vld [vmem:[#allocation7 + $0x90] ss:$12 sps:$4 sm:$0xff]   ;;  %6521 = vmatprep.subr.bf16.mxu1 %v7209_v16  ;;  %v7213_v19 = vld [vmem:[#allocation7 + $0x98] ss:$12 sps:$4 sm:$0xff]  }
  0x82   : > { %785 = vmatpush1.bf16.msra.mxu0 %v7208_v13  ;;  %v8120_v20 = vld [vmem:[%s8069_s10 + $0x48] sm:$0xff]  ;;  %v8123_v21 = vld [vmem:[%s8069_s10 + $0x40] sm:$0xff]  ;;  %6522 = vmatpush3.bf16.msra.mxu1 %v7209_v16  ;;  %v8130_v25 = vld [vmem:[%s8069_s10 + $0x58] sm:$0xff]  ;;  %vm5132_vm3 = vcmask 523264   ;;  %vm5149_vm4 = vcmask 785408   ;;  %s5406_s16 = sld [smem:[#allocation3]] }
  0x83   : > { %786 = vmatprep.subr.bf16.mxu0 %v7210_v17  ;;  %6523 = vmatprep.subr.bf16.mxu1 %v7213_v19  ;;  %v7214_v24 = vld [vmem:[#allocation7 + $0x7c] ss:$12 sps:$4 sm:$0xff]   ;;  %v8133_v26 = vld [vmem:[%s8069_s10 + $0x50] sm:$0xff]  ;;  %v7216_v27 = vld [vmem:[#allocation7 + $0x78] ss:$12 sps:$4 sm:$0xff]   ;;  %v494_v29 = vmul.f32 %v8120_v20, %v8120_v20  ;;  %v493_v30 = vmul.f32 %v8123_v21, %v8123_v21  ;;  %v496_v35 = vmul.f32 %v8130_v25, %v8130_v25  ;;  %p10281_p7 = scmp.ne.s32.totalorder %s10157_s18, 0 }
  0x84   : > { %503 = vadd.xlane.f32.xlu0 %v486_v6  ;;  %507 = vadd.xlane.f32.xlu1 %v488_v7  ;;  %v7217_v28 = vld [vmem:[#allocation7 + $0x80] ss:$12 sps:$4 sm:$0xff]   ;;  %v7218_v31 = vld [vmem:[#allocation7 + $0x64] ss:$12 sps:$4 sm:$0xff]   ;;  %v7221_v34 = vld [vmem:[#allocation7 + $0x68] ss:$12 sps:$4 sm:$0xff]   ;;  %v495_v36 = vmul.f32 %v8133_v26, %v8133_v26 }
  0x85   : > { %v8140_v32 = vld [vmem:[%s8069_s10 + $0x68] sm:$0xff]  ;;  %v8147_v37 = vld [vmem:[%s8069_s10 + $0x60] sm:$0xff]  ;;  %v7225_v39 = vld [vmem:[#allocation7 + $0x50] ss:$12 sps:$4 sm:$0xff]  }
  0x86   : > { %787 = vmatpush1.bf16.msra.mxu0 %v7212_v18  ;;  %6524 = vmatpush3.bf16.msra.mxu1 %v7213_v19  ;;  %v7220_v33 = vld [vmem:[#allocation7 + $0x60] ss:$12 sps:$4 sm:$0xff]   ;;  %v7224_v40 = vld [vmem:[#allocation7 + $0x48] ss:$12 sps:$4 sm:$0xff]   ;;  %v8150_v41 = vld [vmem:[%s8069_s10 + $0x78] sm:$0xff]  ;;  %v498_v44 = vmul.f32 %v8140_v32, %v8140_v32  ;;  %v497_v45 = vmul.f32 %v8147_v37, %v8147_v37  ;;  %v8164_v18 = vstv %s533_s25  ;;  %s10006_s25 = scalar_lea.vmem [#allocation13], %s6151_s5 }
  0x87   : > { %788 = vmatprep.subr.bf16.mxu0 %v7214_v24  ;;  %6525 = vmatprep.subr.bf16.mxu1 %v7217_v28  ;;  %v7222_v38 = vld [vmem:[#allocation7 + $0x4c] ss:$12 sps:$4 sm:$0xff]   ;;  %v8153_v42 = vld [vmem:[%s8069_s10 + $0x70] sm:$0xff]  ;;  %v7230_v48 = vld [vmem:[#allocation7 + $0x1c] ss:$12 sps:$4 sm:$0xff]   ;;  %v500_v49 = vmul.f32 %v8150_v41, %v8150_v41  ;;  %s6296_s5 = sshll.u32 %s7935_s9, 11 }
  0x88   : > { %511 = vadd.xlane.f32.xlu1 %v490_v14  ;;  %509 = vadd.xlane.f32.xlu0 %v489_v15  ;;  %v7226_v43 = vld [vmem:[#allocation7 + $0x34] ss:$12 sps:$4 sm:$0xff]   ;;  %v7228_v46 = vld [vmem:[#allocation7 + $0x30] ss:$12 sps:$4 sm:$0xff]   ;;  %v7229_v47 = vld [vmem:[#allocation7 + $0x38] ss:$12 sps:$4 sm:$0xff]   ;;  %v499_v50 = vmul.f32 %v8153_v42, %v8153_v42 }
  0x89   : > { %v7232_v51 = vld [vmem:[#allocation7 + $0x18] ss:$12 sps:$4 sm:$0xff]   ;;  %v7233_v52 = vld [vmem:[#allocation7 + $0x20] ss:$12 sps:$4 sm:$0xff]   ;;  %v7237_v54 = vld [vmem:[#allocation7 + $0x8] ss:$12 sps:$4 sm:$0xff]  }
  0x8a   : > { %789 = vmatpush1.bf16.msra.mxu0 %v7216_v27  ;;  %6526 = vmatpush3.bf16.msra.mxu1 %v7217_v28  ;;  %v7234_v53 = vld [vmem:[#allocation7 + $0x4] ss:$12 sps:$4 sm:$0xff]   ;;  %v7236_v55 = vld [vmem:[#allocation7] ss:$12 sps:$4 sm:$0xff]   ;;  %s6028_s27 = sshll.u32 %s10006_s25, 4  ;;  %s7845_s9 = smov [#allocation13]   ;;  %s10059_s27 = int_to_ptr.vmem [resolvable:$true] %s6028_s27 }
  0x8b   : > { %790 = vmatprep.subr.bf16.mxu0 %v7218_v31  ;;  %6527 = vmatprep.subr.bf16.mxu1 %v7221_v34  ;;  %s7754_s30 = scalar_lea.vmem %s10059_s27, 2048  ;;  %s7758_s29 = sshll.u32 %s7845_s9, 4  ;;  %s7759_s29 = int_to_ptr.vmem [resolvable:$false] %s7758_s29 }
  0x8c   : > { %515 = vadd.xlane.f32.xlu1 %v492_v22  ;;  %513 = vadd.xlane.f32.xlu0 %v491_v23  ;;  %p7755_p12 = scmp.ne.s32.totalorder %s10059_s27, %s7754_s30  ;;  %p7761_p5 = scmp.lt.s32.totalorder %s10059_s27, %s7759_s29 }
  0x8e   : > { %791 = vmatpush1.bf16.msra.mxu0 %v7220_v33  ;;  %6528 = vmatpush3.bf16.msra.mxu1 %v7221_v34  ;;  %p7756_p9 = pnand %p7755_p12, %p10281_p7 }
  0x8f   : > { %792 = vmatprep.subr.bf16.mxu0 %v7222_v38  ;;  %6529 = vmatprep.subr.bf16.mxu1 %v7225_v39 }
  0x90   : > { %519 = vadd.xlane.f32.xlu1 %v494_v29  ;;  %517 = vadd.xlane.f32.xlu0 %v493_v30  ;;  %p7757_p13 = pneg %p7756_p9 }
  0x92   : > { %793 = vmatpush1.bf16.msra.mxu0 %v7224_v40  ;;  %6530 = vmatpush3.bf16.msra.mxu1 %v7225_v39 }
  0x93   : > { %794 = vmatprep.subr.bf16.mxu0 %v7226_v43  ;;  %6531 = vmatprep.subr.bf16.mxu1 %v7229_v47 }
  0x94   : > { %523 = vadd.xlane.f32.xlu1 %v496_v35  ;;  %521 = vadd.xlane.f32.xlu0 %v495_v36 }
  0x96   : > { %795 = vmatpush1.bf16.msra.mxu0 %v7228_v46  ;;  %6532 = vmatpush3.bf16.msra.mxu1 %v7229_v47 }
  0x97   : > { %796 = vmatprep.subr.bf16.mxu0 %v7230_v48  ;;  %6533 = vmatprep.subr.bf16.mxu1 %v7233_v52 }
  0x98   : > { %527 = vadd.xlane.f32.xlu1 %v498_v44  ;;  %525 = vadd.xlane.f32.xlu0 %v497_v45 }
  0x9a   : > { %797 = vmatpush1.bf16.msra.mxu0 %v7232_v51  ;;  %6534 = vmatpush3.bf16.msra.mxu1 %v7233_v52 }
  0x9b   : > { %798 = vmatprep.subr.bf16.mxu0 %v7234_v53  ;;  %6535 = vmatprep.subr.bf16.mxu1 %v7237_v54 }
  0x9c   : > { %531 = vadd.xlane.f32.xlu1 %v500_v49  ;;  %529 = vadd.xlane.f32.xlu0 %v499_v50 }
  0x9e   : > { %799 = vmatpush1.bf16.msra.mxu0 %v7236_v55  ;;  %6536 = vmatpush3.bf16.msra.mxu1 %v7237_v54 }
 0x109   : > { %v502_v57 = vpop.xlane.xlu0 %501  ;;  %v506_v58 = vpop.xlane.xlu1 %505 }
 0x10a   : > { %v534_v59 = vmax.f32 %v502_v57, 1e-10  ;;  %v536_v60 = vmax.f32 %v506_v58, 1e-10 }
 0x10c   : > { %7286 = vrsqrt.f32 %v534_v59 }
 0x10d   : > { %7288 = vrsqrt.f32 %v536_v60  ;;  %v504_v61 = vpop.xlane.xlu0 %503  ;;  %v508_v62 = vpop.xlane.xlu1 %507 }
 0x10e   : > { %v535_v63 = vmax.f32 %v504_v61, 1e-10  ;;  %v537_v3 = vmax.f32 %v508_v62, 1e-10 }
 0x110   : > { %7290 = vrsqrt.f32 %v535_v63 }
 0x111   : > { %7292 = vrsqrt.f32 %v537_v3  ;;  %v512_v4 = vpop.xlane.xlu1 %511  ;;  %v510_v6 = vpop.xlane.xlu0 %509 }
 0x112   : > { %v539_v7 = vmax.f32 %v512_v4, 1e-10  ;;  %v538_v12 = vmax.f32 %v510_v6, 1e-10 }
 0x114   : > { %7294 = vrsqrt.f32 %v539_v7 }
 0x115   : > { %7296 = vrsqrt.f32 %v538_v12  ;;  %v516_v13 = vpop.xlane.xlu1 %515  ;;  %v514_v14 = vpop.xlane.xlu0 %513 }
 0x116   : > { %v541_v15 = vmax.f32 %v516_v13, 1e-10  ;;  %v540_v16 = vmax.f32 %v514_v14, 1e-10 }
 0x118   : > { %7298 = vrsqrt.f32 %v541_v15 }
 0x119   : > { %v7287_v17 = vpop.eup %7286  ;;  %7300 = vrsqrt.f32 %v540_v16  ;;  %v520_v19 = vpop.xlane.xlu1 %519 }
 0x11a   : > { %v518_v22 = vpop.xlane.xlu0 %517  ;;  %v7289_v23 = vpop.eup %7288  ;;  %v543_v24 = vmax.f32 %v520_v19, 1e-10  ;;  %v567_v29 = vmul.f32 %v7287_v17, %v8164_v18 }
 0x11b   : > { %v542_v27 = vmax.f32 %v518_v22, 1e-10  ;;  %v569_v28 = vmul.f32 %v7289_v23, %v8164_v18 }
 0x11c   : > { %7302 = vrsqrt.f32 %v543_v24  ;;  %v583_v43 = vmul.f32 %v567_v29, %v8084_v0 }
 0x11d   : > { %v7291_v30 = vpop.eup %7290  ;;  %7304 = vrsqrt.f32 %v542_v27  ;;  %v524_v31 = vpop.xlane.xlu1 %523  ;;  %v585_v40 = vmul.f32 %v569_v28, %v8087_v1 }
 0x11e   : > { %v522_v33 = vpop.xlane.xlu0 %521  ;;  %v7293_v34 = vpop.eup %7292  ;;  %v568_v35 = vmul.f32 %v7291_v30, %v8164_v18  ;;  %v545_v36 = vmax.f32 %v524_v31, 1e-10 }
 0x11f   : > { %v544_v38 = vmax.f32 %v522_v33, 1e-10  ;;  %v570_v39 = vmul.f32 %v7293_v34, %v8164_v18 }
 0x120   : > { %v584_v44 = vmul.f32 %v568_v35, %v8090_v2  ;;  %7306 = vrsqrt.f32 %v545_v36 }
 0x121   : > { %v7295_v45 = vpop.eup %7294  ;;  %v586_v46 = vmul.f32 %v570_v39, %v8097_v5  ;;  %7308 = vrsqrt.f32 %v544_v38  ;;  %v528_v47 = vpop.xlane.xlu1 %527  ;;  %v639_v39 = vld [vmem:[%s10106_s2] sm:$0x7] }
 0x122   : > { %v526_v48 = vpop.xlane.xlu0 %525  ;;  %v7297_v49 = vpop.eup %7296  ;;  %v599_v50 = vpack.c.bf16 %v584_v44, %v583_v43  ;;  %v572_v51 = vmul.f32 %v7295_v45, %v8164_v18  ;;  %v547_v52 = vmax.f32 %v528_v47, 1e-10 }
 0x123   : > { %v546_v53 = vmax.f32 %v526_v48, 1e-10  ;;  %v600_v54 = vpack.c.bf16 %v586_v46, %v585_v40  ;;  %v571_v1 = vmul.f32 %v7297_v49, %v8164_v18 }
 0x124   : > { %817 = vmatmul.mubr.bf16.vlgmr.msra.gmra.mxu0 %v599_v50  ;;  %6537 = vmatprep.mubr.bf16.mxu1 %v599_v50  ;;  %v588_v0 = vmul.f32 %v572_v51, %v8104_v8  ;;  %7310 = vrsqrt.f32 %v547_v52 }
 0x125   : > { %v7299_v2 = vpop.eup %7298  ;;  %6538 = vmatmul.mubr.bf16.vlgmr.msra.gmra.mxu1 %v600_v54  ;;  %826 = vmatprep.mubr.bf16.mxu0 %v10124_v56  ;;  %v587_v5 = vmul.f32 %v571_v1, %v8107_v9  ;;  %7312 = vrsqrt.f32 %v546_v53  ;;  %v532_v55 = vpop.xlane.xlu1 %531 }
 0x126   : > { %v530_v57 = vpop.xlane.xlu0 %529  ;;  %v7301_v58 = vpop.eup %7300  ;;  %v574_v59 = vmul.f32 %v7299_v2, %v8164_v18  ;;  %v549_v60 = vmax.f32 %v532_v55, 1e-10 }
 0x127   : > { %v548_v61 = vmax.f32 %v530_v57, 1e-10  ;;  %v601_v62 = vpack.c.bf16 %v588_v0, %v587_v5  ;;  %v573_v63 = vmul.f32 %v7301_v58, %v8164_v18 }
 0x128   : > { %v590_v8 = vmul.f32 %v574_v59, %v8110_v10  ;;  %7314 = vrsqrt.f32 %v549_v60 }
 0x129   : > { %v7303_v3 = vpop.eup %7302  ;;  %6541 = vmatprep.mubr.bf16.mxu1 %v601_v62  ;;  %v589_v4 = vmul.f32 %v573_v63, %v8113_v11  ;;  %7316 = vrsqrt.f32 %v548_v61 }
 0x12a   : > { %v7305_v9 = vpop.eup %7304  ;;  %v576_v6 = vmul.f32 %v7303_v3, %v8164_v18 }
 0x12b   : > { %v602_v7 = vpack.c.bf16 %v590_v8, %v589_v4  ;;  %v575_v12 = vmul.f32 %v7305_v9, %v8164_v18 }
 0x12c   : > { %827 = vmatmul.mubr.bf16.gmra.mxu0 %v600_v54  ;;  %v592_v13 = vmul.f32 %v576_v6, %v8120_v20 }
 0x12d   : > { %v7307_v14 = vpop.eup %7306  ;;  %836 = vmatprep.mubr.bf16.mxu0 %v10124_v56  ;;  %6542 = vmatmul.mubr.bf16.gmra.mxu1 %v602_v7  ;;  %v591_v10 = vmul.f32 %v575_v12, %v8123_v21 }
 0x12e   : > { %v7309_v15 = vpop.eup %7308  ;;  %v578_v16 = vmul.f32 %v7307_v14, %v8164_v18 }
 0x12f   : > { %v603_v11 = vpack.c.bf16 %v592_v13, %v591_v10  ;;  %v577_v17 = vmul.f32 %v7309_v15, %v8164_v18 }
 0x130   : > { %v594_v19 = vmul.f32 %v578_v16, %v8130_v25 }
 0x131   : > { %v7311_v22 = vpop.eup %7310  ;;  %6545 = vmatprep.mubr.bf16.mxu1 %v603_v11  ;;  %v593_v23 = vmul.f32 %v577_v17, %v8133_v26 }
 0x132   : > { %v7313_v24 = vpop.eup %7312  ;;  %v580_v20 = vmul.f32 %v7311_v22, %v8164_v18 }
 0x133   : > { %v604_v27 = vpack.c.bf16 %v594_v19, %v593_v23  ;;  %v579_v28 = vmul.f32 %v7313_v24, %v8164_v18 }
 0x134   : > { %837 = vmatmul.mubr.bf16.gmra.mxu0 %v601_v62  ;;  %v596_v21 = vmul.f32 %v580_v20, %v8140_v32  ;;  %v10126_v32 = vmov 0.0  }
 0x135   : > { %v7315_v29 = vpop.eup %7314  ;;  %846 = vmatprep.mubr.bf16.mxu0 %v10124_v56  ;;  %v595_v30 = vmul.f32 %v579_v28, %v8147_v37  ;;  %6546 = vmatmul.mubr.bf16.gmra.mxu1 %v604_v27  ;;  %v641_v37 = vlaneseq }
 0x136   : > { %v7317_v25 = vpop.eup %7316  ;;  %v582_v31 = vmul.f32 %v7315_v29, %v8164_v18  ;;  %6553 = vmatprep.subr.bf16.mxu1 %v10126_v32  ;;  %6577 = vmatprep.subr.bf16.mxu0 %v10126_v32 }
 0x137   : > { %v605_v33 = vpack.c.bf16 %v596_v21, %v595_v30  ;;  %v581_v26 = vmul.f32 %v7317_v25, %v8164_v18 }
 0x138   : > { %v598_v34 = vmul.f32 %v582_v31, %v8150_v41  ;;  %v8211_v41 = vshrl.u32 %v641_v37, 7 }
 0x139   : > { %v597_v35 = vmul.f32 %v581_v26, %v8153_v42  ;;  %6549 = vmatprep.mubr.bf16.mxu1 %v605_v33 }
 0x13a   : > { %10167 = vst [vmem:[#allocation18_spill] sm:$0xff] %v8211_v41  ;;  %v10123_v42 = vsub.s32 1, %v8211_v41  ;;  %v651_v45 = vsub.s32 2, %v8211_v41  ;;  %v10122_v49 = vsub.s32 0, %v8211_v41 }
 0x13b   : > { %v606_v36 = vpack.c.bf16 %v598_v34, %v597_v35 }
 0x13c   : > { %847 = vmatmul.mubr.bf16.gmra.mxu0 %v602_v7  ;;  %v8221_v43 = vrot.slane %v639_v39, %v10123_v42  ;;  %v8233_v53 = vrot.slane %v639_v39, %v651_v45  ;;  %v8240_v55 = vrot.slane %v639_v39, %v10122_v49 }
 0x13d   : > { %856 = vmatprep.mubr.bf16.mxu0 %v10124_v56  ;;  %6550 = vmatmul.mubr.bf16.gmra.mxu1 %v606_v36 }
 0x13e   : > { %6555 = vmatprep.mubr.msk.bf16.mxu1 %vm7841_vm0, %v10126_v32 }
 0x144   : > { %857 = vmatmul.mubr.bf16.gmra.mxu0 %v603_v11 }
 0x145   : > { %866 = vmatprep.mubr.bf16.mxu0 %v10124_v56 }
 0x14c   : > { %867 = vmatmul.mubr.bf16.gmra.mxu0 %v604_v27 }
 0x14d   : > { %876 = vmatprep.mubr.bf16.mxu0 %v10124_v56 }
 0x154   : > { %877 = vmatmul.mubr.bf16.gmra.mxu0 %v605_v33 }
 0x155   : > { %886 = vmatprep.mubr.bf16.mxu0 %v10124_v56 }
 0x15c   : > { %887 = vmatmul.mubr.bf16.gmra.mxu0 %v606_v36 }
 0x15d   : > { %6579 = vmatprep.mubr.msk.bf16.mxu0 %vm7841_vm0, %v10126_v32 }
 0x1e4   : > { %v818_v18 = vpop.f32.mrf.mxu0 }
 0x1e5   : > { %v8214_v38 = vpop.f32.mrf.mxu1  ;;  %v819_v3 = vadd.f32 %v818_v18, %v8240_v55 }
 0x1e6   : > { %v820_v40 = vpop.f32.mrf.mxu0 }
 0x1e7   : > { %v8223_v44 = vpop.f32.mrf.mxu1  ;;  %v821_v50 = vadd.f32 %v820_v40, %v8221_v43 }
 0x1e8   : > { %v822_v46 = vpop.f32.mrf.mxu0 }
 0x1e9   : > { %v8226_v47 = vpop.f32.mrf.mxu1  ;;  %v823_v61 = vadd.f32 %v822_v46, %v8240_v55 }
 0x1ea   : > { %v824_v48 = vpop.f32.mrf.mxu0 }
 0x1eb   : > { %v825_v51 = vadd.f32 %v824_v48, %v8221_v43  ;;  %v8231_v52 = vpop.f32.mrf.mxu1  ;;  %v8254_v14 = vpack.c.bf16 %v823_v61, %v819_v3 }
 0x1ec   : > { %v828_v54 = vpop.f32.mrf.mxu0 }
 0x1ed   : > { %v8235_v1 = vpack.c.bf16 %v825_v51, %v821_v50  ;;  %v6543_v0 = vpop.f32.mrf.mxu1  ;;  %v829_v29 = vadd.f32 %v828_v54, %v8240_v55 }
 0x1ee   : > { %v830_v2 = vpop.f32.mrf.mxu0  ;;  %v956_v5 = vadd.f32 %v6543_v0, %v8233_v53 }
 0x1ef   : > { %v1023_v57 = vsel %vm1018_vm1, %v8235_v1, 0  ;;  %v947_v58 = vpop.f32.mrf.mxu1  ;;  %v831_v4 = vadd.f32 %v830_v2, %v8221_v43 }
 0x1f0   : > { %v832_v59 = vpop.f32.mrf.mxu0  ;;  %6554 = vmatpush3.bf16.xpose.msra.mxu1 %v1023_v57  ;;  %v948_v60 = vadd.f32 %v947_v58, %v8233_v53 }
 0x1f1   : > { %6559 = vmatprep.subr.bf16.mxu1 %v10126_v32  ;;  %v6544_v62 = vpop.f32.mrf.mxu1  ;;  %v833_v20 = vadd.f32 %v832_v59, %v8240_v55 }
 0x1f2   : > { %v834_v63 = vpop.f32.mrf.mxu0  ;;  %v959_v8 = vadd.f32 %v6544_v62, %v8233_v53 }
 0x1f3   : > { %v835_v9 = vadd.f32 %v834_v63, %v8221_v43  ;;  %v950_v6 = vpop.f32.mrf.mxu1  ;;  %v8277_v35 = vpack.c.bf16 %v833_v20, %v829_v29 }
 0x1f4   : > { %v838_v7 = vpop.f32.mrf.mxu0  ;;  %v8251_v12 = vpack.c.bf16 %v959_v8, %v956_v5  ;;  %v951_v13 = vadd.f32 %v950_v6, %v8233_v53 }
 0x1f5   : > { %v8256_v10 = vpack.c.bf16 %v835_v9, %v831_v4  ;;  %v6547_v15 = vpop.f32.mrf.mxu1  ;;  %v839_v5 = vadd.f32 %v838_v7, %v8240_v55 }
 0x1f6   : > { %v840_v16 = vpop.f32.mrf.mxu0  ;;  %v8258_v11 = vpack.c.bf16 %v951_v13, %v948_v60  ;;  %v972_v17 = vadd.f32 %v6547_v15, %v8233_v53 }
 0x1f7   : > { %6556 = vmatmul.mubr.msk.bf16.vlgmr.msra.gmra.mxu1 %vm1018_vm1, %v8254_v14  ;;  %v1070_v19 = vsel %vm1018_vm1, %v8256_v10, 0  ;;  %v963_v22 = vpop.f32.mrf.mxu1  ;;  %v841_v30 = vadd.f32 %v840_v16, %v8221_v43 }
 0x1f8   : > { %v842_v23 = vpop.f32.mrf.mxu0  ;;  %6560 = vmatpush3.bf16.xpose.msra.mxu1 %v1070_v19  ;;  %6561 = vmatprep.mubr.msk.bf16.mxu1 %vm7841_vm0, %v10126_v32  ;;  %v964_v24 = vadd.f32 %v963_v22, %v8233_v53 }
 0x1f9   : > { %6565 = vmatprep.subr.bf16.mxu1 %v10126_v32  ;;  %v6548_v27 = vpop.f32.mrf.mxu1  ;;  %v843_v51 = vadd.f32 %v842_v23, %v8240_v55 }
 0x1fa   : > { %v844_v28 = vpop.f32.mrf.mxu0  ;;  %v975_v21 = vadd.f32 %v6548_v27, %v8233_v53 }
 0x1fb   : > { %v845_v25 = vadd.f32 %v844_v28, %v8221_v43  ;;  %v966_v31 = vpop.f32.mrf.mxu1  ;;  %v8300_v63 = vpack.c.bf16 %v843_v51, %v839_v5 }
 0x1fc   : > { %v848_v33 = vpop.f32.mrf.mxu0  ;;  %v8274_v26 = vpack.c.bf16 %v975_v21, %v972_v17  ;;  %v967_v34 = vadd.f32 %v966_v31, %v8233_v53 }
 0x1fd   : > { %v8279_v36 = vpack.c.bf16 %v845_v25, %v841_v30  ;;  %v6551_v37 = vpop.f32.mrf.mxu1  ;;  %v849_v15 = vadd.f32 %v848_v33, %v8240_v55 }
 0x1fe   : > { %v850_v18 = vpop.f32.mrf.mxu0  ;;  %v8281_v39 = vpack.c.bf16 %v967_v34, %v964_v24  ;;  %v988_v40 = vadd.f32 %v6551_v37, %v8233_v53 }
 0x1ff   : > { %6562 = vmatmul.mubr.msk.bf16.vlgmr.msra.gmra.mxu1 %vm1018_vm1, %v8277_v35  ;;  %v1117_v45 = vsel %vm1018_vm1, %v8279_v36, 0  ;;  %v979_v46 = vpop.f32.mrf.mxu1  ;;  %v851_v57 = vadd.f32 %v850_v18, %v8221_v43 }
 0x200   : > { %v852_v48 = vpop.f32.mrf.mxu0  ;;  %6566 = vmatpush3.bf16.xpose.msra.mxu1 %v1117_v45  ;;  %6567 = vmatprep.mubr.msk.bf16.mxu1 %vm7841_vm0, %v10126_v32  ;;  %v980_v50 = vadd.f32 %v979_v46, %v8233_v53 }
 0x201   : > { %6571 = vmatprep.subr.bf16.mxu1 %v10126_v32  ;;  %v6552_v54 = vpop.f32.mrf.mxu1  ;;  %v853_v7 = vadd.f32 %v852_v48, %v8240_v55 }
 0x202   : > { %v854_v0 = vpop.f32.mrf.mxu0  ;;  %v991_v2 = vadd.f32 %v6552_v54, %v8233_v53 }
 0x203   : > { %v855_v58 = vadd.f32 %v854_v0, %v8221_v43  ;;  %v982_v59 = vpop.f32.mrf.mxu1  ;;  %v8317_v22 = vpack.c.bf16 %v853_v7, %v849_v15  ;;  %v932_v7 = vadd.f32 %v8223_v44, %v8233_v53  ;;  %v943_v44 = vadd.f32 %v8226_v47, %v8233_v53 }
 0x204   : > { %v858_v60 = vpop.f32.mrf.mxu0  ;;  %v8297_v61 = vpack.c.bf16 %v991_v2, %v988_v40  ;;  %v983_v62 = vadd.f32 %v982_v59, %v8233_v53 }
 0x205   : > { %v8302_v8 = vpack.c.bf16 %v855_v58, %v851_v57  ;;  %v859_v29 = vadd.f32 %v858_v60, %v8240_v55 }
 0x206   : > { %v860_v3 = vpop.f32.mrf.mxu0  ;;  %v8304_v4 = vpack.c.bf16 %v983_v62, %v980_v50  ;;  %v935_v62 = vadd.f32 %v8231_v52, %v8233_v53 }
 0x207   : > { %6568 = vmatmul.mubr.msk.bf16.vlgmr.msra.gmra.mxu1 %vm1018_vm1, %v8300_v63  ;;  %v1164_v9 = vsel %vm1018_vm1, %v8302_v8, 0  ;;  %v861_v16 = vadd.f32 %v860_v3, %v8221_v43 }
 0x208   : > { %v862_v6 = vpop.f32.mrf.mxu0  ;;  %6572 = vmatpush3.bf16.xpose.msra.mxu1 %v1164_v9  ;;  %6573 = vmatprep.mubr.msk.bf16.mxu1 %vm7841_vm0, %v10126_v32 }
 0x209   : > { %6583 = vmatprep.subr.bf16.mxu1 %v10126_v32  ;;  %v863_v28 = vadd.f32 %v862_v6, %v8240_v55 }
 0x20a   : > { %v864_v13 = vpop.f32.mrf.mxu0 }
 0x20b   : > { %v865_v17 = vadd.f32 %v864_v13, %v8221_v43  ;;  %v8332_v33 = vpack.c.bf16 %v863_v28, %v859_v29 }
 0x20c   : > { %v868_v19 = vpop.f32.mrf.mxu0 }
 0x20d   : > { %v8319_v23 = vpack.c.bf16 %v865_v17, %v861_v16  ;;  %v869_v48 = vadd.f32 %v868_v19, %v8240_v55  ;;  %v8370_v16 = vpack.c.bf16 %v935_v62, %v932_v7 }
 0x20e   : > { %v870_v24 = vpop.f32.mrf.mxu0 }
 0x20f   : > { %6574 = vmatmul.mubr.msk.bf16.vlgmr.msra.gmra.mxu1 %vm1018_vm1, %v8317_v22  ;;  %v1211_v20 = vsel %vm1018_vm1, %v8319_v23, 0  ;;  %v871_v30 = vadd.f32 %v870_v24, %v8221_v43 }
 0x210   : > { %v872_v27 = vpop.f32.mrf.mxu0  ;;  %6578 = vmatpush3.bf16.xpose.msra.mxu0 %v1211_v20  ;;  %6585 = vmatprep.mubr.msk.bf16.mxu1 %vm7841_vm0, %v10126_v32 }
 0x211   : > { %6589 = vmatprep.subr.bf16.mxu0 %v10126_v32  ;;  %v873_v45 = vadd.f32 %v872_v27, %v8240_v55 }
 0x212   : > { %v874_v21 = vpop.f32.mrf.mxu0 }
 0x213   : > { %v875_v25 = vadd.f32 %v874_v21, %v8221_v43  ;;  %v8347_v0 = vpack.c.bf16 %v873_v45, %v869_v48 }
 0x214   : > { %v878_v31 = vpop.f32.mrf.mxu0 }
 0x215   : > { %v8334_v34 = vpack.c.bf16 %v875_v25, %v871_v30  ;;  %v879_v9 = vadd.f32 %v878_v31, %v8240_v55 }
 0x216   : > { %v880_v37 = vpop.f32.mrf.mxu0 }
 0x217   : > { %6580 = vmatmul.mubr.msk.bf16.vlgmr.msra.gmra.mxu0 %vm1018_vm1, %v8332_v33  ;;  %v1258_v18 = vsel %vm1018_vm1, %v8334_v34, 0  ;;  %v881_v50 = vadd.f32 %v880_v37, %v8221_v43 }
 0x218   : > { %v882_v40 = vpop.f32.mrf.mxu0  ;;  %6584 = vmatpush3.bf16.xpose.msra.mxu1 %v1258_v18  ;;  %6591 = vmatprep.mubr.msk.bf16.mxu0 %vm7841_vm0, %v10126_v32 }
 0x219   : > { %6595 = vmatprep.subr.bf16.mxu1 %v10126_v32  ;;  %v883_v59 = vadd.f32 %v882_v40, %v8240_v55 }
 0x21a   : > { %v884_v46 = vpop.f32.mrf.mxu0 }
 0x21b   : > { %v885_v51 = vadd.f32 %v884_v46, %v8221_v43  ;;  %v8366_v13 = vpack.c.bf16 %v883_v59, %v879_v9 }
 0x21c   : > { %v888_v54 = vpop.f32.mrf.mxu0 }
 0x21d   : > { %v8349_v2 = vpack.c.bf16 %v885_v51, %v881_v50  ;;  %v889_v17 = vadd.f32 %v888_v54, %v8240_v55 }
 0x21e   : > { %v890_v5 = vpop.f32.mrf.mxu0 }
 0x21f   : > { %6586 = vmatmul.mubr.msk.bf16.vlgmr.msra.gmra.mxu1 %vm1018_vm1, %v8347_v0  ;;  %v1305_v57 = vsel %vm1018_vm1, %v8349_v2, 0  ;;  %v891_v60 = vadd.f32 %v890_v5, %v8221_v43 }
 0x220   : > { %v892_v58 = vpop.f32.mrf.mxu0  ;;  %6590 = vmatpush3.bf16.xpose.msra.mxu0 %v1305_v57  ;;  %6597 = vmatprep.mubr.msk.bf16.mxu1 %vm7841_vm0, %v10126_v32 }
 0x221   : > { %6601 = vmatprep.subr.bf16.mxu0 %v10126_v32  ;;  %v893_v19 = vadd.f32 %v892_v58, %v8240_v55 }
 0x222   : > { %v894_v3 = vpop.f32.mrf.mxu0 }
 0x223   : > { %v895_v6 = vadd.f32 %v894_v3, %v8221_v43  ;;  %v940_v43 = vadd.f32 %v8214_v38, %v8233_v53  ;;  %v8387_v55 = vpack.c.bf16 %v893_v19, %v889_v17 }
 0x225   : > { %v8368_v15 = vpack.c.bf16 %v895_v6, %v891_v60  ;;  %v8389_v24 = vpack.c.bf16 %v943_v44, %v940_v43 }
 0x227   : > { %6592 = vmatmul.mubr.msk.bf16.vlgmr.msra.gmra.mxu0 %vm1018_vm1, %v8366_v13  ;;  %v1352_v52 = vsel %vm1018_vm1, %v8368_v15, 0 }
 0x228   : > { %6596 = vmatpush3.bf16.xpose.msra.mxu1 %v1352_v52  ;;  %6602 = vmatpush3.bf16.msra.mxu0 %v8370_v16 }
 0x229   : > { %6607 = vmatprep.subr.bf16.mxu1 %v10126_v32  ;;  %6603 = vmatprep.mubr.msk.bf16.mxu0 %vm7841_vm0, %v10126_v32 }
 0x22a   : > { %6613 = vmatprep.subr.bf16.mxu0 %v10126_v32 }
 0x22f   : > { %6598 = vmatmul.mubr.msk.bf16.vlgmr.msra.gmra.mxu1 %vm1018_vm1, %v8387_v55 }
 0x230   : > { %6608 = vmatpush3.bf16.msra.mxu1 %v8389_v24  ;;  %6609 = vmatprep.mubr.msk.bf16.mxu1 %vm7841_vm0, %v10126_v32 }
 0x231   : > { %6619 = vmatprep.subr.bf16.mxu1 %v10126_v32 }
 0x2b7   : > { %v8397_v38 = vpop.f32.mrf.mxu1 }
 0x2b8   : > { %v1396_v47 = vsel %vm1395_vm2, %v8397_v38, -inf }
 0x2b9   : > { %1397 = vmax.xlane.f32.xlu0 %v1396_v47  ;;  %v6557_v53 = vpop.f32.mrf.mxu1 }
 0x2bb   : > { %v8401_v20 = vpop.f32.mrf.mxu1 }
 0x2bc   : > { %v1399_v27 = vsel %vm1395_vm2, %v8401_v20, -inf }
 0x2bd   : > { %1400 = vmax.xlane.f32.xlu1 %v1399_v27  ;;  %v6558_v28 = vpop.f32.mrf.mxu1 }
 0x2bf   : > { %v8405_v21 = vpop.f32.mrf.mxu1 }
 0x2c0   : > { %v1402_v29 = vsel %vm1395_vm2, %v8405_v21, -inf }
 0x2c1   : > { %1403 = vmax.xlane.f32.xlu0 %v1402_v29  ;;  %v6563_v30 = vpop.f32.mrf.mxu1 }
 0x2c3   : > { %v8409_v25 = vpop.f32.mrf.mxu1 }
 0x2c4   : > { %v1405_v31 = vsel %vm1395_vm2, %v8409_v25, -inf }
 0x2c5   : > { %1406 = vmax.xlane.f32.xlu1 %v1405_v31  ;;  %v6564_v37 = vpop.f32.mrf.mxu1 }
 0x2c7   : > { %v8413_v18 = vpop.f32.mrf.mxu1 }
 0x2c8   : > { %v1408_v40 = vsel %vm1395_vm2, %v8413_v18, -inf }
 0x2c9   : > { %1409 = vmax.xlane.f32.xlu0 %v1408_v40  ;;  %v6569_v45 = vpop.f32.mrf.mxu1 }
 0x2cb   : > { %v8417_v46 = vpop.f32.mrf.mxu1 }
 0x2cc   : > { %v1411_v48 = vsel %vm1395_vm2, %v8417_v46, -inf }
 0x2cd   : > { %1412 = vmax.xlane.f32.xlu1 %v1411_v48  ;;  %v6570_v50 = vpop.f32.mrf.mxu1 }
 0x2cf   : > { %v8421_v51 = vpop.f32.mrf.mxu1 }
 0x2d0   : > { %v1414_v54 = vsel %vm1395_vm2, %v8421_v51, -inf }
 0x2d1   : > { %1415 = vmax.xlane.f32.xlu0 %v1414_v54  ;;  %v6575_v5 = vpop.f32.mrf.mxu1 }
 0x2d3   : > { %v8425_v57 = vpop.f32.mrf.mxu1 }
 0x2d4   : > { %v1417_v58 = vsel %vm1395_vm2, %v8425_v57, -inf }
 0x2d5   : > { %1418 = vmax.xlane.f32.xlu1 %v1417_v58  ;;  %v6576_v59 = vpop.f32.mrf.mxu1 }
 0x2d7   : > { %v8429_v60 = vpop.f32.mrf.mxu0 }
 0x2d8   : > { %v1420_v62 = vsel %vm1395_vm2, %v8429_v60, -inf }
 0x2d9   : > { %1421 = vmax.xlane.f32.xlu0 %v1420_v62  ;;  %v6581_v3 = vpop.f32.mrf.mxu0 }
 0x2db   : > { %v8433_v9 = vpop.f32.mrf.mxu0 }
 0x2dc   : > { %v1423_v6 = vsel %vm1395_vm2, %v8433_v9, -inf }
 0x2dd   : > { %1424 = vmax.xlane.f32.xlu1 %v1423_v6  ;;  %v6582_v7 = vpop.f32.mrf.mxu0 }
 0x2df   : > { %v8437_v17 = vpop.f32.mrf.mxu1 }
 0x2e0   : > { %v1426_v19 = vsel %vm1395_vm2, %v8437_v17, -inf }
 0x2e1   : > { %v6587_v52 = vpop.f32.mrf.mxu1  ;;  %1427 = vmax.xlane.f32.xlu0 %v1426_v19 }
 0x2e3   : > { %v8441_v43 = vpop.f32.mrf.mxu1 }
 0x2e4   : > { %v1429_v44 = vsel %vm1395_vm2, %v8441_v43, -inf }
 0x2e5   : > { %1430 = vmax.xlane.f32.xlu1 %v1429_v44  ;;  %v6588_v47 = vpop.f32.mrf.mxu1 }
 0x2e7   : > { %v8445_v53 = vpop.f32.mrf.mxu0 }
 0x2e8   : > { %v1432_v27 = vsel %vm1395_vm2, %v8445_v53, -inf }
 0x2e9   : > { %1433 = vmax.xlane.f32.xlu0 %v1432_v27  ;;  %v6593_v28 = vpop.f32.mrf.mxu0 }
 0x2eb   : > { %v8449_v29 = vpop.f32.mrf.mxu0 }
 0x2ec   : > { %v1435_v30 = vsel %vm1395_vm2, %v8449_v29, -inf }
 0x2ed   : > { %1436 = vmax.xlane.f32.xlu1 %v1435_v30  ;;  %v6594_v31 = vpop.f32.mrf.mxu0 }
 0x2ef   : > { %v8453_v37 = vpop.f32.mrf.mxu1 }
 0x2f0   : > { %v1438_v40 = vsel %vm1395_vm2, %v8453_v37, -inf }
 0x2f1   : > { %1439 = vmax.xlane.f32.xlu0 %v1438_v40  ;;  %v6599_v45 = vpop.f32.mrf.mxu1 }
 0x2f3   : > { %v8457_v48 = vpop.f32.mrf.mxu1 }
 0x2f4   : > { %v1441_v54 = vsel %vm1395_vm2, %v8457_v48, -inf }
 0x2f5   : > { %v6600_v50 = vpop.f32.mrf.mxu1 }
 0x2fe   : > { %2005 = vrot.lane.b32.xlu1 %v8256_v10, %s7842_s15 }
 0x302   : > { %1949 = vrot.lane.b32.xlu1 %v8254_v14, %s7842_s15 }
 0x307   : > { %1952 = vrot.lane.b32.xlu0 %v8235_v1, %s7842_s15 }
 0x30b   : > { %2002 = vrot.lane.b32.xlu0 %v8277_v35, %s7842_s15 }
 0x30f   : > { %2055 = vrot.lane.b32.xlu0 %v8300_v63, %s7842_s15 }
 0x313   : > { %2108 = vrot.lane.b32.xlu0 %v8317_v22, %s7842_s15 }
 0x317   : > { %2161 = vrot.lane.b32.xlu0 %v8332_v33, %s7842_s15 }
 0x31b   : > { %2214 = vrot.lane.b32.xlu0 %v8347_v0, %s7842_s15 }
 0x31f   : > { %2267 = vrot.lane.b32.xlu0 %v8366_v13, %s7842_s15 }
 0x323   : > { %2557 = vrot.lane.b32.xlu0 %v8370_v16, %s7842_s15 }
 0x326   : > { %1442 = vmax.xlane.f32.xlu1 %v1441_v54 }
 0x327   : > { %2749 = vrot.lane.b32.xlu0 %v8281_v39, %s7842_s15 }
 0x337   : > { %2058 = vrot.lane.b32.xlu1 %v8279_v36, %s7842_s15 }
 0x33b   : > { %2111 = vrot.lane.b32.xlu1 %v8302_v8, %s7842_s15 }
 0x33f   : > { %2164 = vrot.lane.b32.xlu1 %v8319_v23, %s7842_s15 }
 0x342   : > { %v1398_v5 = vpop.xlane.xlu0 %1397 }
 0x343   : > { %v1444_v58 = vsub.f32 %v8397_v38, %v1398_v5  ;;  %2217 = vrot.lane.b32.xlu1 %v8334_v34, %s7842_s15 }
 0x345   : > { %v1460_v59 = vmul.f32 1.442695, %v1444_v58 }
 0x346   : > { %v1401_v62 = vpop.xlane.xlu1 %1400 }
 0x347   : > { %v1445_v3 = vsub.f32 %v8401_v20, %v1401_v62  ;;  %2270 = vrot.lane.b32.xlu1 %v8349_v2, %s7842_s15  ;;  %7318 = vpow2.f32 %v1460_v59 }
 0x349   : > { %v1462_v6 = vmul.f32 1.442695, %v1445_v3 }
 0x34a   : > { %v1404_v7 = vpop.xlane.xlu0 %1403 }
 0x34b   : > { %7320 = vpow2.f32 %v1462_v6  ;;  %v1446_v19 = vsub.f32 %v8405_v21, %v1404_v7  ;;  %2323 = vrot.lane.b32.xlu1 %v8368_v15, %s7842_s15 }
 0x34d   : > { %v1464_v38 = vmul.f32 1.442695, %v1446_v19 }
 0x34e   : > { %v1407_v52 = vpop.xlane.xlu1 %1406 }
 0x34f   : > { %v1447_v44 = vsub.f32 %v8409_v25, %v1407_v52  ;;  %2320 = vrot.lane.b32.xlu1 %v8387_v55, %s7842_s15  ;;  %7322 = vpow2.f32 %v1464_v38 }
 0x351   : > { %v1466_v20 = vmul.f32 1.442695, %v1447_v44 }
 0x352   : > { %v1410_v47 = vpop.xlane.xlu0 %1409 }
 0x353   : > { %7324 = vpow2.f32 %v1466_v20  ;;  %v1448_v27 = vsub.f32 %v8413_v18, %v1410_v47  ;;  %2605 = vrot.lane.b32.xlu1 %v8389_v24, %s7842_s15 }
 0x354   : > { %v8504_v30 = vpop.eup %7318 }
 0x355   : > { %v1468_v21 = vmul.f32 1.442695, %v1448_v27  ;;  %10168 = vst [vmem:[#allocation19_spill] sm:$0xff] %v8504_v30 }
 0x356   : > { %v1413_v28 = vpop.xlane.xlu1 %1412 }
 0x357   : > { %v1449_v31 = vsub.f32 %v8417_v46, %v1413_v28  ;;  %2653 = vrot.lane.b32.xlu1 %v8258_v11, %s7842_s15  ;;  %7326 = vpow2.f32 %v1468_v21 }
 0x358   : > { %v8509_v25 = vpop.eup %7320 }
 0x359   : > { %10169 = vst [vmem:[#allocation20_spill] sm:$0xff] %v8509_v25  ;;  %v1470_v40 = vmul.f32 1.442695, %v1449_v31  ;;  %v1572_v45 = vpack.c.bf16 %v8509_v25, %v8504_v30 }
 0x35a   : > { %v1416_v18 = vpop.xlane.xlu0 %1415 }
 0x35b   : > { %7328 = vpow2.f32 %v1470_v40  ;;  %v1450_v50 = vsub.f32 %v8421_v51, %v1416_v18  ;;  %6604 = vmatmul.mubr.msk.bf16.vlgmr.msra.gmra.mxu0 %vm1395_vm2, %v1572_v45  ;;  %2701 = vrot.lane.b32.xlu1 %v8251_v12, %s7842_s15 }
 0x35c   : > { %6614 = vmatpush3.bf16.msra.mxu0 %v8258_v11  ;;  %6615 = vmatprep.mubr.msk.bf16.mxu0 %vm7841_vm0, %v10126_v32  ;;  %v8521_v5 = vpop.eup %7322 }
 0x35d   : > { %6625 = vmatprep.subr.bf16.mxu0 %v10126_v32  ;;  %v1472_v46 = vmul.f32 1.442695, %v1450_v50  ;;  %10170 = vst [vmem:[#allocation21_spill] sm:$0xff] %v8521_v5 }
 0x35e   : > { %v1419_v54 = vpop.xlane.xlu1 %1418 }
 0x35f   : > { %v1451_v58 = vsub.f32 %v8425_v57, %v1419_v54  ;;  %2797 = vrot.lane.b32.xlu1 %v8274_v26, %s7842_s15  ;;  %7330 = vpow2.f32 %v1472_v46 }
 0x360   : > { %v8526_v51 = vpop.eup %7324 }
 0x361   : > { %10171 = vst [vmem:[#allocation22_spill] sm:$0xff] %v8526_v51  ;;  %v1474_v59 = vmul.f32 1.442695, %v1451_v58  ;;  %v1573_v62 = vpack.c.bf16 %v8526_v51, %v8521_v5 }
 0x362   : > { %v1422_v3 = vpop.xlane.xlu0 %1421 }
 0x363   : > { %7332 = vpow2.f32 %v1474_v59  ;;  %v1452_v6 = vsub.f32 %v8429_v60, %v1422_v3  ;;  %6610 = vmatmul.mubr.msk.bf16.vlgmr.msra.gmra.mxu1 %vm1395_vm2, %v1573_v62 }
 0x364   : > { %6620 = vmatpush3.bf16.msra.mxu1 %v8251_v12  ;;  %6621 = vmatprep.mubr.msk.bf16.mxu1 %vm7841_vm0, %v10126_v32  ;;  %v8536_v19 = vpop.eup %7326 }
 0x365   : > { %6631 = vmatprep.subr.bf16.mxu1 %v10126_v32  ;;  %v1476_v57 = vmul.f32 1.442695, %v1452_v6  ;;  %10172 = vst [vmem:[#allocation23_spill] sm:$0xff] %v8536_v19 }
 0x366   : > { %v1425_v7 = vpop.xlane.xlu1 %1424 }
 0x367   : > { %v1453_v38 = vsub.f32 %v8433_v9, %v1425_v7  ;;  %7334 = vpow2.f32 %v1476_v57 }
 0x368   : > { %v8539_v52 = vpop.eup %7328 }
 0x369   : > { %10173 = vst [vmem:[#allocation24_spill] sm:$0xff] %v8539_v52  ;;  %v1478_v44 = vmul.f32 1.442695, %v1453_v38  ;;  %v1574_v60 = vpack.c.bf16 %v8539_v52, %v8536_v19 }
 0x36a   : > { %v1428_v20 = vpop.xlane.xlu0 %1427 }
 0x36b   : > { %7336 = vpow2.f32 %v1478_v44  ;;  %v1454_v47 = vsub.f32 %v8437_v17, %v1428_v20  ;;  %6616 = vmatmul.mubr.msk.bf16.vlgmr.msra.gmra.mxu0 %vm1395_vm2, %v1574_v60 }
 0x36c   : > { %6626 = vmatpush3.bf16.msra.mxu0 %v8281_v39  ;;  %6627 = vmatprep.mubr.msk.bf16.mxu0 %vm7841_vm0, %v10126_v32  ;;  %v8549_v21 = vpop.eup %7330 }
 0x36d   : > { %6637 = vmatprep.subr.bf16.mxu0 %v10126_v32  ;;  %v1480_v9 = vmul.f32 1.442695, %v1454_v47  ;;  %10174 = vst [vmem:[#allocation25_spill] sm:$0xff] %v8549_v21 }
 0x36e   : > { %v1431_v27 = vpop.xlane.xlu1 %1430 }
 0x36f   : > { %v1455_v28 = vsub.f32 %v8441_v43, %v1431_v27  ;;  %7338 = vpow2.f32 %v1480_v9 }
 0x370   : > { %v8552_v31 = vpop.eup %7332 }
 0x371   : > { %10175 = vst [vmem:[#allocation26_spill] sm:$0xff] %v8552_v31  ;;  %v1482_v40 = vmul.f32 1.442695, %v1455_v28  ;;  %v1575_v17 = vpack.c.bf16 %v8552_v31, %v8549_v21 }
 0x372   : > { %v1434_v45 = vpop.xlane.xlu0 %1433 }
 0x373   : > { %7340 = vpow2.f32 %v1482_v40  ;;  %v1456_v18 = vsub.f32 %v8445_v53, %v1434_v45  ;;  %6622 = vmatmul.mubr.msk.bf16.vlgmr.msra.gmra.mxu1 %vm1395_vm2, %v1575_v17 }
 0x374   : > { %6632 = vmatpush3.bf16.msra.mxu1 %v8274_v26  ;;  %6633 = vmatprep.mubr.msk.bf16.mxu1 %vm7841_vm0, %v10126_v32  ;;  %v8562_v46 = vpop.eup %7334 }
 0x375   : > { %6643 = vmatprep.subr.bf16.mxu1 %v10126_v32  ;;  %v1484_v43 = vmul.f32 1.442695, %v1456_v18  ;;  %10176 = vst [vmem:[#allocation27_spill] sm:$0xff] %v8562_v46 }
 0x376   : > { %v1437_v50 = vpop.xlane.xlu1 %1436 }
 0x377   : > { %v1457_v54 = vsub.f32 %v8449_v29, %v1437_v50  ;;  %7342 = vpow2.f32 %v1484_v43 }
 0x378   : > { %v8565_v58 = vpop.eup %7336 }
 0x379   : > { %10177 = vst [vmem:[#allocation28_spill] sm:$0xff] %v8565_v58  ;;  %v1486_v59 = vmul.f32 1.442695, %v1457_v54  ;;  %v1576_v53 = vpack.c.bf16 %v8565_v58, %v8562_v46 }
 0x37a   : > { %v1440_v6 = vpop.xlane.xlu0 %1439  ;;  %v2006_v20 = vpop.permute.xlu1 %2005 }
 0x37b   : > { %7344 = vpow2.f32 %v1486_v59  ;;  %6628 = vmatmul.mubr.msk.bf16.vlgmr.msra.gmra.mxu0 %vm1395_vm2, %v1576_v53  ;;  %v1458_v27 = vsub.f32 %v8453_v37, %v1440_v6 }
 0x37c   : > { %6638 = vmatpush3.bf16.msra.mxu0 %v8304_v4  ;;  %6639 = vmatprep.mubr.msk.bf16.mxu0 %vm7841_vm0, %v10126_v32  ;;  %v8574_v62 = vpop.eup %7338 }
 0x37d   : > { %6649 = vmatprep.subr.bf16.mxu0 %v10126_v32  ;;  %10178 = vst [vmem:[#allocation29_spill] sm:$0xff] %v8574_v62  ;;  %v1488_v40 = vmul.f32 1.442695, %v1458_v27  ;;  %v2011_v27 = vsel %vm1018_vm1, %v2006_v20, 0 }
 0x37e   : > { %v1953_v38 = vpop.permute.xlu0 %1952  ;;  %v1950_v47 = vpop.permute.xlu1 %1949 }
 0x37f   : > { %v1958_v60 = vsel %vm1018_vm1, %v1953_v38, 0  ;;  %7346 = vpow2.f32 %v1488_v40 }
 0x380   : > { %v8576_v29 = vpop.eup %7340 }
 0x381   : > { %10179 = vst [vmem:[#allocation30_spill] sm:$0xff] %v8576_v29  ;;  %v1577_v3 = vpack.c.bf16 %v8576_v29, %v8574_v62 }
 0x382   : > { %v2003_v9 = vpop.permute.xlu0 %2002 }
 0x383   : > { %6634 = vmatmul.mubr.msk.bf16.vlgmr.msra.gmra.mxu1 %vm1395_vm2, %v1577_v3 }
 0x384   : > { %6644 = vmatpush3.bf16.msra.mxu1 %v8297_v61  ;;  %6645 = vmatprep.mubr.msk.bf16.mxu1 %vm7841_vm0, %v10126_v32  ;;  %v8585_v57 = vpop.eup %7342 }
 0x385   : > { %6655 = vmatprep.subr.bf16.mxu1 %v10126_v32  ;;  %10180 = vst [vmem:[#allocation31_spill] sm:$0xff] %v8585_v57 }
 0x386   : > { %v2056_v28 = vpop.permute.xlu0 %2055 }
 0x388   : > { %v8587_v7 = vpop.eup %7344 }
 0x389   : > { %10181 = vst [vmem:[#allocation32_spill] sm:$0xff] %v8587_v7  ;;  %v1578_v44 = vpack.c.bf16 %v8587_v7, %v8585_v57 }
 0x38a   : > { %v2109_v50 = vpop.permute.xlu0 %2108 }
 0x38b   : > { %6640 = vmatmul.mubr.msk.bf16.vlgmr.msra.gmra.mxu0 %vm1395_vm2, %v1578_v44 }
 0x38c   : > { %6650 = vmatpush3.bf16.xpose.msra.mxu0 %v1958_v60  ;;  %6651 = vmatprep.mubr.msk.bf16.mxu0 %vm7841_vm0, %v10126_v32  ;;  %v8608_v6 = vpop.eup %7346 }
 0x38d   : > { %6661 = vmatprep.subr.bf16.mxu0 %v10126_v32  ;;  %10182 = vst [vmem:[#allocation33_spill] sm:$0xff] %v8608_v6 }
 0x38e   : > { %v2162_v53 = vpop.permute.xlu0 %2161 }
 0x392   : > { %v2215_v38 = vpop.permute.xlu0 %2214 }
 0x393   : > { %6652 = vmatmul.mubr.msk.bf16.vlgmr.msra.gmra.mxu0 %vm1018_vm1, %v1950_v47 }
 0x394   : > { %6663 = vmatprep.mubr.msk.bf16.mxu0 %vm7841_vm0, %v10126_v32 }
 0x396   : > { %v2268_v40 = vpop.permute.xlu0 %2267 }
 0x39a   : > { %v2558_v20 = vpop.permute.xlu0 %2557 }
 0x3af   : > { %v1443_v17 = vpop.xlane.xlu1 %1442 }
 0x3b0   : > { %v1459_v45 = vsub.f32 %v8457_v48, %v1443_v17 }
 0x3b2   : > { %v1490_v18 = vmul.f32 1.442695, %v1459_v45 }
 0x3b3   : > { %v2059_v43 = vpop.permute.xlu1 %2058 }
 0x3b4   : > { %7348 = vpow2.f32 %v1490_v18  ;;  %v2064_v54 = vsel %vm1018_vm1, %v2059_v43, 0 }
 0x3b5   : > { %6662 = vmatpush3.bf16.xpose.msra.mxu0 %v2064_v54 }
 0x3b6   : > { %6673 = vmatprep.subr.bf16.mxu0 %v10126_v32 }
 0x3b7   : > { %v2112_v59 = vpop.permute.xlu1 %2111 }
 0x3b8   : > { %v2117_v17 = vsel %vm1018_vm1, %v2112_v59, 0 }
 0x3bb   : > { %v2165_v3 = vpop.permute.xlu1 %2164 }
 0x3bc   : > { %v2170_v37 = vsel %vm1018_vm1, %v2165_v3, 0  ;;  %6664 = vmatmul.mubr.msk.bf16.vlgmr.msra.gmra.mxu0 %vm1018_vm1, %v2056_v28 }
 0x3bd   : > { %6674 = vmatpush3.bf16.xpose.msra.mxu0 %v2170_v37  ;;  %6675 = vmatprep.mubr.msk.bf16.mxu0 %vm7841_vm0, %v10126_v32 }
 0x3be   : > { %6685 = vmatprep.subr.bf16.mxu0 %v10126_v32 }
 0x3bf   : > { %v2218_v48 = vpop.permute.xlu1 %2217 }
 0x3c0   : > { %v2223_v45 = vsel %vm1018_vm1, %v2218_v48, 0 }
 0x3c1   : > { %v8610_v44 = vpop.eup %7348 }
 0x3c2   : > { %10183 = vst [vmem:[#allocation34_spill] sm:$0xff] %v8610_v44  ;;  %v1579_v60 = vpack.c.bf16 %v8610_v44, %v8608_v6 }
 0x3c3   : > { %v2271_v47 = vpop.permute.xlu1 %2270 }
 0x3c4   : > { %v2276_v28 = vsel %vm1018_vm1, %v2271_v47, 0  ;;  %6646 = vmatmul.mubr.msk.bf16.vlgmr.msra.gmra.mxu1 %vm1395_vm2, %v1579_v60  ;;  %6676 = vmatmul.mubr.msk.bf16.vlgmr.msra.gmra.mxu0 %vm1018_vm1, %v2162_v53 }
 0x3c5   : > { %6656 = vmatpush3.bf16.xpose.msra.mxu1 %v2011_v27  ;;  %6686 = vmatpush3.bf16.xpose.msra.mxu0 %v2276_v28 }
 0x3c6   : > { %6657 = vmatprep.mubr.msk.bf16.mxu1 %vm7841_vm0, %v10126_v32  ;;  %6667 = vmatprep.subr.bf16.mxu1 %v10126_v32 }
 0x3c7   : > { %6687 = vmatprep.mubr.msk.bf16.mxu0 %vm7841_vm0, %v10126_v32  ;;  %6697 = vmatprep.subr.bf16.mxu0 %v10126_v32 }
 0x3cc   : > { %6658 = vmatmul.mubr.msk.bf16.vlgmr.msra.gmra.mxu1 %vm1018_vm1, %v2003_v9  ;;  %6688 = vmatmul.mubr.msk.bf16.vlgmr.msra.gmra.mxu0 %vm1018_vm1, %v2268_v40  ;;  %v2324_v9 = vpop.permute.xlu1 %2323 }
 0x3cd   : > { %6668 = vmatpush3.bf16.xpose.msra.mxu1 %v2117_v17  ;;  %6698 = vmatpush3.bf16.msra.mxu0 %v2558_v20  ;;  %v2329_v18 = vsel %vm1018_vm1, %v2324_v9, 0 }
 0x3ce   : > { %6669 = vmatprep.mubr.msk.bf16.mxu1 %vm7841_vm0, %v10126_v32  ;;  %6679 = vmatprep.subr.bf16.mxu1 %v10126_v32 }
 0x3cf   : > { %6699 = vmatprep.mubr.msk.bf16.mxu0 %vm7841_vm0, %v10126_v32  ;;  %6709 = vmatprep.subr.bf16.mxu0 %v10126_v32 }
 0x3d0   : > { %v2321_v43 = vpop.permute.xlu1 %2320 }
 0x3d4   : > { %6670 = vmatmul.mubr.msk.bf16.vlgmr.msra.gmra.mxu1 %vm1018_vm1, %v2109_v50  ;;  %v2606_v54 = vpop.permute.xlu1 %2605 }
 0x3d5   : > { %6680 = vmatpush3.bf16.xpose.msra.mxu1 %v2223_v45  ;;  %6681 = vmatprep.mubr.msk.bf16.mxu1 %vm7841_vm0, %v10126_v32 }
 0x3d6   : > { %6691 = vmatprep.subr.bf16.mxu1 %v10126_v32 }
 0x3dc   : > { %6682 = vmatmul.mubr.msk.bf16.vlgmr.msra.gmra.mxu1 %vm1018_vm1, %v2215_v38 }
 0x3dd   : > { %6692 = vmatpush3.bf16.xpose.msra.mxu1 %v2329_v18  ;;  %6693 = vmatprep.mubr.msk.bf16.mxu1 %vm7841_vm0, %v10126_v32 }
 0x3de   : > { %6703 = vmatprep.subr.bf16.mxu1 %v10126_v32 }
 0x3e4   : > { %6694 = vmatmul.mubr.msk.bf16.vlgmr.msra.gmra.mxu1 %vm1018_vm1, %v2321_v43 }
 0x3e5   : > { %6704 = vmatpush3.bf16.msra.mxu1 %v2606_v54  ;;  %6705 = vmatprep.mubr.msk.bf16.mxu1 %vm7841_vm0, %v10126_v32 }
 0x3e6   : > { %6715 = vmatprep.subr.bf16.mxu1 %v10126_v32 }
 0x41b   : > { %v8647_v50 = vpop.f32.mrf.mxu0 }
 0x41c   : > { %10184 = vst [vmem:[#allocation35_spill] sm:$0xff] %v8647_v50 }
 0x41d   : > { %v6605_v59 = vpop.f32.mrf.mxu0 }
 0x41f   : > { %v8649_v53 = vpop.f32.mrf.mxu0 }
 0x420   : > { %10185 = vst [vmem:[#allocation36_spill] sm:$0xff] %v8649_v53 }
 0x421   : > { %v6606_v3 = vpop.f32.mrf.mxu0 }
 0x423   : > { %v8651_v37 = vpop.f32.mrf.mxu1 }
 0x424   : > { %10186 = vst [vmem:[#allocation37_spill] sm:$0xff] %v8651_v37 }
 0x425   : > { %v6611_v48 = vpop.f32.mrf.mxu1 }
 0x427   : > { %v8653_v38 = vpop.f32.mrf.mxu1 }
 0x428   : > { %10187 = vst [vmem:[#allocation38_spill] sm:$0xff] %v8653_v38 }
 0x429   : > { %v6612_v60 = vpop.f32.mrf.mxu1 }
 0x42b   : > { %v8655_v47 = vpop.f32.mrf.mxu0 }
 0x42c   : > { %10188 = vst [vmem:[#allocation39_spill] sm:$0xff] %v8655_v47 }
 0x42d   : > { %v6617_v27 = vpop.f32.mrf.mxu0 }
 0x42f   : > { %v8657_v28 = vpop.f32.mrf.mxu0 }
 0x430   : > { %10189 = vst [vmem:[#allocation40_spill] sm:$0xff] %v8657_v28 }
 0x431   : > { %v6618_v40 = vpop.f32.mrf.mxu0 }
 0x433   : > { %v8659_v20 = vpop.f32.mrf.mxu1 }
 0x434   : > { %10190 = vst [vmem:[#allocation41_spill] sm:$0xff] %v8659_v20 }
 0x435   : > { %v6623_v17 = vpop.f32.mrf.mxu1 }
 0x437   : > { %v8661_v45 = vpop.f32.mrf.mxu1 }
 0x438   : > { %10191 = vst [vmem:[#allocation42_spill] sm:$0xff] %v8661_v45 }
 0x439   : > { %v6624_v9 = vpop.f32.mrf.mxu1 }
 0x43b   : > { %v8663_v18 = vpop.f32.mrf.mxu0 }
 0x43c   : > { %10192 = vst [vmem:[#allocation43_spill] sm:$0xff] %v8663_v18 }
 0x43d   : > { %v6629_v43 = vpop.f32.mrf.mxu0 }
 0x43f   : > { %v8665_v54 = vpop.f32.mrf.mxu0 }
 0x440   : > { %10193 = vst [vmem:[#allocation44_spill] sm:$0xff] %v8665_v54 }
 0x441   : > { %v6630_v59 = vpop.f32.mrf.mxu0 }
 0x443   : > { %v8667_v3 = vpop.f32.mrf.mxu1 }
 0x444   : > { %10194 = vst [vmem:[#allocation45_spill] sm:$0xff] %v8667_v3 }
 0x445   : > { %v6635_v48 = vpop.f32.mrf.mxu1 }
 0x447   : > { %v8669_v60 = vpop.f32.mrf.mxu1 }
 0x448   : > { %10195 = vst [vmem:[#allocation46_spill] sm:$0xff] %v8669_v60 }
 0x449   : > { %v6636_v27 = vpop.f32.mrf.mxu1 }
 0x44b   : > { %v8671_v49 = vpop.f32.mrf.mxu0 }
 0x44c   : > { %10196 = vst [vmem:[#allocation47_spill] sm:$0xff] %v8671_v49 }
 0x44d   : > { %v6641_v40 = vpop.f32.mrf.mxu0 }
 0x44f   : > { %v8673_v42 = vpop.f32.mrf.mxu0 }
 0x450   : > { %10197 = vst [vmem:[#allocation48_spill] sm:$0xff] %v8673_v42 }
 0x451   : > { %v6642_v17 = vpop.f32.mrf.mxu0 }
 0x453   : > { %v8675_v56 = vpop.f32.mrf.mxu0 }
 0x454   : > { %v2372_v9 = vsel %vm1395_vm2, %v8675_v56, -inf }
 0x455   : > { %2373 = vmax.xlane.f32.xlu0 %v2372_v9  ;;  %v6653_v43 = vpop.f32.mrf.mxu0 }
 0x457   : > { %v8679_v59 = vpop.f32.mrf.mxu0 }
 0x458   : > { %v2375_v48 = vsel %vm1395_vm2, %v8679_v59, -inf }
 0x459   : > { %v6654_v32 = vpop.f32.mrf.mxu0  ;;  %2376 = vmax.xlane.f32.xlu1 %v2375_v48 }
 0x46a   : > { %2893 = vrot.lane.b32.xlu1 %v8297_v61, %s7842_s15 }
 0x47c   : > { %v8685_v27 = vpop.f32.mrf.mxu0 }
 0x47e   : > { %v6665_v40 = vpop.f32.mrf.mxu0 }
 0x480   : > { %v8687_v17 = vpop.f32.mrf.mxu0 }
 0x481   : > { %v2387_v40 = vsel %vm1395_vm2, %v8687_v17, -inf }
 0x482   : > { %v6666_v41 = vpop.f32.mrf.mxu0 }
 0x484   : > { %v8689_v42 = vpop.f32.mrf.mxu1  ;;  %v8691_v9 = vpop.f32.mrf.mxu0 }
 0x485   : > { %10198 = vst [vmem:[#allocation49_spill] sm:$0xff] %v8689_v42 }
 0x486   : > { %v6647_v43 = vpop.f32.mrf.mxu1  ;;  %v6677_v49 = vpop.f32.mrf.mxu0 }
 0x488   : > { %v8693_v54 = vpop.f32.mrf.mxu1  ;;  %v8695_v18 = vpop.f32.mrf.mxu0 }
 0x489   : > { %10199 = vst [vmem:[#allocation50_spill] sm:$0xff] %v8693_v54 }
 0x48a   : > { %v6648_v32 = vpop.f32.mrf.mxu1  ;;  %v6678_v48 = vpop.f32.mrf.mxu0 }
 0x48b   : > { %v2384_v32 = vsel %vm1395_vm2, %v8685_v27, -inf }
 0x48c   : > { %v8697_v60 = vpop.f32.mrf.mxu1  ;;  %v8699_v3 = vpop.f32.mrf.mxu0 }
 0x48d   : > { %v2378_v41 = vsel %vm1395_vm2, %v8697_v60, -inf }
 0x48e   : > { %2388 = vmax.xlane.f32.xlu1 %v2387_v40  ;;  %v6689_v42 = vpop.f32.mrf.mxu0  ;;  %2379 = vmax.xlane.f32.xlu0 %v2378_v41  ;;  %v6659_v49 = vpop.f32.mrf.mxu1 }
 0x490   : > { %v8705_v43 = vpop.f32.mrf.mxu1  ;;  %v8707_v54 = vpop.f32.mrf.mxu0 }
 0x491   : > { %v2381_v6 = vsel %vm1395_vm2, %v8705_v43, -inf }
 0x492   : > { %v6690_v48 = vpop.f32.mrf.mxu0  ;;  %2385 = vmax.xlane.f32.xlu0 %v2384_v32  ;;  %v6660_v44 = vpop.f32.mrf.mxu1  ;;  %v2399_v32 = vsel %vm1395_vm2, %v8695_v18, -inf }
 0x494   : > { %v8711_v7 = vpop.f32.mrf.mxu1 }
 0x496   : > { %2382 = vmax.xlane.f32.xlu0 %v2381_v6  ;;  %v6671_v40 = vpop.f32.mrf.mxu1 }
 0x498   : > { %v8715_v42 = vpop.f32.mrf.mxu1 }
 0x499   : > { %v2393_v41 = vsel %vm1395_vm2, %v8715_v42, -inf }
 0x49a   : > { %2394 = vmax.xlane.f32.xlu1 %v2393_v41  ;;  %v6672_v49 = vpop.f32.mrf.mxu1  ;;  %v2411_v41 = vsel %vm1395_vm2, %v8707_v54, -inf }
 0x49c   : > { %v8719_v45 = vpop.f32.mrf.mxu1 }
 0x49e   : > { %2400 = vmax.xlane.f32.xlu1 %v2399_v32  ;;  %v6683_v44 = vpop.f32.mrf.mxu1  ;;  %v2390_v32 = vsel %vm1395_vm2, %v8711_v7, -inf }
 0x49f   : > { %v2396_v44 = vsel %vm1395_vm2, %v8691_v9, -inf }
 0x4a0   : > { %v8723_v48 = vpop.f32.mrf.mxu1 }
 0x4a1   : > { %v2405_v6 = vsel %vm1395_vm2, %v8723_v48, -inf }
 0x4a2   : > { %2406 = vmax.xlane.f32.xlu1 %v2405_v6  ;;  %v6684_v40 = vpop.f32.mrf.mxu1  ;;  %v2654_v6 = vpop.permute.xlu1 %2653 }
 0x4a3   : > { %v2402_v40 = vsel %vm1395_vm2, %v8719_v45, -inf }
 0x4a4   : > { %v8727_v20 = vpop.f32.mrf.mxu1 }
 0x4a6   : > { %2412 = vmax.xlane.f32.xlu1 %v2411_v41  ;;  %v6695_v49 = vpop.f32.mrf.mxu1  ;;  %v8745_v41 = vpop.permute.xlu1 %2701 }
 0x4a7   : > { %v8747_v49 = vpop.permute.xlu0 %2749 }
 0x4a8   : > { %v8731_v28 = vpop.f32.mrf.mxu1 }
 0x4a9   : > { %v2417_v38 = vsel %vm1395_vm2, %v8731_v28, -inf }
 0x4aa   : > { %v6696_v47 = vpop.f32.mrf.mxu1 }
 0x4ab   : > { %v2408_v47 = vsel %vm1395_vm2, %v8699_v3, -inf }
 0x4ac   : > { %2845 = vrot.lane.b32.xlu0 %v8304_v4, %s7842_s15 }
 0x4b7   : > { %3009 = vrot.lane.b32.xlu1 %v8256_v10, %s7843_s13 }
 0x4cb   : > { %2391 = vmax.xlane.f32.xlu0 %v2390_v32  ;;  %v2414_v32 = vsel %vm1395_vm2, %v8727_v20, -inf }
 0x4cf   : > { %2397 = vmax.xlane.f32.xlu0 %v2396_v44  ;;  %v8753_v44 = vpop.permute.xlu1 %2797 }
 0x4d3   : > { %2403 = vmax.xlane.f32.xlu0 %v2402_v40 }
 0x4d7   : > { %2409 = vmax.xlane.f32.xlu0 %v2408_v47 }
 0x4db   : > { %2415 = vmax.xlane.f32.xlu0 %v2414_v32  ;;  %2418 = vmax.xlane.f32.xlu1 %v2417_v38 }
 0x4de   : > { %v2374_v37 = vpop.xlane.xlu0 %2373 }
 0x4df   : > { %v2420_v40 = vsub.f32 %v8675_v56, %v2374_v37 }
 0x4e1   : > { %v2436_v53 = vmul.f32 1.442695, %v2420_v40 }
 0x4e2   : > { %v2377_v50 = vpop.xlane.xlu1 %2376 }
 0x4e3   : > { %v2421_v47 = vsub.f32 %v8679_v59, %v2377_v50  ;;  %7350 = vpow2.f32 %v2436_v53 }
 0x4e5   : > { %v2438_v57 = vmul.f32 1.442695, %v2421_v47 }
 0x4e6   : > { %v8805_v50 = vpop.permute.xlu1 %2893 }
 0x4e7   : > { %7352 = vpow2.f32 %v2438_v57  ;;  %v10200_v57 = vmov 0.0  }
 0x4ec   : > { %3060 = vrot.lane.b32.xlu1 %v8279_v36, %s7843_s13 }
 0x4f0   : > { %3111 = vrot.lane.b32.xlu1 %v8302_v8, %s7843_s13  ;;  %v8763_v38 = vpop.eup %7350 }
 0x4f1   : > { %2958 = vrot.lane.b32.xlu0 %v8235_v1, %s7843_s13 }
 0x4f4   : > { %v8765_v32 = vpop.eup %7352  ;;  %3162 = vrot.lane.b32.xlu1 %v8319_v23, %s7843_s13 }
 0x4f5   : > { %2956 = vrot.lane.b32.xlu0 %v8254_v14, %s7843_s13  ;;  %v2548_v56 = vpack.c.bf16 %v8765_v32, %v8763_v38 }
 0x4f7   : > { %6700 = vmatmul.mubr.msk.bf16.vlgmr.msra.gmra.mxu0 %vm1395_vm2, %v2548_v56 }
 0x4f8   : > { %6710 = vmatpush3.bf16.msra.mxu0 %v2654_v6  ;;  %3213 = vrot.lane.b32.xlu1 %v8334_v34, %s7843_s13 }
 0x4f9   : > { %3007 = vrot.lane.b32.xlu0 %v8277_v35, %s7843_s13  ;;  %6711 = vmatprep.mubr.msk.bf16.mxu0 %vm7841_vm0, %v10200_v57 }
 0x4fa   : > { %6721 = vmatprep.subr.bf16.mxu0 %v10200_v57 }
 0x4fc   : > { %3264 = vrot.lane.b32.xlu1 %v8349_v2, %s7843_s13 }
 0x4fd   : > { %3058 = vrot.lane.b32.xlu0 %v8300_v63, %s7843_s13 }
 0x500   : > { %3315 = vrot.lane.b32.xlu1 %v8368_v15, %s7843_s13 }
 0x501   : > { %3109 = vrot.lane.b32.xlu0 %v8317_v22, %s7843_s13 }
 0x504   : > { %3313 = vrot.lane.b32.xlu1 %v8387_v55, %s7843_s13 }
 0x505   : > { %3160 = vrot.lane.b32.xlu0 %v8332_v33, %s7843_s13 }
 0x508   : > { %3595 = vrot.lane.b32.xlu1 %v8389_v24, %s7843_s13 }
 0x509   : > { %3211 = vrot.lane.b32.xlu0 %v8347_v0, %s7843_s13 }
 0x50c   : > { %3642 = vrot.lane.b32.xlu1 %v8258_v11, %s7843_s13 }
 0x50d   : > { %3262 = vrot.lane.b32.xlu0 %v8366_v13, %s7843_s13 }
 0x510   : > { %3689 = vrot.lane.b32.xlu1 %v8251_v12, %s7843_s13 }
 0x511   : > { %3548 = vrot.lane.b32.xlu0 %v8370_v16, %s7843_s13 }
 0x514   : > { %3783 = vrot.lane.b32.xlu1 %v8274_v26, %s7843_s13 }
 0x515   : > { %3736 = vrot.lane.b32.xlu0 %v8281_v39, %s7843_s13 }
 0x517   : > { %v2389_v53 = vpop.xlane.xlu1 %2388  ;;  %v2380_v37 = vpop.xlane.xlu0 %2379 }
 0x518   : > { %v2425_v59 = vsub.f32 %v8687_v17, %v2389_v53  ;;  %v2422_v40 = vsub.f32 %v8697_v60, %v2380_v37 }
 0x51a   : > { %v2446_v6 = vmul.f32 1.442695, %v2425_v59  ;;  %v2440_v29 = vmul.f32 1.442695, %v2422_v40 }
 0x51b   : > { %v2386_v47 = vpop.xlane.xlu0 %2385 }
 0x51c   : > { %v2424_v56 = vsub.f32 %v8685_v27, %v2386_v47  ;;  %7354 = vpow2.f32 %v2446_v6 }
 0x51e   : > { %v2444_v58 = vmul.f32 1.442695, %v2424_v56 }
 0x51f   : > { %v2383_v62 = vpop.xlane.xlu0 %2382 }
 0x520   : > { %7356 = vpow2.f32 %v2444_v58  ;;  %v2423_v46 = vsub.f32 %v8705_v43, %v2383_v62 }
 0x521   : > { %7358 = vpow2.f32 %v2440_v29 }
 0x522   : > { %v2442_v31 = vmul.f32 1.442695, %v2423_v46 }
 0x523   : > { %v2395_v46 = vpop.xlane.xlu1 %2394  ;;  %v2846_v62 = vpop.permute.xlu0 %2845 }
 0x524   : > { %7360 = vpow2.f32 %v2442_v31  ;;  %v2427_v29 = vsub.f32 %v8715_v42, %v2395_v46 }
 0x527   : > { %v2401_v58 = vpop.xlane.xlu1 %2400 }
 0x528   : > { %v2429_v53 = vsub.f32 %v8695_v18, %v2401_v58 }
 0x529   : > { %v8815_v21 = vpop.eup %7354 }
 0x52b   : > { %v2407_v43 = vpop.xlane.xlu1 %2406 }
 0x52c   : > { %v2431_v40 = vsub.f32 %v8723_v48, %v2407_v43 }
 0x52d   : > { %v8817_v52 = vpop.eup %7356 }
 0x52e   : > { %v2550_v60 = vpack.c.bf16 %v8815_v21, %v8817_v52  ;;  %v8821_v17 = vpop.eup %7358  ;;  %v2458_v42 = vmul.f32 1.442695, %v2431_v40 }
 0x52f   : > { %v2413_v56 = vpop.xlane.xlu1 %2412 }
 0x530   : > { %6712 = vmatmul.mubr.msk.bf16.vlgmr.msra.gmra.mxu0 %vm1395_vm2, %v2550_v60  ;;  %v2433_v46 = vsub.f32 %v8707_v54, %v2413_v56 }
 0x531   : > { %v8824_v27 = vpop.eup %7360  ;;  %6722 = vmatpush3.bf16.msra.mxu0 %v8747_v49  ;;  %6723 = vmatprep.mubr.msk.bf16.mxu0 %vm7841_vm0, %v10200_v57  ;;  %v2450_v49 = vmul.f32 1.442695, %v2427_v29 }
 0x532   : > { %v2549_v31 = vpack.c.bf16 %v8824_v27, %v8821_v17  ;;  %6733 = vmatprep.subr.bf16.mxu0 %v10200_v57  ;;  %v2462_v58 = vmul.f32 1.442695, %v2433_v46 }
 0x533   : > { %7362 = vpow2.f32 %v2450_v49  ;;  %v3010_v49 = vpop.permute.xlu1 %3009 }
 0x534   : > { %6706 = vmatmul.mubr.msk.bf16.vlgmr.msra.gmra.mxu1 %vm1395_vm2, %v2549_v31 }
 0x535   : > { %6716 = vmatpush3.bf16.msra.mxu1 %v8745_v41  ;;  %6717 = vmatprep.mubr.msk.bf16.mxu1 %vm7841_vm0, %v10200_v57  ;;  %v2454_v41 = vmul.f32 1.442695, %v2429_v53 }
 0x536   : > { %6727 = vmatprep.subr.bf16.mxu1 %v10200_v57 }
 0x554   : > { %v2392_v37 = vpop.xlane.xlu0 %2391 }
 0x555   : > { %v2426_v59 = vsub.f32 %v8711_v7, %v2392_v37 }
 0x557   : > { %v2448_v6 = vmul.f32 1.442695, %v2426_v59  ;;  %v8845_v59 = vpop.eup %7362 }
 0x558   : > { %v2398_v47 = vpop.xlane.xlu0 %2397 }
 0x559   : > { %7364 = vpow2.f32 %v2448_v6  ;;  %v2428_v60 = vsub.f32 %v8691_v9, %v2398_v47 }
 0x55a   : > { %7366 = vpow2.f32 %v2454_v41 }
 0x55b   : > { %v2452_v31 = vmul.f32 1.442695, %v2428_v60 }
 0x55c   : > { %v2404_v29 = vpop.xlane.xlu0 %2403 }
 0x55d   : > { %7368 = vpow2.f32 %v2452_v31  ;;  %v2430_v18 = vsub.f32 %v8719_v45, %v2404_v29 }
 0x55e   : > { %7370 = vpow2.f32 %v2458_v42 }
 0x55f   : > { %v2456_v7 = vmul.f32 1.442695, %v2430_v18 }
 0x560   : > { %v2410_v53 = vpop.xlane.xlu0 %2409 }
 0x561   : > { %7372 = vpow2.f32 %v2456_v7  ;;  %v2432_v48 = vsub.f32 %v8699_v3, %v2410_v53 }
 0x562   : > { %7374 = vpow2.f32 %v2462_v58 }
 0x563   : > { %v2460_v43 = vmul.f32 1.442695, %v2432_v48 }
 0x564   : > { %v2416_v9 = vpop.xlane.xlu0 %2415  ;;  %v2419_v37 = vpop.xlane.xlu1 %2418 }
 0x565   : > { %7376 = vpow2.f32 %v2460_v43  ;;  %v2434_v54 = vsub.f32 %v8727_v20, %v2416_v9  ;;  %v2435_v6 = vsub.f32 %v8731_v28, %v2419_v37  ;;  %v3015_v37 = vsel %vm1018_vm1, %v3010_v49, 0 }
 0x566   : > { %v8849_v45 = vpop.eup %7364 }
 0x567   : > { %v2464_v41 = vmul.f32 1.442695, %v2434_v54  ;;  %v2466_v40 = vmul.f32 1.442695, %v2435_v6  ;;  %v2551_v47 = vpack.c.bf16 %v8845_v59, %v8849_v45  ;;  %v8853_v3 = vpop.eup %7366 }
 0x568   : > { %v2959_v56 = vpop.permute.xlu0 %2958  ;;  %v3061_v46 = vpop.permute.xlu1 %3060 }
 0x569   : > { %7378 = vpow2.f32 %v2464_v41  ;;  %6718 = vmatmul.mubr.msk.bf16.vlgmr.msra.gmra.mxu1 %vm1395_vm2, %v2551_v47  ;;  %v2964_v58 = vsel %vm1018_vm1, %v2959_v56, 0  ;;  %v3066_v6 = vsel %vm1018_vm1, %v3061_v46, 0 }
 0x56a   : > { %v8856_v60 = vpop.eup %7368  ;;  %7380 = vpow2.f32 %v2466_v40  ;;  %6728 = vmatpush3.bf16.msra.mxu1 %v8753_v44  ;;  %6729 = vmatprep.mubr.msk.bf16.mxu1 %vm7841_vm0, %v10200_v57 }
 0x56b   : > { %v2552_v28 = vpack.c.bf16 %v8853_v3, %v8856_v60  ;;  %6739 = vmatprep.subr.bf16.mxu1 %v10200_v57  ;;  %v8864_v31 = vpop.eup %7370 }
 0x56c   : > { %v2957_v20 = vpop.permute.xlu0 %2956  ;;  %v3112_v48 = vpop.permute.xlu1 %3111 }
 0x56d   : > { %6724 = vmatmul.mubr.msk.bf16.vlgmr.msra.gmra.mxu0 %vm1395_vm2, %v2552_v28  ;;  %v3117_v49 = vsel %vm1018_vm1, %v3112_v48, 0 }
 0x56e   : > { %v8867_v42 = vpop.eup %7372  ;;  %6734 = vmatpush3.bf16.msra.mxu0 %v2846_v62  ;;  %6735 = vmatprep.mubr.msk.bf16.mxu0 %vm7841_vm0, %v10200_v57 }
 0x56f   : > { %v2553_v44 = vpack.c.bf16 %v8864_v31, %v8867_v42  ;;  %6745 = vmatprep.subr.bf16.mxu0 %v10200_v57  ;;  %v8874_v29 = vpop.eup %7374 }
 0x570   : > { %v3008_v18 = vpop.permute.xlu0 %3007  ;;  %v3163_v54 = vpop.permute.xlu1 %3162 }
 0x571   : > { %6730 = vmatmul.mubr.msk.bf16.vlgmr.msra.gmra.mxu1 %vm1395_vm2, %v2553_v44  ;;  %v3168_v56 = vsel %vm1018_vm1, %v3163_v54, 0 }
 0x572   : > { %v8877_v7 = vpop.eup %7376  ;;  %6740 = vmatpush3.bf16.msra.mxu1 %v8805_v50  ;;  %6741 = vmatprep.mubr.msk.bf16.mxu1 %vm7841_vm0, %v10200_v57 }
 0x573   : > { %v2554_v62 = vpack.c.bf16 %v8874_v29, %v8877_v7  ;;  %6751 = vmatprep.subr.bf16.mxu1 %v10200_v57 }
 0x574   : > { %v3059_v43 = vpop.permute.xlu0 %3058  ;;  %v3214_v40 = vpop.permute.xlu1 %3213 }
 0x575   : > { %6736 = vmatmul.mubr.msk.bf16.vlgmr.msra.gmra.mxu0 %vm1395_vm2, %v2554_v62  ;;  %v3219_v44 = vsel %vm1018_vm1, %v3214_v40, 0 }
 0x576   : > { %v8887_v53 = vpop.eup %7378  ;;  %6746 = vmatpush3.bf16.xpose.msra.mxu0 %v2964_v58  ;;  %6747 = vmatprep.mubr.msk.bf16.mxu0 %vm7841_vm0, %v10200_v57 }
 0x577   : > { %v8891_v50 = vpop.eup %7380  ;;  %6757 = vmatprep.subr.bf16.mxu0 %v10200_v57 }
 0x578   : > { %v2555_v9 = vpack.c.bf16 %v8891_v50, %v8887_v53  ;;  %v3110_v41 = vpop.permute.xlu0 %3109  ;;  %v3265_v28 = vpop.permute.xlu1 %3264 }
 0x579   : > { %v3270_v46 = vsel %vm1018_vm1, %v3265_v28, 0 }
 0x57a   : > { %6742 = vmatmul.mubr.msk.bf16.vlgmr.msra.gmra.mxu1 %vm1395_vm2, %v2555_v9 }
 0x57b   : > { %6752 = vmatpush3.bf16.xpose.msra.mxu1 %v3015_v37  ;;  %6753 = vmatprep.mubr.msk.bf16.mxu1 %vm7841_vm0, %v10200_v57 }
 0x57c   : > { %6763 = vmatprep.subr.bf16.mxu1 %v10200_v57  ;;  %v3161_v47 = vpop.permute.xlu0 %3160 }
 0x57d   : > { %6748 = vmatmul.mubr.msk.bf16.vlgmr.msra.gmra.mxu0 %vm1018_vm1, %v2957_v20 }
 0x57e   : > { %6758 = vmatpush3.bf16.xpose.msra.mxu0 %v3066_v6  ;;  %6759 = vmatprep.mubr.msk.bf16.mxu0 %vm7841_vm0, %v10200_v57 }
 0x57f   : > { %6769 = vmatprep.subr.bf16.mxu0 %v10200_v57 }
 0x580   : > { %v3212_v20 = vpop.permute.xlu0 %3211 }
 0x582   : > { %6754 = vmatmul.mubr.msk.bf16.vlgmr.msra.gmra.mxu1 %vm1018_vm1, %v3008_v18  ;;  %v3316_v18 = vpop.permute.xlu1 %3315 }
 0x583   : > { %6764 = vmatpush3.bf16.xpose.msra.mxu1 %v3117_v49  ;;  %6765 = vmatprep.mubr.msk.bf16.mxu1 %vm7841_vm0, %v10200_v57  ;;  %v3321_v58 = vsel %vm1018_vm1, %v3316_v18, 0 }
 0x584   : > { %6775 = vmatprep.subr.bf16.mxu1 %v10200_v57  ;;  %v3263_v62 = vpop.permute.xlu0 %3262 }
 0x585   : > { %6760 = vmatmul.mubr.msk.bf16.vlgmr.msra.gmra.mxu0 %vm1018_vm1, %v3059_v43 }
 0x586   : > { %6770 = vmatpush3.bf16.xpose.msra.mxu0 %v3168_v56  ;;  %6771 = vmatprep.mubr.msk.bf16.mxu0 %vm7841_vm0, %v10200_v57  ;;  %v3314_v48 = vpop.permute.xlu1 %3313 }
 0x587   : > { %6781 = vmatprep.subr.bf16.mxu0 %v10200_v57 }
 0x588   : > { %v3549_v43 = vpop.permute.xlu0 %3548 }
 0x58a   : > { %6766 = vmatmul.mubr.msk.bf16.vlgmr.msra.gmra.mxu1 %vm1018_vm1, %v3110_v41  ;;  %v3596_v9 = vpop.permute.xlu1 %3595 }
 0x58b   : > { %6776 = vmatpush3.bf16.xpose.msra.mxu1 %v3219_v44  ;;  %6777 = vmatprep.mubr.msk.bf16.mxu1 %vm7841_vm0, %v10200_v57 }
 0x58c   : > { %6787 = vmatprep.subr.bf16.mxu1 %v10200_v57 }
 0x58d   : > { %6772 = vmatmul.mubr.msk.bf16.vlgmr.msra.gmra.mxu0 %vm1018_vm1, %v3161_v47 }
 0x58e   : > { %6782 = vmatpush3.bf16.xpose.msra.mxu0 %v3270_v46  ;;  %6783 = vmatprep.mubr.msk.bf16.mxu0 %vm7841_vm0, %v10200_v57 }
 0x58f   : > { %6793 = vmatprep.subr.bf16.mxu0 %v10200_v57 }
 0x592   : > { %6778 = vmatmul.mubr.msk.bf16.vlgmr.msra.gmra.mxu1 %vm1018_vm1, %v3212_v20 }
 0x593   : > { %6788 = vmatpush3.bf16.xpose.msra.mxu1 %v3321_v58  ;;  %6789 = vmatprep.mubr.msk.bf16.mxu1 %vm7841_vm0, %v10200_v57 }
 0x594   : > { %6799 = vmatprep.subr.bf16.mxu1 %v10200_v57 }
 0x595   : > { %6784 = vmatmul.mubr.msk.bf16.vlgmr.msra.gmra.mxu0 %vm1018_vm1, %v3263_v62 }
 0x596   : > { %6794 = vmatpush3.bf16.msra.mxu0 %v3549_v43  ;;  %6795 = vmatprep.mubr.msk.bf16.mxu0 %vm7841_vm0, %v10200_v57 }
 0x597   : > { %6805 = vmatprep.subr.bf16.mxu0 %v10200_v57 }
 0x59a   : > { %6790 = vmatmul.mubr.msk.bf16.vlgmr.msra.gmra.mxu1 %vm1018_vm1, %v3314_v48 }
 0x59b   : > { %6800 = vmatpush3.bf16.msra.mxu1 %v3596_v9  ;;  %6801 = vmatprep.mubr.msk.bf16.mxu1 %vm7841_vm0, %v10200_v57 }
 0x59c   : > { %6811 = vmatprep.subr.bf16.mxu1 %v10200_v57 }
 0x5b7   : > { %v8939_v37 = vpop.f32.mrf.mxu0 }
 0x5b8   : > { %10201 = vst [vmem:[#allocation51_spill] sm:$0xff] %v8939_v37 }
 0x5b9   : > { %v6701_v54 = vpop.f32.mrf.mxu0 }
 0x5bb   : > { %v8941_v6 = vpop.f32.mrf.mxu0 }
 0x5bc   : > { %10202 = vst [vmem:[#allocation52_spill] sm:$0xff] %v8941_v6 }
 0x5bd   : > { %v6702_v41 = vpop.f32.mrf.mxu0 }
 0x5f0   : > { %v8943_v49 = vpop.f32.mrf.mxu0 }
 0x5f1   : > { %10203 = vst [vmem:[#allocation53_spill] sm:$0xff] %v8943_v49 }
 0x5f2   : > { %v6713_v40 = vpop.f32.mrf.mxu0 }
 0x5f4   : > { %v8945_v47 = vpop.f32.mrf.mxu1  ;;  %v8947_v56 = vpop.f32.mrf.mxu0 }
 0x5f5   : > { %10204 = vst [vmem:[#allocation54_spill] sm:$0xff] %v8945_v47  ;;  %10205 = vst [vmem:[#allocation55_spill] sm:$0xff] %v8947_v56 }
 0x5f6   : > { %v6707_v28 = vpop.f32.mrf.mxu1  ;;  %v6714_v20 = vpop.f32.mrf.mxu0 }
 0x5f8   : > { %v8949_v44 = vpop.f32.mrf.mxu1 }
 0x5f9   : > { %10206 = vst [vmem:[#allocation56_spill] sm:$0xff] %v8949_v44 }
 0x5fa   : > { %v6708_v46 = vpop.f32.mrf.mxu1 }
 0x629   : > { %v8951_v18 = vpop.f32.mrf.mxu1 }
 0x62a   : > { %10207 = vst [vmem:[#allocation57_spill] sm:$0xff] %v8951_v18 }
 0x62b   : > { %v6719_v62 = vpop.f32.mrf.mxu1 }
 0x62d   : > { %v8953_v58 = vpop.f32.mrf.mxu1  ;;  %v8955_v48 = vpop.f32.mrf.mxu0 }
 0x62e   : > { %10208 = vst [vmem:[#allocation58_spill] sm:$0xff] %v8953_v58  ;;  %10209 = vst [vmem:[#allocation59_spill] sm:$0xff] %v8955_v48 }
 0x62f   : > { %v6720_v43 = vpop.f32.mrf.mxu1  ;;  %v6725_v9 = vpop.f32.mrf.mxu0 }
 0x631   : > { %v8957_v54 = vpop.f32.mrf.mxu0  ;;  %v8959_v41 = vpop.f32.mrf.mxu1 }
 0x632   : > { %10210 = vst [vmem:[#allocation60_spill] sm:$0xff] %v8957_v54  ;;  %10211 = vst [vmem:[#allocation61_spill] sm:$0xff] %v8959_v41 }
 0x633   : > { %v6726_v40 = vpop.f32.mrf.mxu0  ;;  %v6731_v56 = vpop.f32.mrf.mxu1 }
 0x635   : > { %v8961_v28 = vpop.f32.mrf.mxu1  ;;  %v8963_v20 = vpop.f32.mrf.mxu0 }
 0x636   : > { %10212 = vst [vmem:[#allocation62_spill] sm:$0xff] %v8961_v28  ;;  %10213 = vst [vmem:[#allocation63_spill] sm:$0xff] %v8963_v20 }
 0x637   : > { %v6732_v46 = vpop.f32.mrf.mxu1  ;;  %v6737_v49 = vpop.f32.mrf.mxu0 }
 0x639   : > { %v8965_v18 = vpop.f32.mrf.mxu0 }
 0x63a   : > { %10214 = vst [vmem:[#allocation64_spill] sm:$0xff] %v8965_v18  ;;  %v8967_v62 = vpop.f32.mrf.mxu1 }
 0x63b   : > { %10215 = vst [vmem:[#allocation65_spill] sm:$0xff] %v8967_v62  ;;  %v6738_v58 = vpop.f32.mrf.mxu0 }
 0x63c   : > { %v6743_v48 = vpop.f32.mrf.mxu1 }
 0x63d   : > { %v8969_v43 = vpop.f32.mrf.mxu0 }
 0x63e   : > { %v8971_v9 = vpop.f32.mrf.mxu1  ;;  %v3364_v40 = vsel %vm1395_vm2, %v8969_v43, -inf }
 0x63f   : > { %10216 = vst [vmem:[#allocation66_spill] sm:$0xff] %v8971_v9  ;;  %3365 = vmax.xlane.f32.xlu0 %v3364_v40  ;;  %v6749_v56 = vpop.f32.mrf.mxu0 }
 0x640   : > { %v6744_v54 = vpop.f32.mrf.mxu1 }
 0x641   : > { %v8975_v41 = vpop.f32.mrf.mxu0 }
 0x642   : > { %v8977_v46 = vpop.f32.mrf.mxu1  ;;  %v3367_v49 = vsel %vm1395_vm2, %v8975_v41, -inf }
 0x643   : > { %v6750_v28 = vpop.f32.mrf.mxu0  ;;  %3368 = vmax.xlane.f32.xlu1 %v3367_v49  ;;  %v3370_v58 = vsel %vm1395_vm2, %v8977_v46, -inf }
 0x644   : > { %3371 = vmax.xlane.f32.xlu0 %v3370_v58  ;;  %v6755_v48 = vpop.f32.mrf.mxu1 }
 0x645   : > { %v8983_v9 = vpop.f32.mrf.mxu0 }
 0x646   : > { %v8985_v62 = vpop.f32.mrf.mxu1  ;;  %v3376_v54 = vsel %vm1395_vm2, %v8983_v9, -inf }
 0x647   : > { %v6761_v40 = vpop.f32.mrf.mxu0  ;;  %v3373_v49 = vsel %vm1395_vm2, %v8985_v62, -inf }
 0x648   : > { %3377 = vmax.xlane.f32.xlu0 %v3376_v54  ;;  %v6756_v56 = vpop.f32.mrf.mxu1 }
 0x649   : > { %v8989_v18 = vpop.f32.mrf.mxu0 }
 0x64a   : > { %v8991_v20 = vpop.f32.mrf.mxu1 }
 0x64b   : > { %v6762_v28 = vpop.f32.mrf.mxu0 }
 0x64c   : > { %3374 = vmax.xlane.f32.xlu0 %v3373_v49  ;;  %v6767_v58 = vpop.f32.mrf.mxu1 }
 0x64d   : > { %v8995_v48 = vpop.f32.mrf.mxu0 }
 0x64e   : > { %v8997_v37 = vpop.f32.mrf.mxu1 }
 0x64f   : > { %v6773_v6 = vpop.f32.mrf.mxu0 }
 0x650   : > { %v6768_v47 = vpop.f32.mrf.mxu1 }
 0x651   : > { %v8999_v44 = vpop.f32.mrf.mxu0 }
 0x652   : > { %v9001_v54 = vpop.f32.mrf.mxu1 }
 0x653   : > { %v6774_v40 = vpop.f32.mrf.mxu0 }
 0x654   : > { %v6779_v56 = vpop.f32.mrf.mxu1  ;;  %3877 = vrot.lane.b32.xlu1 %v8297_v61, %s7843_s13  ;;  %v3379_v40 = vsel %vm1395_vm2, %v8989_v18, -inf }
 0x655   : > { %v9005_v28 = vpop.f32.mrf.mxu0  ;;  %v3385_v56 = vsel %vm1395_vm2, %v8997_v37, -inf }
 0x656   : > { %v9007_v19 = vpop.f32.mrf.mxu1 }
 0x657   : > { %v6785_v49 = vpop.f32.mrf.mxu0 }
 0x658   : > { %v6780_v58 = vpop.f32.mrf.mxu1  ;;  %v3391_v49 = vsel %vm1395_vm2, %v8999_v44, -inf }
 0x659   : > { %v9009_v51 = vpop.f32.mrf.mxu0  ;;  %v3382_v58 = vsel %vm1395_vm2, %v8991_v20, -inf }
 0x65a   : > { %v9011_v5 = vpop.f32.mrf.mxu1 }
 0x65b   : > { %v6786_v6 = vpop.f32.mrf.mxu0 }
 0x65c   : > { %v6791_v47 = vpop.f32.mrf.mxu1  ;;  %v3388_v6 = vsel %vm1395_vm2, %v8995_v48, -inf }
 0x65d   : > { %v3403_v47 = vsel %vm1395_vm2, %v9009_v51, -inf }
 0x65e   : > { %v9013_v25 = vpop.f32.mrf.mxu1 }
 0x660   : > { %v6792_v30 = vpop.f32.mrf.mxu1 }
 0x661   : > { %v3397_v30 = vsel %vm1395_vm2, %v9007_v19, -inf }
 0x662   : > { %3830 = vrot.lane.b32.xlu0 %v8304_v4, %s7843_s13 }
 0x678   : > { %3380 = vmax.xlane.f32.xlu1 %v3379_v40  ;;  %v3394_v40 = vsel %vm1395_vm2, %v9001_v54, -inf }
 0x67c   : > { %3386 = vmax.xlane.f32.xlu1 %v3385_v56  ;;  %v3409_v56 = vsel %vm1395_vm2, %v9013_v25, -inf }
 0x680   : > { %3392 = vmax.xlane.f32.xlu1 %v3391_v49  ;;  %v3400_v49 = vsel %vm1395_vm2, %v9005_v28, -inf }
 0x681   : > { %3383 = vmax.xlane.f32.xlu0 %v3382_v58  ;;  %v3406_v58 = vsel %vm1395_vm2, %v9011_v5, -inf }
 0x684   : > { %3398 = vmax.xlane.f32.xlu1 %v3397_v30 }
 0x685   : > { %3389 = vmax.xlane.f32.xlu0 %v3388_v6 }
 0x688   : > { %3404 = vmax.xlane.f32.xlu1 %v3403_v47 }
 0x689   : > { %3395 = vmax.xlane.f32.xlu0 %v3394_v40 }
 0x68c   : > { %3410 = vmax.xlane.f32.xlu1 %v3409_v56 }
 0x68d   : > { %3401 = vmax.xlane.f32.xlu0 %v3400_v49 }
 0x691   : > { %3407 = vmax.xlane.f32.xlu0 %v3406_v58 }
 0x69d   : > { %3993 = vrot.lane.b32.xlu1 %v8256_v10, %s7844_s28  ;;  %v9075_v10 = vpop.permute.xlu0 %3736 }
 0x6a1   : > { %3991 = vrot.lane.b32.xlu1 %v8277_v35, %s7844_s28 }
 0x6a5   : > { %4095 = vrot.lane.b32.xlu1 %v8302_v8, %s7844_s28 }
 0x6a7   : > { %3942 = vrot.lane.b32.xlu0 %v8235_v1, %s7844_s28  ;;  %v3643_v1 = vpop.permute.xlu1 %3642 }
 0x6a9   : > { %4093 = vrot.lane.b32.xlu1 %v8317_v22, %s7844_s28 }
 0x6ab   : > { %3940 = vrot.lane.b32.xlu0 %v8254_v14, %s7844_s28  ;;  %v3690_v14 = vpop.permute.xlu1 %3689 }
 0x6ad   : > { %4197 = vrot.lane.b32.xlu1 %v8334_v34, %s7844_s28 }
 0x6af   : > { %4044 = vrot.lane.b32.xlu0 %v8279_v36, %s7844_s28  ;;  %v9081_v35 = vpop.permute.xlu1 %3783 }
 0x6b1   : > { %4195 = vrot.lane.b32.xlu1 %v8347_v0, %s7844_s28 }
 0x6b3   : > { %4042 = vrot.lane.b32.xlu0 %v8300_v63, %s7844_s28 }
 0x6b5   : > { %4299 = vrot.lane.b32.xlu1 %v8368_v15, %s7844_s28 }
 0x6b7   : > { %4146 = vrot.lane.b32.xlu0 %v8319_v23, %s7844_s28 }
 0x6b9   : > { %4297 = vrot.lane.b32.xlu1 %v8387_v55, %s7844_s28 }
 0x6bb   : > { %4144 = vrot.lane.b32.xlu0 %v8332_v33, %s7844_s28 }
 0x6bd   : > { %4579 = vrot.lane.b32.xlu1 %v8389_v24, %s7844_s28  ;;  %v2468_v24 = vsel %vm1395_vm2, %v8763_v38, 0.0  ;;  %v2489_v38 = vsel %vm1395_vm2, %v8845_v59, 0.0 }
 0x6bf   : > { %4248 = vrot.lane.b32.xlu0 %v8349_v2, %s7844_s28 }
 0x6c1   : > { %4673 = vrot.lane.b32.xlu1 %v8251_v12, %s7844_s28 }
 0x6c3   : > { %4246 = vrot.lane.b32.xlu0 %v8366_v13, %s7844_s28 }
 0x6c5   : > { %4767 = vrot.lane.b32.xlu1 %v8274_v26, %s7844_s28 }
 0x6c7   : > { %4532 = vrot.lane.b32.xlu0 %v8370_v16, %s7844_s28 }
 0x6c8   : > { %v3366_v36 = vpop.xlane.xlu0 %3365 }
 0x6c9   : > { %v3412_v63 = vsub.f32 %v8969_v43, %v3366_v36  ;;  %4814 = vrot.lane.b32.xlu1 %v8304_v4, %s7844_s28  ;;  %v2483_v43 = vsel %vm1395_vm2, %v8815_v21, 0.0 }
 0x6cb   : > { %4626 = vrot.lane.b32.xlu0 %v8258_v11, %s7844_s28  ;;  %v3428_v12 = vmul.f32 1.442695, %v3412_v63 }
 0x6cc   : > { %v3369_v8 = vpop.xlane.xlu1 %3368 }
 0x6cd   : > { %v3413_v22 = vsub.f32 %v8975_v41, %v3369_v8  ;;  %v3372_v23 = vpop.xlane.xlu0 %3371  ;;  %4861 = vrot.lane.b32.xlu1 %v8297_v61, %s7844_s28  ;;  %7382 = vpow2.f32 %v3428_v12  ;;  %v2471_v41 = vsel %vm1395_vm2, %v8765_v32, 0.0  ;;  %v2480_v32 = vsel %vm1395_vm2, %v8817_v52, 0.0 }
 0x6ce   : > { %v3414_v33 = vsub.f32 %v8977_v46, %v3372_v23  ;;  %v2477_v46 = vsel %vm1395_vm2, %v8824_v27, 0.0  ;;  %v2486_v27 = vsel %vm1395_vm2, %v8849_v45, 0.0  ;;  %v2492_v52 = vsel %vm1395_vm2, %v8856_v60, 0.0 }
 0x6cf   : > { %v3430_v26 = vmul.f32 1.442695, %v3413_v22  ;;  %4720 = vrot.lane.b32.xlu0 %v8281_v39, %s7844_s28  ;;  %v2498_v45 = vsel %vm1395_vm2, %v8867_v42, 0.0 }
 0x6d0   : > { %v3432_v34 = vmul.f32 1.442695, %v3414_v33  ;;  %v9120_v6 = vpop.permute.xlu1 %3877 }
 0x6d1   : > { %7384 = vpow2.f32 %v3430_v26  ;;  %v3378_v4 = vpop.xlane.xlu0 %3377 }
 0x6d2   : > { %7386 = vpow2.f32 %v3432_v34  ;;  %v3416_v30 = vsub.f32 %v8983_v9, %v3378_v4 }
 0x6d4   : > { %v3436_v21 = vmul.f32 1.442695, %v3416_v30 }
 0x6d5   : > { %v3375_v0 = vpop.xlane.xlu0 %3374 }
 0x6d6   : > { %v3415_v11 = vsub.f32 %v8985_v62, %v3375_v0  ;;  %v2474_v62 = vsel %vm1395_vm2, %v8821_v17, 0.0  ;;  %v2495_v17 = vsel %vm1395_vm2, %v8853_v3, 0.0 }
 0x6d8   : > { %v3434_v2 = vmul.f32 1.442695, %v3415_v11 }
 0x6d9   : > { %v9131_v49 = vpop.permute.xlu0 %3830 }
 0x6da   : > { %7388 = vpow2.f32 %v3434_v2  ;;  %v7383_v13 = vpop.eup %7382 }
 0x6db   : > { %7390 = vpow2.f32 %v3436_v21 }
 0x6de   : > { %v7385_v15 = vpop.eup %7384 }
 0x6df   : > { %v3540_v16 = vpack.c.bf16 %v7385_v15, %v7383_v13  ;;  %v7387_v39 = vpop.eup %7386  ;;  %v3463_v59 = vsel %vm1395_vm2, %v7385_v15, 0.0 }
 0x6e0   : > { %v3466_v8 = vsel %vm1395_vm2, %v7387_v39, 0.0 }
 0x6e1   : > { %6796 = vmatmul.mubr.msk.bf16.vlgmr.msra.gmra.mxu0 %vm1395_vm2, %v3540_v16 }
 0x6e2   : > { %6806 = vmatpush3.bf16.msra.mxu0 %v3643_v1  ;;  %6807 = vmatprep.mubr.msk.bf16.mxu0 %vm7841_vm0, %v10200_v57 }
 0x6e3   : > { %6817 = vmatprep.subr.bf16.mxu0 %v10200_v57 }
 0x6e7   : > { %v7389_v61 = vpop.eup %7388 }
 0x6e8   : > { %v3541_v55 = vpack.c.bf16 %v7389_v61, %v7387_v39  ;;  %v3469_v40 = vsel %vm1395_vm2, %v7389_v61, 0.0  ;;  %v7391_v22 = vpop.eup %7390 }
 0x6ea   : > { %6802 = vmatmul.mubr.msk.bf16.vlgmr.msra.gmra.mxu1 %vm1395_vm2, %v3541_v55 }
 0x6eb   : > { %6812 = vmatpush3.bf16.msra.mxu1 %v3690_v14  ;;  %6813 = vmatprep.mubr.msk.bf16.mxu1 %vm7841_vm0, %v10200_v57  ;;  %v3460_v14 = vsel %vm1395_vm2, %v7383_v13, 0.0 }
 0x6ec   : > { %6823 = vmatprep.subr.bf16.mxu1 %v10200_v57 }
 0x6ee   : > { %2469 = vadd.xlane.f32.xlu0 %v2468_v24 }
 0x6f1   : > { %2472 = vadd.xlane.f32.xlu1 %v2471_v41 }
 0x6f2   : > { %2475 = vadd.xlane.f32.xlu0 %v2474_v62 }
 0x6f5   : > { %2484 = vadd.xlane.f32.xlu1 %v2483_v43 }
 0x6f6   : > { %2478 = vadd.xlane.f32.xlu0 %v2477_v46 }
 0x6f9   : > { %2490 = vadd.xlane.f32.xlu1 %v2489_v38 }
 0x6fa   : > { %2481 = vadd.xlane.f32.xlu0 %v2480_v32 }
 0x6fd   : > { %2496 = vadd.xlane.f32.xlu1 %v2495_v17 }
 0x6fe   : > { %2487 = vadd.xlane.f32.xlu0 %v2486_v27 }
 0x701   : > { %v3381_v9 = vpop.xlane.xlu1 %3380  ;;  %3464 = vadd.xlane.f32.xlu1 %v3463_v59 }
 0x702   : > { %v3417_v47 = vsub.f32 %v8989_v18, %v3381_v9  ;;  %2493 = vadd.xlane.f32.xlu0 %v2492_v52 }
 0x704   : > { %v3438_v3 = vmul.f32 1.442695, %v3417_v47 }
 0x705   : > { %v3387_v56 = vpop.xlane.xlu1 %3386  ;;  %3470 = vadd.xlane.f32.xlu1 %v3469_v40 }
 0x706   : > { %7392 = vpow2.f32 %v3438_v3  ;;  %v3419_v58 = vsub.f32 %v8997_v37, %v3387_v56  ;;  %2499 = vadd.xlane.f32.xlu0 %v2498_v45 }
 0x708   : > { %v3442_v1 = vmul.f32 1.442695, %v3419_v58 }
 0x709   : > { %v3393_v60 = vpop.xlane.xlu1 %3392 }
 0x70a   : > { %7394 = vpow2.f32 %v3442_v1  ;;  %v3384_v18 = vpop.xlane.xlu0 %3383  ;;  %v3421_v36 = vsub.f32 %v8999_v44, %v3393_v60  ;;  %3461 = vadd.xlane.f32.xlu0 %v3460_v14  ;;  %v3472_v44 = vsel %vm1395_vm2, %v7391_v22, 0.0 }
 0x70b   : > { %v3418_v63 = vsub.f32 %v8991_v20, %v3384_v18 }
 0x70c   : > { %v3446_v23 = vmul.f32 1.442695, %v3421_v36 }
 0x70d   : > { %v3440_v12 = vmul.f32 1.442695, %v3418_v63  ;;  %v3399_v42 = vpop.xlane.xlu1 %3398 }
 0x70e   : > { %v3390_v26 = vpop.xlane.xlu0 %3389  ;;  %v3423_v37 = vsub.f32 %v9007_v19, %v3399_v42  ;;  %3467 = vadd.xlane.f32.xlu0 %v3466_v8 }
 0x70f   : > { %7396 = vpow2.f32 %v3440_v12  ;;  %v3420_v33 = vsub.f32 %v8995_v48, %v3390_v26 }
 0x710   : > { %7398 = vpow2.f32 %v3446_v23  ;;  %v3450_v0 = vmul.f32 1.442695, %v3423_v37 }
 0x711   : > { %v3444_v4 = vmul.f32 1.442695, %v3420_v33  ;;  %v3405_v34 = vpop.xlane.xlu1 %3404 }
 0x712   : > { %v3396_v20 = vpop.xlane.xlu0 %3395  ;;  %v3425_v11 = vsub.f32 %v9009_v51, %v3405_v34  ;;  %3473 = vadd.xlane.f32.xlu0 %v3472_v44 }
 0x713   : > { %v7393_v2 = vpop.eup %7392  ;;  %7400 = vpow2.f32 %v3444_v4  ;;  %v3422_v13 = vsub.f32 %v9001_v54, %v3396_v20 }
 0x714   : > { %v3475_v19 = vsel %vm1395_vm2, %v7393_v2, 0.0  ;;  %v3542_v15 = vpack.c.bf16 %v7393_v2, %v7391_v22  ;;  %7402 = vpow2.f32 %v3450_v0  ;;  %v3454_v39 = vmul.f32 1.442695, %v3425_v11 }
 0x715   : > { %v3448_v16 = vmul.f32 1.442695, %v3422_v13  ;;  %3476 = vadd.xlane.f32.xlu1 %v3475_v19  ;;  %v3411_v48 = vpop.xlane.xlu1 %3410 }
 0x716   : > { %v3402_v61 = vpop.xlane.xlu0 %3401  ;;  %v3427_v55 = vsub.f32 %v9013_v25, %v3411_v48  ;;  %6808 = vmatmul.mubr.msk.bf16.vlgmr.msra.gmra.mxu0 %vm1395_vm2, %v3542_v15 }
 0x717   : > { %v7395_v24 = vpop.eup %7394  ;;  %7404 = vpow2.f32 %v3448_v16  ;;  %v3424_v51 = vsub.f32 %v9005_v28, %v3402_v61  ;;  %6818 = vmatpush3.bf16.msra.mxu0 %v9075_v10  ;;  %6819 = vmatprep.mubr.msk.bf16.mxu0 %vm7841_vm0, %v10200_v57 }
 0x718   : > { %v3481_v54 = vsel %vm1395_vm2, %v7395_v24, 0.0  ;;  %6829 = vmatprep.subr.bf16.mxu0 %v10200_v57  ;;  %7406 = vpow2.f32 %v3454_v39  ;;  %v3458_v62 = vmul.f32 1.442695, %v3427_v55 }
 0x719   : > { %v3452_v41 = vmul.f32 1.442695, %v3424_v51  ;;  %3482 = vadd.xlane.f32.xlu1 %v3481_v54  ;;  %v3994_v17 = vpop.permute.xlu1 %3993 }
 0x71a   : > { %v3408_v25 = vpop.xlane.xlu0 %3407  ;;  %v3999_v14 = vsel %vm1018_vm1, %v3994_v17, 0 }
 0x71b   : > { %7408 = vpow2.f32 %v3452_v41  ;;  %v3426_v43 = vsub.f32 %v9011_v5, %v3408_v25 }
 0x71c   : > { %v7397_v46 = vpop.eup %7396  ;;  %7410 = vpow2.f32 %v3458_v62 }
 0x71d   : > { %v3456_v38 = vmul.f32 1.442695, %v3426_v43  ;;  %v3478_v28 = vsel %vm1395_vm2, %v7397_v46, 0.0  ;;  %v3543_v10 = vpack.c.bf16 %v7395_v24, %v7397_v46  ;;  %v9154_v32 = vpop.eup %7398  ;;  %v3992_v52 = vpop.permute.xlu1 %3991 }
 0x71e   : > { %3479 = vadd.xlane.f32.xlu0 %v3478_v28  ;;  %v3943_v30 = vpop.permute.xlu0 %3942 }
 0x71f   : > { %7412 = vpow2.f32 %v3456_v38  ;;  %6814 = vmatmul.mubr.msk.bf16.vlgmr.msra.gmra.mxu1 %vm1395_vm2, %v3543_v10 }
 0x720   : > { %v9157_v21 = vpop.eup %7400  ;;  %6824 = vmatpush3.bf16.msra.mxu1 %v9081_v35  ;;  %6825 = vmatprep.mubr.msk.bf16.mxu1 %vm7841_vm0, %v10200_v57 }
 0x721   : > { %v3544_v5 = vpack.c.bf16 %v9154_v32, %v9157_v21  ;;  %6835 = vmatprep.subr.bf16.mxu1 %v10200_v57  ;;  %v9165_v59 = vpop.eup %7402  ;;  %v4096_v58 = vpop.permute.xlu1 %4095 }
 0x722   : > { %v3941_v27 = vpop.permute.xlu0 %3940  ;;  %v4101_v12 = vsel %vm1018_vm1, %v4096_v58, 0 }
 0x723   : > { %6820 = vmatmul.mubr.msk.bf16.vlgmr.msra.gmra.mxu0 %vm1395_vm2, %v3544_v5 }
 0x724   : > { %v9168_v9 = vpop.eup %7404  ;;  %6830 = vmatpush3.bf16.msra.mxu0 %v9131_v49  ;;  %6831 = vmatprep.mubr.msk.bf16.mxu0 %vm7841_vm0, %v10200_v57  ;;  %v3948_v49 = vsel %vm1018_vm1, %v3943_v30, 0 }
 0x725   : > { %v3545_v35 = vpack.c.bf16 %v9165_v59, %v9168_v9  ;;  %6841 = vmatprep.subr.bf16.mxu0 %v10200_v57  ;;  %v9176_v47 = vpop.eup %7406  ;;  %v4094_v18 = vpop.permute.xlu1 %4093 }
 0x726   : > { %v4045_v3 = vpop.permute.xlu0 %4044 }
 0x727   : > { %6826 = vmatmul.mubr.msk.bf16.vlgmr.msra.gmra.mxu1 %vm1395_vm2, %v3545_v35  ;;  %v4050_v36 = vsel %vm1018_vm1, %v4045_v3, 0 }
 0x728   : > { %v9179_v40 = vpop.eup %7408  ;;  %6836 = vmatpush3.bf16.msra.mxu1 %v9120_v6  ;;  %6837 = vmatprep.mubr.msk.bf16.mxu1 %vm7841_vm0, %v10200_v57 }
 0x729   : > { %v3546_v56 = vpack.c.bf16 %v9176_v47, %v9179_v40  ;;  %6847 = vmatprep.subr.bf16.mxu1 %v10200_v57  ;;  %v9187_v45 = vpop.eup %7410  ;;  %v4198_v42 = vpop.permute.xlu1 %4197 }
 0x72a   : > { %v4043_v60 = vpop.permute.xlu0 %4042  ;;  %v4203_v26 = vsel %vm1018_vm1, %v4198_v42, 0 }
 0x72b   : > { %6832 = vmatmul.mubr.msk.bf16.vlgmr.msra.gmra.mxu0 %vm1395_vm2, %v3546_v56 }
 0x72c   : > { %v9191_v1 = vpop.eup %7412  ;;  %6842 = vmatpush3.bf16.xpose.msra.mxu0 %v3948_v49  ;;  %6843 = vmatprep.mubr.msk.bf16.mxu0 %vm7841_vm0, %v10200_v57 }
 0x72d   : > { %v3547_v6 = vpack.c.bf16 %v9187_v45, %v9191_v1  ;;  %6853 = vmatprep.subr.bf16.mxu0 %v10200_v57  ;;  %v4196_v23 = vpop.permute.xlu1 %4195 }
 0x72e   : > { %v4147_v63 = vpop.permute.xlu0 %4146 }
 0x72f   : > { %6838 = vmatmul.mubr.msk.bf16.vlgmr.msra.gmra.mxu1 %vm1395_vm2, %v3547_v6  ;;  %v4152_v22 = vsel %vm1018_vm1, %v4147_v63, 0 }
 0x730   : > { %6848 = vmatpush3.bf16.xpose.msra.mxu1 %v3999_v14  ;;  %6849 = vmatprep.mubr.msk.bf16.mxu1 %vm7841_vm0, %v10200_v57 }
 0x731   : > { %6859 = vmatprep.subr.bf16.mxu1 %v10200_v57  ;;  %v4300_v33 = vpop.permute.xlu1 %4299 }
 0x732   : > { %v4145_v8 = vpop.permute.xlu0 %4144  ;;  %v4305_v44 = vsel %vm1018_vm1, %v4300_v33, 0 }
 0x733   : > { %6844 = vmatmul.mubr.msk.bf16.vlgmr.msra.gmra.mxu0 %vm1018_vm1, %v3941_v27 }
 0x734   : > { %6854 = vmatpush3.bf16.xpose.msra.mxu0 %v4050_v36  ;;  %6855 = vmatprep.mubr.msk.bf16.mxu0 %vm7841_vm0, %v10200_v57 }
 0x735   : > { %6865 = vmatprep.subr.bf16.mxu0 %v10200_v57  ;;  %v4298_v0 = vpop.permute.xlu1 %4297 }
 0x736   : > { %v4249_v37 = vpop.permute.xlu0 %4248 }
 0x737   : > { %6850 = vmatmul.mubr.msk.bf16.vlgmr.msra.gmra.mxu1 %vm1018_vm1, %v3992_v52  ;;  %v4254_v4 = vsel %vm1018_vm1, %v4249_v37, 0 }
 0x738   : > { %6860 = vmatpush3.bf16.xpose.msra.mxu1 %v4101_v12  ;;  %6861 = vmatprep.mubr.msk.bf16.mxu1 %vm7841_vm0, %v10200_v57 }
 0x739   : > { %6871 = vmatprep.subr.bf16.mxu1 %v10200_v57  ;;  %v4580_v11 = vpop.permute.xlu1 %4579 }
 0x73a   : > { %v4247_v34 = vpop.permute.xlu0 %4246 }
 0x73b   : > { %6856 = vmatmul.mubr.msk.bf16.vlgmr.msra.gmra.mxu0 %vm1018_vm1, %v4043_v60 }
 0x73c   : > { %6866 = vmatpush3.bf16.xpose.msra.mxu0 %v4152_v22  ;;  %6867 = vmatprep.mubr.msk.bf16.mxu0 %vm7841_vm0, %v10200_v57 }
 0x73d   : > { %6877 = vmatprep.subr.bf16.mxu0 %v10200_v57  ;;  %v9241_v2 = vpop.permute.xlu1 %4673 }
 0x73e   : > { %v4533_v20 = vpop.permute.xlu0 %4532 }
 0x73f   : > { %6862 = vmatmul.mubr.msk.bf16.vlgmr.msra.gmra.mxu1 %vm1018_vm1, %v4094_v18 }
 0x740   : > { %6872 = vmatpush3.bf16.xpose.msra.mxu1 %v4203_v26  ;;  %6873 = vmatprep.mubr.msk.bf16.mxu1 %vm7841_vm0, %v10200_v57 }
 0x741   : > { %6883 = vmatprep.subr.bf16.mxu1 %v10200_v57  ;;  %v9245_v19 = vpop.permute.xlu1 %4767 }
 0x742   : > { %v9243_v13 = vpop.permute.xlu0 %4626 }
 0x743   : > { %6868 = vmatmul.mubr.msk.bf16.vlgmr.msra.gmra.mxu0 %vm1018_vm1, %v4145_v8 }
 0x744   : > { %6878 = vmatpush3.bf16.xpose.msra.mxu0 %v4254_v4  ;;  %6879 = vmatprep.mubr.msk.bf16.mxu0 %vm7841_vm0, %v10200_v57 }
 0x745   : > { %6889 = vmatprep.subr.bf16.mxu0 %v10200_v57  ;;  %v9249_v16 = vpop.permute.xlu1 %4814 }
 0x746   : > { %v9247_v15 = vpop.permute.xlu0 %4720 }
 0x747   : > { %6874 = vmatmul.mubr.msk.bf16.vlgmr.msra.gmra.mxu1 %vm1018_vm1, %v4196_v23 }
 0x748   : > { %6884 = vmatpush3.bf16.xpose.msra.mxu1 %v4305_v44  ;;  %6885 = vmatprep.mubr.msk.bf16.mxu1 %vm7841_vm0, %v10200_v57 }
 0x749   : > { %6895 = vmatprep.subr.bf16.mxu1 %v10200_v57  ;;  %v9253_v39 = vpop.permute.xlu1 %4861 }
 0x74b   : > { %6880 = vmatmul.mubr.msk.bf16.vlgmr.msra.gmra.mxu0 %vm1018_vm1, %v4247_v34 }
 0x74c   : > { %6890 = vmatpush3.bf16.msra.mxu0 %v4533_v20  ;;  %6891 = vmatprep.mubr.msk.bf16.mxu0 %vm7841_vm0, %v10200_v57 }
 0x74d   : > { %6901 = vmatprep.subr.bf16.mxu0 %v10200_v57 }
 0x74f   : > { %6886 = vmatmul.mubr.msk.bf16.vlgmr.msra.gmra.mxu1 %vm1018_vm1, %v4298_v0 }
 0x750   : > { %6896 = vmatpush3.bf16.msra.mxu1 %v4580_v11  ;;  %6897 = vmatprep.mubr.msk.bf16.mxu1 %vm7841_vm0, %v10200_v57 }
 0x751   : > { %6907 = vmatprep.subr.bf16.mxu1 %v10200_v57 }
 0x777   : > { %v9251_v48 = vpop.xlane.xlu0 %2469 }
 0x77a   : > { %v9257_v55 = vpop.xlane.xlu1 %2472 }
 0x77b   : > { %v9255_v61 = vpop.xlane.xlu0 %2475 }
 0x77e   : > { %v9261_v51 = vpop.xlane.xlu1 %2484 }
 0x77f   : > { %v9259_v24 = vpop.xlane.xlu0 %2478 }
 0x782   : > { %v9267_v62 = vpop.xlane.xlu1 %2490 }
 0x783   : > { %v9263_v54 = vpop.xlane.xlu0 %2481 }
 0x786   : > { %v9271_v43 = vpop.xlane.xlu1 %2496 }
 0x787   : > { %v9265_v41 = vpop.xlane.xlu0 %2487  ;;  %10218 = vst [vmem:[#allocation68_spill] sm:$0xff] %v9271_v43 }
 0x78a   : > { %v3465_v28 = vpop.xlane.xlu1 %3464 }
 0x78b   : > { %v9269_v25 = vpop.xlane.xlu0 %2493 }
 0x78c   : > { %10217 = vst [vmem:[#allocation67_spill] sm:$0xff] %v9269_v25 }
 0x78e   : > { %v3471_v10 = vpop.xlane.xlu1 %3470 }
 0x78f   : > { %v9273_v46 = vpop.xlane.xlu0 %2499 }
 0x793   : > { %v3462_v38 = vpop.xlane.xlu0 %3461 }
 0x794   : > { %7414 = vrcp.f32 %v3462_v38 }
 0x795   : > { %7416 = vrcp.f32 %v3465_v28 }
 0x796   : > { %7418 = vrcp.f32 %v3471_v10 }
 0x797   : > { %v3468_v30 = vpop.xlane.xlu0 %3467 }
 0x798   : > { %7420 = vrcp.f32 %v3468_v30 }
 0x79b   : > { %v3474_v22 = vpop.xlane.xlu0 %3473 }
 0x79c   : > { %7422 = vrcp.f32 %v3474_v22 }
 0x79e   : > { %v3477_v23 = vpop.xlane.xlu1 %3476 }
 0x79f   : > { %7424 = vrcp.f32 %v3477_v23 }
 0x7a1   : > { %v3588_v17 = vpop.f32.mrf.mxu0  ;;  %v7415_v5 = vpop.eup %7414 }
 0x7a2   : > { %v7417_v35 = vpop.eup %7416  ;;  %v9275_v3 = vmul.f32 %v7415_v5, %v3588_v17  ;;  %v3483_v26 = vpop.xlane.xlu1 %3482 }
 0x7a3   : > { %v6797_v27 = vpop.f32.mrf.mxu0  ;;  %v7419_v14 = vpop.eup %7418  ;;  %7426 = vrcp.f32 %v3483_v26 }
 0x7a5   : > { %v3591_v52 = vpop.f32.mrf.mxu0  ;;  %v7421_v18 = vpop.eup %7420 }
 0x7a6   : > { %v9277_v56 = vmul.f32 %v7417_v35, %v3591_v52 }
 0x7a7   : > { %v6798_v49 = vpop.f32.mrf.mxu0  ;;  %v3480_v37 = vpop.xlane.xlu0 %3479 }
 0x7a8   : > { %7428 = vrcp.f32 %v3480_v37 }
 0x7a9   : > { %v7423_v34 = vpop.eup %7422  ;;  %7430 = vrcp.f32 %v9259_v24 }
 0x7aa   : > { %v3635_v6 = vpop.f32.mrf.mxu1  ;;  %7432 = vrcp.f32 %v9255_v61 }
 0x7ab   : > { %v9281_v63 = vmul.f32 %v7421_v18, %v3635_v6  ;;  %7434 = vrcp.f32 %v9257_v55 }
 0x7ac   : > { %v6803_v60 = vpop.f32.mrf.mxu1  ;;  %v7425_v44 = vpop.eup %7424  ;;  %7436 = vrcp.f32 %v9251_v48  ;;  %v10233_v48 = vpack.i.bf16 %v9277_v56, %v9275_v3  ;;  %v10237_v3 = vld [vmem:[#allocation30_spill] sm:$0xff] }
 0x7ad   : > { %7438 = vrcp.f32 %v9265_v41  ;;  %v1525_v56 = vsel %vm1395_vm2, %v10237_v3, 0.0 }
 0x7ae   : > { %v3638_v36 = vpop.f32.mrf.mxu1  ;;  %7440 = vrcp.f32 %v9267_v62 }
 0x7af   : > { %v9283_v12 = vmul.f32 %v7419_v14, %v3638_v36  ;;  %7442 = vrcp.f32 %v9263_v54 }
 0x7b0   : > { %v6804_v42 = vpop.f32.mrf.mxu1  ;;  %v7427_v17 = vpop.eup %7426  ;;  %7444 = vrcp.f32 %v9261_v51  ;;  %v10240_v51 = vld [vmem:[#allocation58_spill] sm:$0xff] }
 0x7b5   : > { %v7429_v5 = vpop.eup %7428 }
 0x7b6   : > { %v7431_v24 = vpop.eup %7430 }
 0x7d6   : > { %v3682_v33 = vpop.f32.mrf.mxu0 }
 0x7d7   : > { %v9287_v20 = vmul.f32 %v7423_v34, %v3682_v33 }
 0x7d8   : > { %v6809_v4 = vpop.f32.mrf.mxu0 }
 0x7da   : > { %v3685_v0 = vpop.f32.mrf.mxu0 }
 0x7db   : > { %v9289_v11 = vmul.f32 %v7425_v44, %v3685_v0 }
 0x7dc   : > { %v6810_v38 = vpop.f32.mrf.mxu0 }
 0x7df   : > { %v3729_v10 = vpop.f32.mrf.mxu1 }
 0x7e0   : > { %v9295_v52 = vmul.f32 %v7429_v5, %v3729_v10 }
 0x7e1   : > { %v6815_v30 = vpop.f32.mrf.mxu1 }
 0x7e3   : > { %v3732_v27 = vpop.f32.mrf.mxu1  ;;  %v9293_v35 = vpop.f32.mrf.mxu0 }
 0x7e4   : > { %10219 = vst [vmem:[#allocation69_spill] sm:$0xff] %v9293_v35  ;;  %v9297_v49 = vmul.f32 %v7427_v17, %v3732_v27 }
 0x7e5   : > { %v6816_v6 = vpop.f32.mrf.mxu1  ;;  %v6821_v60 = vpop.f32.mrf.mxu0 }
 0x7e6   : > { %v3484_v60 = vsel %vm1395_vm2, %v9157_v21, 0.0 }
 0x7e7   : > { %v9301_v18 = vpop.f32.mrf.mxu0  ;;  %v9303_v36 = vpop.f32.mrf.mxu1 }
 0x7e8   : > { %10220 = vst [vmem:[#allocation70_spill] sm:$0xff] %v9301_v18 }
 0x7e9   : > { %v6822_v42 = vpop.f32.mrf.mxu0  ;;  %v6827_v22 = vpop.f32.mrf.mxu1 }
 0x7eb   : > { %v9305_v23 = vpop.f32.mrf.mxu1  ;;  %v9307_v26 = vpop.f32.mrf.mxu0 }
 0x7ed   : > { %v6828_v37 = vpop.f32.mrf.mxu1  ;;  %v6833_v33 = vpop.f32.mrf.mxu0 }
 0x7ef   : > { %v9309_v4 = vpop.f32.mrf.mxu0  ;;  %v9311_v34 = vpop.f32.mrf.mxu1 }
 0x7f1   : > { %v6834_v44 = vpop.f32.mrf.mxu0  ;;  %v6839_v0 = vpop.f32.mrf.mxu1 }
 0x7f2   : > { %v2501_v0 = vsel %vm1395_vm2, %v8864_v31, 0.0 }
 0x7f3   : > { %v9313_v38 = vpop.f32.mrf.mxu1  ;;  %v9315_v10 = vpop.f32.mrf.mxu0 }
 0x7f4   : > { %v4348_v30 = vsel %vm1395_vm2, %v9315_v10, -inf }
 0x7f5   : > { %4349 = vmax.xlane.f32.xlu0 %v4348_v30  ;;  %v6840_v17 = vpop.f32.mrf.mxu1  ;;  %v6845_v5 = vpop.f32.mrf.mxu0 }
 0x7f7   : > { %v9319_v27 = vpop.f32.mrf.mxu0  ;;  %v9321_v6 = vpop.f32.mrf.mxu1 }
 0x7f8   : > { %v4351_v42 = vsel %vm1395_vm2, %v9319_v27, -inf  ;;  %v4354_v30 = vsel %vm1395_vm2, %v9321_v6, -inf }
 0x7f9   : > { %3485 = vadd.xlane.f32.xlu0 %v3484_v60  ;;  %v6846_v22 = vpop.f32.mrf.mxu0  ;;  %4352 = vmax.xlane.f32.xlu1 %v4351_v42  ;;  %v6851_v37 = vpop.f32.mrf.mxu1 }
 0x7fb   : > { %v9327_v33 = vpop.f32.mrf.mxu1  ;;  %v9329_v44 = vpop.f32.mrf.mxu0 }
 0x7fc   : > { %v4360_v22 = vsel %vm1395_vm2, %v9329_v44, -inf }
 0x7fd   : > { %v6857_v17 = vpop.f32.mrf.mxu0  ;;  %2502 = vadd.xlane.f32.xlu1 %v2501_v0  ;;  %4355 = vmax.xlane.f32.xlu0 %v4354_v30  ;;  %v6852_v21 = vpop.f32.mrf.mxu1  ;;  %v4357_v30 = vsel %vm1395_vm2, %v9327_v33, -inf }
 0x7ff   : > { %v9335_v5 = vpop.f32.mrf.mxu0  ;;  %v9337_v60 = vpop.f32.mrf.mxu1 }
 0x800   : > { %v4363_v42 = vsel %vm1395_vm2, %v9335_v5, -inf }
 0x801   : > { %v6858_v37 = vpop.f32.mrf.mxu0  ;;  %4364 = vmax.xlane.f32.xlu1 %v4363_v42  ;;  %4361 = vmax.xlane.f32.xlu0 %v4360_v22  ;;  %v6863_v31 = vpop.f32.mrf.mxu1  ;;  %v4366_v42 = vsel %vm1395_vm2, %v9337_v60, -inf }
 0x803   : > { %v9343_v14 = vpop.f32.mrf.mxu1  ;;  %v9345_v17 = vpop.f32.mrf.mxu0 }
 0x804   : > { %v4372_v0 = vsel %vm1395_vm2, %v9345_v17, -inf  ;;  %v4369_v22 = vsel %vm1395_vm2, %v9343_v14, -inf }
 0x805   : > { %v6869_v21 = vpop.f32.mrf.mxu0  ;;  %4373 = vmax.xlane.f32.xlu1 %v4372_v0  ;;  %4358 = vmax.xlane.f32.xlu0 %v4357_v30  ;;  %v6864_v28 = vpop.f32.mrf.mxu1  ;;  %v3487_v0 = vsel %vm1395_vm2, %v9154_v32, 0.0 }
 0x806   : > { %v3490_v28 = vsel %vm1395_vm2, %v9168_v9, 0.0 }
 0x807   : > { %v9351_v8 = vpop.f32.mrf.mxu0  ;;  %v9353_v37 = vpop.f32.mrf.mxu1 }
 0x808   : > { %v4375_v32 = vsel %vm1395_vm2, %v9351_v8, -inf }
 0x809   : > { %v6870_v31 = vpop.f32.mrf.mxu0  ;;  %4367 = vmax.xlane.f32.xlu0 %v4366_v42  ;;  %4370 = vmax.xlane.f32.xlu1 %v4369_v22  ;;  %v6875_v58 = vpop.f32.mrf.mxu1  ;;  %v3493_v42 = vsel %vm1395_vm2, %v9165_v59, 0.0 }
 0x80a   : > { %v2504_v58 = vsel %vm1395_vm2, %v8877_v7, 0.0  ;;  %v4378_v7 = vsel %vm1395_vm2, %v9353_v37, -inf }
 0x80b   : > { %v9359_v43 = vpop.f32.mrf.mxu1  ;;  %v9361_v21 = vpop.f32.mrf.mxu0 }
 0x80c   : > { %v4381_v59 = vsel %vm1395_vm2, %v9359_v43, -inf }
 0x80d   : > { %v6881_v30 = vpop.f32.mrf.mxu0  ;;  %3491 = vadd.xlane.f32.xlu0 %v3490_v28  ;;  %3488 = vadd.xlane.f32.xlu1 %v3487_v0  ;;  %v6876_v25 = vpop.f32.mrf.mxu1  ;;  %v2510_v0 = vsel %vm1395_vm2, %v8887_v53, 0.0 }
 0x80e   : > { %v4384_v25 = vsel %vm1395_vm2, %v9361_v21, -inf  ;;  %v2507_v30 = vsel %vm1395_vm2, %v8874_v29, 0.0 }
 0x80f   : > { %v9367_v35 = vpop.f32.mrf.mxu0  ;;  %v9369_v31 = vpop.f32.mrf.mxu1 }
 0x810   : > { %v4387_v29 = vsel %vm1395_vm2, %v9367_v35, -inf }
 0x811   : > { %v6882_v22 = vpop.f32.mrf.mxu0  ;;  %2505 = vadd.xlane.f32.xlu0 %v2504_v58  ;;  %3494 = vadd.xlane.f32.xlu1 %v3493_v42  ;;  %v6887_v9 = vpop.f32.mrf.mxu1  ;;  %v3496_v58 = vsel %vm1395_vm2, %v9179_v40, 0.0  ;;  %v2513_v42 = vsel %vm1395_vm2, %v8891_v50, 0.0  ;;  %v4390_v50 = vsel %vm1395_vm2, %v9369_v31, -inf  ;;  %v3505_v40 = vsel %vm1395_vm2, %v9187_v45, 0.0  ;;  %v10225_v45 = vld [vmem:[#allocation23_spill] sm:$0xff] }
 0x812   : > { %v3502_v22 = vsel %vm1395_vm2, %v9191_v1, 0.0  ;;  %v3499_v9 = vsel %vm1395_vm2, %v9176_v47, 0.0  ;;  %v10221_v1 = vld [vmem:[#allocation19_spill] sm:$0xff] }
 0x813   : > { %v9375_v18 = vpop.f32.mrf.mxu1  ;;  %v1492_v47 = vsel %vm1395_vm2, %v10221_v1, 0.0 }
 0x814   : > { %v4393_v53 = vsel %vm1395_vm2, %v9375_v18, -inf }
 0x815   : > { %4376 = vmax.xlane.f32.xlu0 %v4375_v32  ;;  %4385 = vmax.xlane.f32.xlu1 %v4384_v25  ;;  %v6888_v28 = vpop.f32.mrf.mxu1  ;;  %v10222_v32 = vld [vmem:[#allocation20_spill] sm:$0xff] }
 0x816   : > { %v1495_v25 = vsel %vm1395_vm2, %v10222_v32, 0.0  ;;  %v10223_v28 = vld [vmem:[#allocation21_spill] sm:$0xff]  ;;  %v10230_v32 = vld [vmem:[#allocation54_spill] sm:$0xff] }
 0x819   : > { %4379 = vmax.xlane.f32.xlu0 %v4378_v7  ;;  %4382 = vmax.xlane.f32.xlu1 %v4381_v59  ;;  %v1498_v7 = vsel %vm1395_vm2, %v10223_v28, 0.0  ;;  %v10224_v59 = vld [vmem:[#allocation22_spill] sm:$0xff] }
 0x81d   : > { %2511 = vadd.xlane.f32.xlu0 %v2510_v0  ;;  %2508 = vadd.xlane.f32.xlu1 %v2507_v30  ;;  %v1501_v0 = vsel %vm1395_vm2, %v10224_v59, 0.0  ;;  %v1504_v30 = vsel %vm1395_vm2, %v10225_v45, 0.0 }
 0x821   : > { %3497 = vadd.xlane.f32.xlu0 %v3496_v58  ;;  %2514 = vadd.xlane.f32.xlu1 %v2513_v42  ;;  %v10226_v58 = vld [vmem:[#allocation24_spill] sm:$0xff] }
 0x822   : > { %v1507_v42 = vsel %vm1395_vm2, %v10226_v58, 0.0  ;;  %v10235_v58 = vld [vmem:[#allocation27_spill] sm:$0xff] }
 0x825   : > { %3503 = vadd.xlane.f32.xlu0 %v3502_v22  ;;  %3500 = vadd.xlane.f32.xlu1 %v3499_v9  ;;  %v10227_v22 = vld [vmem:[#allocation25_spill] sm:$0xff] }
 0x826   : > { %v1510_v9 = vsel %vm1395_vm2, %v10227_v22, 0.0  ;;  %v10236_v22 = vld [vmem:[#allocation29_spill] sm:$0xff] }
 0x829   : > { %4388 = vmax.xlane.f32.xlu0 %v4387_v29  ;;  %4394 = vmax.xlane.f32.xlu1 %v4393_v53  ;;  %v10228_v29 = vld [vmem:[#allocation26_spill] sm:$0xff] }
 0x82a   : > { %v1513_v53 = vsel %vm1395_vm2, %v10228_v29, 0.0  ;;  %v10238_v29 = vld [vmem:[#allocation28_spill] sm:$0xff] }
 0x82d   : > { %4391 = vmax.xlane.f32.xlu0 %v4390_v50  ;;  %3506 = vadd.xlane.f32.xlu1 %v3505_v40  ;;  %v7433_v50 = vpop.eup %7432  ;;  %v10229_v40 = vld [vmem:[#allocation56_spill] sm:$0xff] }
 0x82e   : > { %v2943_v1 = vmul.f32 %v7431_v24, %v10229_v40 }
 0x831   : > { %1493 = vadd.xlane.f32.xlu0 %v1492_v47  ;;  %1496 = vadd.xlane.f32.xlu1 %v1495_v25  ;;  %v7435_v47 = vpop.eup %7434  ;;  %v2942_v25 = vmul.f32 %v7433_v50, %v10230_v32  ;;  %v10239_v32 = vld [vmem:[#allocation57_spill] sm:$0xff] }
 0x832   : > { %v7437_v61 = vpop.eup %7436 }
 0x833   : > { %v7091_v28 = vpack.i.bf16 %v2943_v1, %v2942_v25 }
 0x835   : > { %1499 = vadd.xlane.f32.xlu0 %v1498_v7  ;;  %1502 = vadd.xlane.f32.xlu1 %v1501_v0  ;;  %v10231_v7 = vld [vmem:[#allocation52_spill] sm:$0xff]  ;;  %v10232_v0 = vld [vmem:[#allocation51_spill] sm:$0xff] }
 0x836   : > { %v2941_v59 = vmul.f32 %v7435_v47, %v10231_v7  ;;  %v2940_v45 = vmul.f32 %v7437_v61, %v10232_v0 }
 0x838   : > { %v7086_v55 = vpack.i.bf16 %v2941_v59, %v2940_v45 }
 0x839   : > { %1505 = vadd.xlane.f32.xlu0 %v1504_v30  ;;  %1508 = vadd.xlane.f32.xlu1 %v1507_v42  ;;  %v10234_v30 = vpack.i.bf16 %v9283_v12, %v9281_v63  ;;  %v1516_v42 = vsel %vm1395_vm2, %v10235_v58, 0.0  ;;  %v7439_v12 = vpop.eup %7438 }
 0x83a   : > { %v7441_v1 = vpop.eup %7440  ;;  %v2946_v25 = vmul.f32 %v7439_v12, %v10239_v32 }
 0x83b   : > { %v2947_v7 = vmul.f32 %v7441_v1, %v10240_v51 }
 0x83d   : > { %1511 = vadd.xlane.f32.xlu0 %v1510_v9  ;;  %1514 = vadd.xlane.f32.xlu1 %v1513_v53  ;;  %v1522_v9 = vsel %vm1395_vm2, %v10236_v22, 0.0  ;;  %v1519_v53 = vsel %vm1395_vm2, %v10238_v29, 0.0  ;;  %v7111_v59 = vpack.i.bf16 %v2947_v7, %v2946_v25 }
 0x84e   : > { %7092 = vrot.lane.b32.xlu1 %v7091_v28, %s7844_s28  ;;  %v7443_v28 = vpop.eup %7442 }
 0x852   : > { %7097 = vrot.lane.b32.xlu1 %v10233_v48, %s7843_s13 }
 0x853   : > { %7087 = vrot.lane.b32.xlu0 %v7086_v55, %s7844_s28  ;;  %v10241_v55 = vld [vmem:[#allocation53_spill] sm:$0xff] }
 0x854   : > { %v2944_v48 = vmul.f32 %v7443_v28, %v10241_v55 }
 0x856   : > { %7102 = vrot.lane.b32.xlu1 %v10234_v30, %s7843_s13 }
 0x872   : > { %1517 = vadd.xlane.f32.xlu0 %v1516_v42  ;;  %v10242_v42 = vld [vmem:[#allocation55_spill] sm:$0xff] }
 0x876   : > { %1523 = vadd.xlane.f32.xlu0 %v1522_v9 }
 0x87a   : > { %1526 = vadd.xlane.f32.xlu0 %v1525_v56  ;;  %1520 = vadd.xlane.f32.xlu1 %v1519_v53 }
 0x87e   : > { %v4350_v63 = vpop.xlane.xlu0 %4349 }
 0x87f   : > { %v4396_v41 = vsub.f32 %v9315_v10, %v4350_v63  ;;  %v7445_v10 = vpop.eup %7444 }
 0x880   : > { %v2945_v22 = vmul.f32 %v7445_v10, %v10242_v42 }
 0x881   : > { %v4412_v24 = vmul.f32 1.442695, %v4396_v41 }
 0x882   : > { %v9452_v50 = vpop.xlane.xlu0 %3485  ;;  %v4353_v62 = vpop.xlane.xlu1 %4352  ;;  %v7106_v53 = vpack.i.bf16 %v2945_v22, %v2944_v48 }
 0x883   : > { %v4397_v40 = vsub.f32 %v9319_v27, %v4353_v62  ;;  %7446 = vpow2.f32 %v4412_v24 }
 0x885   : > { %v4414_v47 = vmul.f32 1.442695, %v4397_v40 }
 0x886   : > { %v9456_v54 = vpop.xlane.xlu1 %2502  ;;  %v4356_v61 = vpop.xlane.xlu0 %4355 }
 0x887   : > { %7448 = vpow2.f32 %v4414_v47  ;;  %v4398_v27 = vsub.f32 %v9321_v6, %v4356_v61  ;;  %v10243_v6 = vpack.i.bf16 %v9289_v11, %v9287_v20 }
 0x889   : > { %v4416_v63 = vmul.f32 1.442695, %v4398_v27 }
 0x88a   : > { %v4365_v0 = vpop.xlane.xlu1 %4364  ;;  %v4362_v45 = vpop.xlane.xlu0 %4361 }
 0x88b   : > { %v4401_v30 = vsub.f32 %v9335_v5, %v4365_v0  ;;  %v4400_v58 = vsub.f32 %v9329_v44, %v4362_v45  ;;  %7112 = vrot.lane.b32.xlu1 %v7111_v59, %s7844_s28 }
 0x88d   : > { %v4422_v9 = vmul.f32 1.442695, %v4401_v30  ;;  %v4420_v3 = vmul.f32 1.442695, %v4400_v58 }
 0x88e   : > { %v4374_v56 = vpop.xlane.xlu1 %4373  ;;  %v4359_v29 = vpop.xlane.xlu0 %4358 }
 0x88f   : > { %7450 = vpow2.f32 %v4422_v9  ;;  %v4399_v41 = vsub.f32 %v9327_v33, %v4359_v29  ;;  %7117 = vrot.lane.b32.xlu1 %v10243_v6, %s7843_s13  ;;  %v10244_v33 = vpack.i.bf16 %v9297_v49, %v9295_v52  ;;  %v4404_v52 = vsub.f32 %v9345_v17, %v4374_v56 }
 0x890   : > { %7452 = vpow2.f32 %v4420_v3  ;;  %7107 = vrot.lane.b32.xlu0 %v7106_v53, %s7844_s28  ;;  %v9471_v24 = vpop.eup %7446 }
 0x891   : > { %v4418_v44 = vmul.f32 1.442695, %v4399_v41  ;;  %7454 = vpow2.f32 %v4416_v63 }
 0x892   : > { %v4368_v5 = vpop.xlane.xlu0 %4367  ;;  %v4371_v12 = vpop.xlane.xlu1 %4370 }
 0x893   : > { %v4402_v62 = vsub.f32 %v9337_v60, %v4368_v5  ;;  %v4403_v40 = vsub.f32 %v9343_v14, %v4371_v12  ;;  %7122 = vrot.lane.b32.xlu1 %v10244_v33, %s7843_s13  ;;  %7456 = vpow2.f32 %v4418_v44  ;;  %v10245_v44 = vld [vmem:[#allocation31_spill] sm:$0xff]  ;;  %v4444_v33 = vsel %vm1395_vm2, %v9471_v24, 0.0 }
 0x894   : > { %v9479_v20 = vpop.eup %7448 }
 0x895   : > { %v4524_v11 = vpack.c.bf16 %v9479_v20, %v9471_v24  ;;  %v4424_v1 = vmul.f32 1.442695, %v4402_v62  ;;  %v4426_v47 = vmul.f32 1.442695, %v4403_v40  ;;  %v4447_v24 = vsel %vm1395_vm2, %v9479_v20, 0.0  ;;  %v10246_v20 = vld [vmem:[#allocation63_spill] sm:$0xff] }
 0x896   : > { %v3492_v32 = vpop.xlane.xlu0 %3491  ;;  %v9483_v25 = vpop.xlane.xlu1 %3488 }
 0x897   : > { %6892 = vmatmul.mubr.msk.bf16.vlgmr.msra.gmra.mxu0 %vm1395_vm2, %v4524_v11  ;;  %7458 = vpow2.f32 %v4424_v1 }
 0x898   : > { %6902 = vmatpush3.bf16.msra.mxu0 %v9243_v13  ;;  %6903 = vmatprep.mubr.msk.bf16.mxu0 %vm7841_vm0, %v10200_v57  ;;  %7460 = vpow2.f32 %v4426_v47  ;;  %v4428_v13 = vmul.f32 1.442695, %v4404_v52 }
 0x899   : > { %6913 = vmatprep.subr.bf16.mxu0 %v10200_v57  ;;  %7462 = vrcp.f32 %v3492_v32 }
 0x89a   : > { %v2506_v49 = vpop.xlane.xlu0 %2505  ;;  %v3495_v14 = vpop.xlane.xlu1 %3494 }
 0x89b   : > { %7464 = vrcp.f32 %v3495_v14 }
 0x89c   : > { %v9491_v60 = vpop.eup %7450  ;;  %7466 = vpow2.f32 %v4428_v13 }
 0x89d   : > { %v9493_v61 = vpop.eup %7452 }
 0x89e   : > { %v4526_v28 = vpack.c.bf16 %v9491_v60, %v9493_v61  ;;  %v4377_v51 = vpop.xlane.xlu0 %4376  ;;  %v4386_v7 = vpop.xlane.xlu1 %4385 }
 0x89f   : > { %v4405_v10 = vsub.f32 %v9351_v8, %v4377_v51  ;;  %v9498_v59 = vpop.eup %7454  ;;  %v4408_v41 = vsub.f32 %v9361_v21, %v4386_v7 }
 0x8a0   : > { %6904 = vmatmul.mubr.msk.bf16.vlgmr.msra.gmra.mxu0 %vm1395_vm2, %v4526_v28  ;;  %v9501_v17 = vpop.eup %7456 }
 0x8a1   : > { %v4430_v0 = vmul.f32 1.442695, %v4405_v10  ;;  %6914 = vmatpush3.bf16.msra.mxu0 %v9247_v15  ;;  %6915 = vmatprep.mubr.msk.bf16.mxu0 %vm7841_vm0, %v10200_v57  ;;  %v4525_v45 = vpack.c.bf16 %v9501_v17, %v9498_v59  ;;  %v4436_v21 = vmul.f32 1.442695, %v4408_v41 }
 0x8a2   : > { %v4380_v55 = vpop.xlane.xlu0 %4379  ;;  %v4383_v48 = vpop.xlane.xlu1 %4382  ;;  %6925 = vmatprep.subr.bf16.mxu0 %v10200_v57 }
 0x8a3   : > { %7468 = vpow2.f32 %v4430_v0  ;;  %v4406_v8 = vsub.f32 %v9353_v37, %v4380_v55  ;;  %v4407_v27 = vsub.f32 %v9359_v43, %v4383_v48  ;;  %6898 = vmatmul.mubr.msk.bf16.vlgmr.msra.gmra.mxu1 %vm1395_vm2, %v4525_v45  ;;  %v10247_v0 = vld [vmem:[#allocation64_spill] sm:$0xff] }
 0x8a4   : > { %v9512_v30 = vpop.eup %7458  ;;  %6908 = vmatpush3.bf16.msra.mxu1 %v9241_v2  ;;  %6909 = vmatprep.mubr.msk.bf16.mxu1 %vm7841_vm0, %v10200_v57  ;;  %7470 = vrcp.f32 %v2506_v49 }
 0x8a5   : > { %v4432_v15 = vmul.f32 1.442695, %v4406_v8  ;;  %v4434_v58 = vmul.f32 1.442695, %v4407_v27  ;;  %v9517_v42 = vpop.eup %7460  ;;  %6919 = vmatprep.subr.bf16.mxu1 %v10200_v57 }
 0x8a6   : > { %v2512_v22 = vpop.xlane.xlu0 %2511  ;;  %v2509_v9 = vpop.xlane.xlu1 %2508  ;;  %v4527_v3 = vpack.c.bf16 %v9517_v42, %v9512_v30 }
 0x8a7   : > { %v7463_v37 = vpop.eup %7462  ;;  %7472 = vpow2.f32 %v4432_v15  ;;  %v10248_v15 = vld [vmem:[#allocation65_spill] sm:$0xff] }
 0x8a8   : > { %7474 = vpow2.f32 %v4434_v58  ;;  %v7465_v43 = vpop.eup %7464  ;;  %v9523_v29 = vmul.f32 %v7463_v37, %v9303_v36 }
 0x8a9   : > { %7476 = vrcp.f32 %v2512_v22  ;;  %v9526_v53 = vmul.f32 %v7465_v43, %v9305_v23  ;;  %v1528_v23 = vsel %vm1395_vm2, %v10245_v44, 0.0  ;;  %v9538_v5 = vpop.eup %7466  ;;  %v10249_v22 = vld [vmem:[#allocation66_spill] sm:$0xff] }
 0x8aa   : > { %7478 = vrcp.f32 %v2509_v9  ;;  %v3498_v2 = vpop.xlane.xlu0 %3497  ;;  %v2515_v56 = vpop.xlane.xlu1 %2514 }
 0x8ab   : > { %7480 = vrcp.f32 %v2515_v56  ;;  %6910 = vmatmul.mubr.msk.bf16.vlgmr.msra.gmra.mxu1 %vm1395_vm2, %v4527_v3  ;;  %v7161_v63 = vpack.i.bf16 %v9526_v53, %v9523_v29  ;;  %v4462_v3 = vsel %vm1395_vm2, %v9512_v30, 0.0 }
 0x8ac   : > { %6920 = vmatpush3.bf16.msra.mxu1 %v9245_v19  ;;  %6921 = vmatprep.mubr.msk.bf16.mxu1 %vm7841_vm0, %v10200_v57  ;;  %7482 = vrcp.f32 %v3498_v2  ;;  %v4459_v2 = vsel %vm1395_vm2, %v9491_v60, 0.0  ;;  %v4468_v60 = vsel %vm1395_vm2, %v9538_v5, 0.0 }
 0x8ad   : > { %6931 = vmatprep.subr.bf16.mxu1 %v10200_v57 }
 0x8ae   : > { %v3504_v6 = vpop.xlane.xlu0 %3503  ;;  %v3501_v36 = vpop.xlane.xlu1 %3500 }
 0x8af   : > { %1529 = vadd.xlane.f32.xlu0 %v1528_v23  ;;  %7484 = vrcp.f32 %v3501_v36 }
 0x8b0   : > { %v9540_v12 = vpop.eup %7468  ;;  %7486 = vpow2.f32 %v4436_v21 }
 0x8b1   : > { %v4528_v19 = vpack.c.bf16 %v9540_v12, %v9538_v5  ;;  %v7471_v11 = vpop.eup %7470  ;;  %7488 = vrcp.f32 %v3504_v6  ;;  %v4471_v5 = vsel %vm1395_vm2, %v9540_v12, 0.0 }
 0x8b2   : > { %v4389_v62 = vpop.xlane.xlu0 %4388  ;;  %v4395_v40 = vpop.xlane.xlu1 %4394  ;;  %v9565_v10 = vmul.f32 %v7471_v11, %v10246_v20 }
 0x8b3   : > { %v4409_v1 = vsub.f32 %v9367_v35, %v4389_v62  ;;  %v4411_v47 = vsub.f32 %v9375_v18, %v4395_v40  ;;  %6916 = vmatmul.mubr.msk.bf16.vlgmr.msra.gmra.mxu0 %vm1395_vm2, %v4528_v19  ;;  %4445 = vadd.xlane.f32.xlu0 %v4444_v33 }
 0x8b4   : > { %v9549_v32 = vpop.eup %7472  ;;  %6926 = vmatpush3.bf16.msra.mxu0 %v9249_v16  ;;  %6927 = vmatprep.mubr.msk.bf16.mxu0 %vm7841_vm0, %v10200_v57  ;;  %v4450_v16 = vsel %vm1395_vm2, %v9498_v59, 0.0  ;;  %v4456_v59 = vsel %vm1395_vm2, %v9493_v61, 0.0 }
 0x8b5   : > { %v9554_v52 = vpop.eup %7474  ;;  %v4438_v49 = vmul.f32 1.442695, %v4409_v1  ;;  %v4442_v14 = vmul.f32 1.442695, %v4411_v47  ;;  %v4474_v33 = vsel %vm1395_vm2, %v9549_v32, 0.0 }
 0x8b6   : > { %v7477_v35 = vpop.eup %7476  ;;  %v4529_v18 = vpack.c.bf16 %v9554_v52, %v9549_v32  ;;  %v4392_v28 = vpop.xlane.xlu0 %4391  ;;  %v4477_v12 = vsel %vm1395_vm2, %v9554_v52, 0.0 }
 0x8b7   : > { %v3507_v13 = vpop.xlane.xlu1 %3506  ;;  %v7479_v51 = vpop.eup %7478  ;;  %7490 = vpow2.f32 %v4438_v49  ;;  %v4410_v7 = vsub.f32 %v9369_v31, %v4392_v28  ;;  %4451 = vadd.xlane.f32.xlu0 %v4450_v16  ;;  %4448 = vadd.xlane.f32.xlu1 %v4447_v24  ;;  %v4453_v31 = vsel %vm1395_vm2, %v9501_v17, 0.0  ;;  %v9578_v58 = vmul.f32 %v7477_v35, %v10248_v15 }
 0x8b8   : > { %6922 = vmatmul.mubr.msk.bf16.vlgmr.msra.gmra.mxu1 %vm1395_vm2, %v4529_v18  ;;  %v9568_v45 = vmul.f32 %v7479_v51, %v10247_v0  ;;  %v7481_v55 = vpop.eup %7480  ;;  %7492 = vrcp.f32 %v3507_v13  ;;  %v10251_v51 = vld [vmem:[#allocation36_spill] sm:$0xff]  ;;  %v10252_v0 = vmov 0  }
 0x8b9   : > { %v4440_v48 = vmul.f32 1.442695, %v4410_v7  ;;  %6932 = vmatpush3.bf16.msra.mxu1 %v9253_v39  ;;  %6933 = vmatprep.mubr.msk.bf16.mxu1 %vm7841_vm0, %v10200_v57  ;;  %7494 = vpow2.f32 %v4442_v14  ;;  %v9581_v9 = vmul.f32 %v7481_v55, %v10249_v22  ;;  %v7483_v37 = vpop.eup %7482 }
 0x8ba   : > { %v1494_v8 = vpop.xlane.xlu0 %1493  ;;  %v7176_v39 = vpack.i.bf16 %v9568_v45, %v9565_v10  ;;  %v9592_v56 = vmul.f32 %v7483_v37, %v9307_v26  ;;  %v4465_v26 = vsel %vm1395_vm2, %v9517_v42, 0.0 }
 0x8bb   : > { %v1497_v27 = vpop.xlane.xlu1 %1496  ;;  %7496 = vpow2.f32 %v4440_v48  ;;  %4457 = vadd.xlane.f32.xlu0 %v4456_v59  ;;  %4454 = vadd.xlane.f32.xlu1 %v4453_v31  ;;  %v7181_v57 = vpack.i.bf16 %v9581_v9, %v9578_v58  ;;  %v10253_v31 = vld [vmem:[#allocation37_spill] sm:$0xff] }
 0x8bc   : > { %7498 = vrcp.f32 %v1494_v8  ;;  %v7485_v61 = vpop.eup %7484 }
 0x8bd   : > { %7500 = vrcp.f32 %v1497_v27  ;;  %v9595_v41 = vmul.f32 %v7485_v61, %v9309_v4  ;;  %v7487_v36 = vpop.eup %7486  ;;  %v10254_v27 = vld [vmem:[#allocation38_spill] sm:$0xff] }
 0x8be   : > { %v1500_v17 = vpop.xlane.xlu0 %1499  ;;  %v7489_v4 = vpop.eup %7488  ;;  %v4480_v28 = vsel %vm1395_vm2, %v7487_v36, 0.0 }
 0x8bf   : > { %v1503_v43 = vpop.xlane.xlu1 %1502  ;;  %7502 = vrcp.f32 %v1500_v17  ;;  %4463 = vadd.xlane.f32.xlu0 %v4462_v3  ;;  %4460 = vadd.xlane.f32.xlu1 %v4459_v2  ;;  %v7186_v6 = vpack.i.bf16 %v9595_v41, %v9592_v56  ;;  %v9613_v42 = vmul.f32 %v7489_v4, %v9311_v34  ;;  %v10250_v34 = vld [vmem:[#allocation35_spill] sm:$0xff] }
 0x8c0   : > { %7504 = vrcp.f32 %v1503_v43 }
 0x8c2   : > { %v9599_v44 = vpop.xlane.xlu0 %1505 }
 0x8c3   : > { %v9601_v30 = vpop.xlane.xlu1 %1508  ;;  %4469 = vadd.xlane.f32.xlu0 %v4468_v60  ;;  %4466 = vadd.xlane.f32.xlu1 %v4465_v26  ;;  %7506 = vrcp.f32 %v9599_v44  ;;  %v10256_v44 = vld [vmem:[#allocation40_spill] sm:$0xff] }
 0x8c4   : > { %v7491_v23 = vpop.eup %7490  ;;  %7508 = vrcp.f32 %v9601_v30  ;;  %v10257_v30 = vld [vmem:[#allocation41_spill] sm:$0xff] }
 0x8c5   : > { %v4530_v19 = vpack.c.bf16 %v7491_v23, %v7487_v36  ;;  %v7493_v21 = vpop.eup %7492  ;;  %v4483_v2 = vsel %vm1395_vm2, %v7491_v23, 0.0 }
 0x8c6   : > { %v1512_v62 = vpop.xlane.xlu0 %1511  ;;  %v7495_v11 = vpop.eup %7494  ;;  %v9616_v1 = vmul.f32 %v7493_v21, %v9313_v38 }
 0x8c7   : > { %v1515_v40 = vpop.xlane.xlu1 %1514  ;;  %6928 = vmatmul.mubr.msk.bf16.vlgmr.msra.gmra.mxu0 %vm1395_vm2, %v4530_v19  ;;  %4475 = vadd.xlane.f32.xlu0 %v4474_v33  ;;  %v4489_v33 = vsel %vm1395_vm2, %v7495_v11, 0.0  ;;  %7510 = vrcp.f32 %v1512_v62 }
 0x8c8   : > { %v7497_v47 = vpop.eup %7496  ;;  %4472 = vadd.xlane.f32.xlu1 %v4471_v5  ;;  %v7191_v32 = vpack.i.bf16 %v9616_v1, %v9613_v42  ;;  %7512 = vrcp.f32 %v1515_v40  ;;  %v10258_v40 = vld [vmem:[#allocation42_spill] sm:$0xff] }
 0x8c9   : > { %v7499_v49 = vpop.eup %7498  ;;  %v4531_v24 = vpack.c.bf16 %v7495_v11, %v7497_v47  ;;  %v4486_v61 = vsel %vm1395_vm2, %v7497_v47, 0.0 }
 0x8ca   : > { %v7501_v35 = vpop.eup %7500  ;;  %v7088_v18 = vpop.permute.xlu0 %7087  ;;  %v1932_v13 = vmul.f32 %v7499_v49, %v10250_v34 }
 0x8cb   : > { %v7093_v14 = vpop.permute.xlu1 %7092  ;;  %v7090_v16 = vunpack.i.h.bf16 %v7088_v18  ;;  %v7089_v38 = vunpack.i.l.bf16 %v7088_v18  ;;  %v1933_v7 = vmul.f32 %v7501_v35, %v10251_v51  ;;  %4481 = vadd.xlane.f32.xlu0 %v4480_v28  ;;  %6934 = vmatmul.mubr.msk.bf16.vlgmr.msra.gmra.mxu1 %vm1395_vm2, %v4531_v24 }
 0x8cc   : > { %v7503_v20 = vpop.eup %7502  ;;  %4478 = vadd.xlane.f32.xlu1 %v4477_v12  ;;  %5620 = vmatprep.mubr.bf16.mxu1 %v10252_v0  ;;  %v7094_v8 = vunpack.i.l.bf16 %v7093_v14  ;;  %v7095_v22 = vunpack.i.h.bf16 %v7093_v14  ;;  %v10255_v12 = vld [vmem:[#allocation39_spill] sm:$0xff] }
 0x8cd   : > { %v7505_v55 = vpop.eup %7504  ;;  %v5116_v48 = vsel %vm1018_vm1, %v1932_v13, %v7089_v38  ;;  %v5117_v59 = vsel %vm1018_vm1, %v1933_v7, %v7090_v16  ;;  %v1934_v52 = vmul.f32 %v7503_v20, %v10253_v31 }
 0x8ce   : > { %v1935_v15 = vmul.f32 %v7505_v55, %v10254_v27 }
 0x8cf   : > { %v7098_v37 = vpop.permute.xlu1 %7097  ;;  %v5118_v17 = vsel %vm1018_vm1, %v1934_v52, %v7094_v8  ;;  %4487 = vadd.xlane.f32.xlu0 %v4486_v61 }
 0x8d0   : > { %v7100_v43 = vunpack.i.h.bf16 %v7098_v37  ;;  %v7099_v3 = vunpack.i.l.bf16 %v7098_v37  ;;  %v5119_v36 = vsel %vm1018_vm1, %v1935_v15, %v7095_v22  ;;  %4484 = vadd.xlane.f32.xlu1 %v4483_v2  ;;  %v7507_v24 = vpop.eup %7506 }
 0x8d1   : > { %v7509_v35 = vpop.eup %7508  ;;  %v1936_v34 = vmul.f32 %v7507_v24, %v10255_v12  ;;  %v7240_v24 = vld [vmem:[#allocation9 + $0x28] sm:$0xff]   ;;  %v7242_v12 = vld [vmem:[#allocation9 + $0x18] sm:$0xff]  }
 0x8d2   : > { %v9636_v60 = vsel %vm5132_vm3, %v5117_v59, %v7100_v43  ;;  %v9639_v26 = vsel %vm5132_vm3, %v5116_v48, %v7099_v3  ;;  %v1937_v16 = vmul.f32 %v7509_v35, %v10256_v44 }
 0x8d3   : > { %v7103_v4 = vpop.permute.xlu1 %7102 }
 0x8d4   : > { %v7105_v19 = vunpack.i.h.bf16 %v7103_v4  ;;  %v7104_v21 = vunpack.i.l.bf16 %v7103_v4  ;;  %4490 = vadd.xlane.f32.xlu1 %v4489_v33  ;;  %v7511_v11 = vpop.eup %7510  ;;  %v7238_v4 = vld [vmem:[#allocation9 + $0x38] sm:$0xff]  }
 0x8d5   : > { %v7513_v28 = vpop.eup %7512  ;;  %v1938_v62 = vmul.f32 %v7511_v11, %v10257_v30  ;;  %6937 = vmatprep.subr.bf16.mxu0 %v7238_v4  ;;  %v7241_v11 = vld [vmem:[#allocation9 + $0x20] sm:$0xff]  }
 0x8d6   : > { %v9643_v5 = vsel %vm5132_vm3, %v5118_v17, %v7104_v21  ;;  %v9646_v23 = vsel %vm5132_vm3, %v5119_v36, %v7105_v19  ;;  %v1939_v38 = vmul.f32 %v7513_v28, %v10258_v40  ;;  %v7239_v19 = vld [vmem:[#allocation9 + $0x30] sm:$0xff]   ;;  %6938 = vmatpush3.bf16.msra.mxu0 %v7238_v4  ;;  %v7244_v40 = vld [vmem:[#allocation9 + $0x8] sm:$0xff]  }
 0x8d7   : > { %6939 = vmatprep.subr.bf16.mxu0 %v7239_v19 }
 0x8da   : > { %6940 = vmatpush3.bf16.msra.mxu0 %v7239_v19 }
 0x8db   : > { %6941 = vmatprep.subr.bf16.mxu0 %v7240_v24 }
 0x8de   : > { %6942 = vmatpush3.bf16.msra.mxu0 %v7240_v24 }
 0x8df   : > { %6943 = vmatprep.subr.bf16.mxu0 %v7241_v11 }
 0x8e2   : > { %6944 = vmatpush3.bf16.msra.mxu0 %v7241_v11 }
 0x8e3   : > { %6945 = vmatprep.subr.bf16.mxu0 %v7242_v12 }
 0x8e6   : > { %6946 = vmatpush3.bf16.msra.mxu0 %v7242_v12 }
 0x8fb   : > { %v9650_v47 = vpop.xlane.xlu0 %1517 }
 0x8ff   : > { %v9652_v49 = vpop.xlane.xlu0 %1523 }
 0x903   : > { %v9654_v18 = vpop.xlane.xlu0 %1526  ;;  %v9656_v14 = vpop.xlane.xlu1 %1520 }
 0x907   : > { %v7108_v13 = vpop.permute.xlu0 %7107  ;;  %v7113_v51 = vpop.permute.xlu1 %7112 }
 0x908   : > { %v7110_v7 = vunpack.i.h.bf16 %v7108_v13  ;;  %v7109_v20 = vunpack.i.l.bf16 %v7108_v13  ;;  %v7115_v55 = vunpack.i.h.bf16 %v7113_v51  ;;  %v7114_v48 = vunpack.i.l.bf16 %v7113_v51  ;;  %v7243_v13 = vld [vmem:[#allocation9 + $0x10] sm:$0xff]  }
 0x909   : > { %6947 = vmatprep.subr.bf16.mxu0 %v7243_v13 }
 0x90a   : > { %v5120_v59 = vsel %vm1018_vm1, %v1936_v34, %v7109_v20  ;;  %v5121_v31 = vsel %vm1018_vm1, %v1937_v16, %v7110_v7  ;;  %v5123_v52 = vsel %vm1018_vm1, %v1939_v38, %v7115_v55  ;;  %v5122_v8 = vsel %vm1018_vm1, %v1938_v62, %v7114_v48  ;;  %6948 = vmatpush3.bf16.msra.mxu0 %v7243_v13 }
 0x90b   : > { %v7118_v27 = vpop.permute.xlu1 %7117  ;;  %6949 = vmatprep.subr.bf16.mxu0 %v7244_v40 }
 0x90c   : > { %v7120_v15 = vunpack.i.h.bf16 %v7118_v27  ;;  %v7119_v22 = vunpack.i.l.bf16 %v7118_v27  ;;  %v7245_v27 = vld [vmem:[#allocation9] sm:$0xff]  }
 0x90e   : > { %v9667_v37 = vsel %vm5132_vm3, %v5121_v31, %v7120_v15  ;;  %v9670_v61 = vsel %vm5132_vm3, %v5120_v59, %v7119_v22  ;;  %6950 = vmatpush3.bf16.msra.mxu0 %v7244_v40 }
 0x90f   : > { %v7123_v17 = vpop.permute.xlu1 %7122  ;;  %6951 = vmatprep.subr.bf16.mxu0 %v7245_v27 }
 0x910   : > { %v7125_v43 = vunpack.i.h.bf16 %v7123_v17  ;;  %v7124_v3 = vunpack.i.l.bf16 %v7123_v17 }
 0x912   : > { %v9673_v2 = vsel %vm5132_vm3, %v5122_v8, %v7124_v3  ;;  %v9676_v36 = vsel %vm5132_vm3, %v5123_v52, %v7125_v43  ;;  %6952 = vmatpush3.bf16.msra.mxu0 %v7245_v27 }
 0x938   : > { %v9678_v21 = vpop.xlane.xlu0 %1529 }
 0x93c   : > { %v4446_v33 = vpop.xlane.xlu0 %4445 }
 0x93d   : > { %7514 = vrcp.f32 %v4446_v33 }
 0x940   : > { %v4449_v35 = vpop.xlane.xlu1 %4448  ;;  %v4452_v28 = vpop.xlane.xlu0 %4451 }
 0x941   : > { %7516 = vrcp.f32 %v4449_v35 }
 0x942   : > { %7518 = vrcp.f32 %v4452_v28 }
 0x944   : > { %v4455_v34 = vpop.xlane.xlu1 %4454  ;;  %v9680_v16 = vpop.xlane.xlu0 %4457 }
 0x945   : > { %7520 = vrcp.f32 %v4455_v34 }
 0x948   : > { %v4461_v51 = vpop.xlane.xlu1 %4460  ;;  %v9682_v31 = vpop.xlane.xlu0 %4463 }
 0x94a   : > { %v7515_v62 = vpop.eup %7514 }
 0x94c   : > { %v4467_v8 = vpop.xlane.xlu1 %4466  ;;  %v4470_v43 = vpop.xlane.xlu0 %4469 }
 0x94d   : > { %7522 = vrcp.f32 %v4470_v43 }
 0x94e   : > { %v7517_v38 = vpop.eup %7516 }
 0x94f   : > { %v7519_v19 = vpop.eup %7518 }
 0x951   : > { %v4473_v33 = vpop.xlane.xlu1 %4472 }
 0x952   : > { %v7521_v24 = vpop.eup %7520  ;;  %7524 = vrcp.f32 %v4473_v33 }
 0x957   : > { %v4572_v44 = vpop.f32.mrf.mxu0 }
 0x958   : > { %v4908_v20 = vmul.f32 %v7515_v62, %v4572_v44 }
 0x959   : > { %v6893_v30 = vpop.f32.mrf.mxu0 }
 0x95b   : > { %v4575_v7 = vpop.f32.mrf.mxu0 }
 0x95c   : > { %v4909_v55 = vmul.f32 %v7517_v38, %v4575_v7  ;;  %v4476_v38 = vpop.xlane.xlu0 %4475  ;;  %v4479_v7 = vpop.xlane.xlu1 %4478 }
 0x95d   : > { %v6894_v48 = vpop.f32.mrf.mxu0 }
 0x95e   : > { %v7126_v59 = vpack.i.bf16 %v4909_v55, %v4908_v20  ;;  %v7523_v55 = vpop.eup %7522 }
 0x95f   : > { %v7525_v48 = vpop.eup %7524 }
 0x960   : > { %v9684_v52 = vpop.f32.mrf.mxu0  ;;  %7127 = vrot.lane.b32.xlu0 %v7126_v59, %s7842_s15  ;;  %v4485_v33 = vpop.xlane.xlu1 %4484 }
 0x962   : > { %v6905_v15 = vpop.f32.mrf.mxu0 }
 0x963   : > { %v4619_v22 = vpop.f32.mrf.mxu1 }
 0x964   : > { %v4669_v17 = vpop.f32.mrf.mxu0  ;;  %v4910_v11 = vmul.f32 %v7519_v19, %v4619_v22 }
 0x965   : > { %v6899_v3 = vpop.f32.mrf.mxu1 }
 0x966   : > { %v6906_v4 = vpop.f32.mrf.mxu0  ;;  %v4482_v3 = vpop.xlane.xlu0 %4481 }
 0x967   : > { %v4622_v35 = vpop.f32.mrf.mxu1  ;;  %7526 = vrcp.f32 %v4482_v3 }
 0x968   : > { %v4911_v28 = vmul.f32 %v7521_v24, %v4622_v35  ;;  %7528 = vrcp.f32 %v4485_v33 }
 0x969   : > { %v6900_v12 = vpop.f32.mrf.mxu1  ;;  %7530 = vrcp.f32 %v4461_v51 }
 0x96a   : > { %v7131_v34 = vpack.i.bf16 %v4911_v28, %v4910_v11  ;;  %v10259_v11 = vld [vmem:[#allocation33_spill] sm:$0xff]  ;;  %7532 = vrcp.f32 %v9680_v16 }
 0x96b   : > { %v4713_v13 = vpop.f32.mrf.mxu1  ;;  %v1534_v28 = vsel %vm1395_vm2, %v10259_v11, 0.0  ;;  %7534 = vrcp.f32 %v4467_v8 }
 0x96c   : > { %7132 = vrot.lane.b32.xlu1 %v7131_v34, %s7842_s15  ;;  %7536 = vrcp.f32 %v9456_v54 }
 0x96d   : > { %v6911_v44 = vpop.f32.mrf.mxu1  ;;  %7538 = vrcp.f32 %v9682_v31 }
 0x96e   : > { %7540 = vrcp.f32 %v9273_v46  ;;  %v10262_v46 = vld [vmem:[#allocation61_spill] sm:$0xff] }
 0x96f   : > { %v4716_v30 = vpop.f32.mrf.mxu1  ;;  %7542 = vrcp.f32 %v9483_v25 }
 0x970   : > { %7544 = vrcp.f32 %v9452_v50 }
 0x971   : > { %v6912_v62 = vpop.f32.mrf.mxu1  ;;  %7546 = vrcp.f32 %v4479_v7  ;;  %v4491_v7 = vpop.xlane.xlu1 %4490 }
 0x972   : > { %7548 = vrcp.f32 %v4476_v38 }
 0x973   : > { %v4760_v40 = vpop.f32.mrf.mxu0  ;;  %7550 = vrcp.f32 %v4491_v7 }
 0x974   : > { %v9688_v27 = vmul.f32 %v7523_v55, %v4760_v40  ;;  %v7527_v44 = vpop.eup %7526 }
 0x975   : > { %v6917_v20 = vpop.f32.mrf.mxu0  ;;  %v7529_v62 = vpop.eup %7528 }
 0x976   : > { %v7531_v3 = vpop.eup %7530 }
 0x977   : > { %v4763_v59 = vpop.f32.mrf.mxu0  ;;  %v4913_v16 = vmul.f32 %v7531_v3, %v4669_v17  ;;  %v7533_v33 = vpop.eup %7532 }
 0x978   : > { %v9690_v15 = vmul.f32 %v7525_v48, %v4763_v59  ;;  %v9692_v22 = vpop.f32.mrf.mxu1  ;;  %v7535_v54 = vpop.eup %7534 }
 0x979   : > { %v6918_v43 = vpop.f32.mrf.mxu0  ;;  %v7537_v17 = vpop.eup %7536 }
 0x97a   : > { %v7166_v4 = vpack.i.bf16 %v9690_v15, %v9688_v27  ;;  %v6923_v19 = vpop.f32.mrf.mxu1  ;;  %v7539_v31 = vpop.eup %7538 }
 0x97c   : > { %v4810_v24 = vpop.f32.mrf.mxu1 }
 0x97e   : > { %v6924_v35 = vpop.f32.mrf.mxu1 }
 0x97f   : > { %1535 = vadd.xlane.f32.xlu0 %v1534_v28  ;;  %v10260_v35 = vld [vmem:[#allocation32_spill] sm:$0xff]  ;;  %v4912_v28 = vmul.f32 %v7533_v33, %v9684_v52  ;;  %v10263_v33 = vld [vmem:[#allocation70_spill] sm:$0xff] }
 0x980   : > { %v1531_v11 = vsel %vm1395_vm2, %v10260_v35, 0.0 }
 0x981   : > { %v7136_v8 = vpack.i.bf16 %v4913_v16, %v4912_v28 }
 0x987   : > { %v4854_v12 = vpop.f32.mrf.mxu0 }
 0x988   : > { %v9699_v55 = vmul.f32 %v7527_v44, %v4854_v12  ;;  %v4914_v44 = vmul.f32 %v7539_v31, %v4713_v13  ;;  %v10266_v31 = vld [vmem:[#allocation67_spill] sm:$0xff] }
 0x989   : > { %v6929_v34 = vpop.f32.mrf.mxu0 }
 0x98a   : > { %v4915_v34 = vmul.f32 %v7535_v54, %v4716_v30  ;;  %v10264_v30 = vld [vmem:[#allocation69_spill] sm:$0xff] }
 0x98b   : > { %v4857_v40 = vpop.f32.mrf.mxu0  ;;  %v4901_v20 = vpop.f32.mrf.mxu1 }
 0x98c   : > { %v9701_v48 = vmul.f32 %v7529_v62, %v4857_v40  ;;  %v7541_v62 = vpop.eup %7540  ;;  %v7146_v52 = vpack.i.bf16 %v4915_v34, %v4914_v44  ;;  %v10261_v40 = vld [vmem:[#allocation62_spill] sm:$0xff]  ;;  %v10267_v44 = vld [vmem:[#allocation68_spill] sm:$0xff] }
 0x98d   : > { %v6930_v59 = vpop.f32.mrf.mxu0  ;;  %v6935_v43 = vpop.f32.mrf.mxu1  ;;  %v2950_v25 = vmul.f32 %v7541_v62, %v10262_v46 }
 0x98e   : > { %v7196_v19 = vpack.i.bf16 %v9701_v48, %v9699_v55  ;;  %v2951_v59 = vmul.f32 %v7537_v17, %v10261_v40  ;;  %v7543_v43 = vpop.eup %7542  ;;  %v10265_v17 = vld [vmem:[#allocation34_spill] sm:$0xff]  ;;  %v10268_v40 = vld [vmem:[#allocation59_spill] sm:$0xff] }
 0x98f   : > { %v4904_v51 = vpop.f32.mrf.mxu1  ;;  %v7545_v3 = vpop.eup %7544  ;;  %v3933_v50 = vmul.f32 %v7543_v43, %v10263_v33  ;;  %v1537_v34 = vsel %vm1395_vm2, %v10265_v17, 0.0  ;;  %v10269_v43 = vld [vmem:[#allocation60_spill] sm:$0xff] }
 0x990   : > { %1532 = vadd.xlane.f32.xlu1 %v1531_v11  ;;  %v7151_v16 = vpack.i.bf16 %v2951_v59, %v2950_v25  ;;  %v3932_v35 = vmul.f32 %v7545_v3, %v10264_v30  ;;  %v4488_v11 = vpop.xlane.xlu0 %4487  ;;  %v7547_v38 = vpop.eup %7546 }
 0x991   : > { %v6936_v12 = vpop.f32.mrf.mxu1  ;;  %7552 = vrcp.f32 %v4488_v11  ;;  %v4919_v28 = vmul.f32 %v7547_v38, %v4810_v24  ;;  %v10271_v38 = vld [vmem:[#allocation46_spill] sm:$0xff] }
 0x992   : > { %v7156_v13 = vpack.i.bf16 %v3933_v50, %v3932_v35  ;;  %v7549_v12 = vpop.eup %7548  ;;  %7554 = vrcp.f32 %v10266_v31 }
 0x993   : > { %7556 = vrcp.f32 %v10267_v44 }
 0x994   : > { %7558 = vrcp.f32 %v9652_v49 }
 0x995   : > { %7137 = vrot.lane.b32.xlu0 %v7136_v8, %s7842_s15  ;;  %v4918_v8 = vmul.f32 %v7549_v12, %v9692_v22  ;;  %v7551_v22 = vpop.eup %7550  ;;  %7560 = vrcp.f32 %v9654_v18 }
 0x996   : > { %v4923_v24 = vmul.f32 %v7551_v22, %v4904_v51  ;;  %7562 = vrcp.f32 %v9650_v47  ;;  %v10273_v47 = vld [vmem:[#allocation44_spill] sm:$0xff] }
 0x997   : > { %v7171_v54 = vpack.i.bf16 %v4919_v28, %v4918_v8  ;;  %7564 = vrcp.f32 %v9656_v14 }
 0x99e   : > { %v7553_v29 = vpop.eup %7552 }
 0x99f   : > { %v4922_v53 = vmul.f32 %v7553_v29, %v4901_v20  ;;  %v7555_v62 = vpop.eup %7554 }
 0x9a0   : > { %v2948_v59 = vmul.f32 %v7555_v62, %v10268_v40 }
 0x9a1   : > { %7147 = vrot.lane.b32.xlu1 %v7146_v52, %s7842_s15  ;;  %v7557_v52 = vpop.eup %7556 }
 0x9a2   : > { %v2949_v46 = vmul.f32 %v7557_v52, %v10269_v43  ;;  %v7559_v33 = vpop.eup %7558  ;;  %v10272_v52 = vld [vmem:[#allocation43_spill] sm:$0xff] }
 0x9a3   : > { %v7561_v50 = vpop.eup %7560 }
 0x9a4   : > { %v7141_v58 = vpack.i.bf16 %v2949_v46, %v2948_v59  ;;  %v1943_v28 = vmul.f32 %v7561_v50, %v10271_v38  ;;  %v7563_v29 = vpop.eup %7562 }
 0x9a5   : > { %7152 = vrot.lane.b32.xlu1 %v7151_v16, %s7844_s28  ;;  %v1940_v40 = vmul.f32 %v7563_v29, %v10272_v52 }
 0x9a9   : > { %7157 = vrot.lane.b32.xlu1 %v7156_v13, %s7843_s13  ;;  %v10270_v13 = vld [vmem:[#allocation45_spill] sm:$0xff] }
 0x9aa   : > { %v1942_v11 = vmul.f32 %v7559_v33, %v10270_v13  ;;  %v10275_v33 = vld [vmem:[#allocation47_spill] sm:$0xff] }
 0x9ad   : > { %7162 = vrot.lane.b32.xlu1 %v7161_v63, %s7843_s13  ;;  %v7201_v63 = vpack.i.bf16 %v4923_v24, %v4922_v53  ;;  %v7565_v53 = vpop.eup %7564 }
 0x9ae   : > { %v1941_v59 = vmul.f32 %v7565_v53, %v10273_v47 }
 0x9b1   : > { %7172 = vrot.lane.b32.xlu1 %v7171_v54, %s7842_s15 }
 0x9b4   : > { %1538 = vadd.xlane.f32.xlu0 %v1537_v34 }
 0x9b5   : > { %7182 = vrot.lane.b32.xlu1 %v7181_v57, %s7844_s28 }
 0x9b9   : > { %7192 = vrot.lane.b32.xlu1 %v7191_v32, %s7843_s13 }
 0x9bd   : > { %7202 = vrot.lane.b32.xlu1 %v7201_v63, %s7842_s15 }
 0x9ca   : > { %7142 = vrot.lane.b32.xlu0 %v7141_v58, %s7844_s28 }
 0x9ce   : > { %7167 = vrot.lane.b32.xlu0 %v7166_v4, %s7842_s15 }
 0x9d2   : > { %v7128_v9 = vpop.permute.xlu0 %7127  ;;  %7177 = vrot.lane.b32.xlu0 %v7176_v39, %s7844_s28  ;;  %s6014_s28 = scalar_lea.sflag [#allocation6], %s8063_s3 }
 0x9d3   : > { %v7130_v57 = vunpack.i.h.bf16 %v7128_v9  ;;  %v7129_v42 = vunpack.i.l.bf16 %v7128_v9 }
 0x9d5   : > { %v5150_v1 = vsel %vm5149_vm4, %v9639_v26, %v7129_v42  ;;  %v5151_v32 = vsel %vm5149_vm4, %v9636_v60, %v7130_v57 }
 0x9d6   : > { %7187 = vrot.lane.b32.xlu0 %v7186_v6, %s7843_s13  ;;  %v5166_v27 = vpack.c.bf16 %v5151_v32, %v5150_v1  ;;  %s10057_s13 = scalar_lea.hbm %s10115_s11, %s6296_s5 }
 0x9d8   : > { %6953 = vmatprep.mubr.bf16.mxu0 %v5166_v27 }
 0x9da   : > { %7197 = vrot.lane.b32.xlu0 %v7196_v19, %s7842_s15 }
 0x9de   : > { %v7133_v10 = vpop.permute.xlu1 %7132 }
 0x9df   : > { %v7135_v45 = vunpack.i.h.bf16 %v7133_v10  ;;  %v7134_v39 = vunpack.i.l.bf16 %v7133_v10 }
 0x9e1   : > { %v5153_v26 = vsel %vm5149_vm4, %v9646_v23, %v7135_v45  ;;  %v5152_v60 = vsel %vm5149_vm4, %v9643_v5, %v7134_v39 }
 0x9e2   : > { %v5167_v15 = vpack.c.bf16 %v5153_v26, %v5152_v60 }
 0x9e4   : > { %6954 = vmatmul.mubr.bf16.vlgmr.msra.gmra.mxu0 %v5167_v15 }
 0xa08   : > { %v1536_v56 = vpop.xlane.xlu0 %1535 }
 0xa0c   : > { %v7138_v41 = vpop.permute.xlu0 %7137 }
 0xa0d   : > { %v7140_v6 = vunpack.i.h.bf16 %v7138_v41  ;;  %v7139_v4 = vunpack.i.l.bf16 %v7138_v41 }
 0xa0f   : > { %v5154_v20 = vsel %vm5149_vm4, %v9670_v61, %v7139_v4  ;;  %v5155_v55 = vsel %vm5149_vm4, %v9667_v37, %v7140_v6  ;;  %v10274_v6 = vld [vmem:[#allocation50_spill] sm:$0xff] }
 0xa10   : > { %v5168_v48 = vpack.c.bf16 %v5155_v55, %v5154_v20 }
 0xa12   : > { %6957 = vmatprep.mubr.bf16.mxu0 %v5168_v48 }
 0xa19   : > { %v1533_v19 = vpop.xlane.xlu1 %1532 }
 0xa1d   : > { %v7148_v5 = vpop.permute.xlu1 %7147 }
 0xa1e   : > { %v7150_v23 = vunpack.i.h.bf16 %v7148_v5  ;;  %v7149_v51 = vunpack.i.l.bf16 %v7148_v5 }
 0xa20   : > { %v5157_v25 = vsel %vm5149_vm4, %v9676_v36, %v7150_v23  ;;  %v5156_v3 = vsel %vm5149_vm4, %v9673_v2, %v7149_v51 }
 0xa21   : > { %v5169_v61 = vpack.c.bf16 %v5157_v25, %v5156_v3  ;;  %v7153_v16 = vpop.permute.xlu1 %7152 }
 0xa22   : > { %v7155_v35 = vunpack.i.h.bf16 %v7153_v16  ;;  %v7154_v49 = vunpack.i.l.bf16 %v7153_v16 }
 0xa23   : > { %6958 = vmatmul.mubr.bf16.gmra.mxu0 %v5169_v61 }
 0xa24   : > { %v5127_v36 = vsel %vm1018_vm1, %v1943_v28, %v7155_v35  ;;  %v5126_v2 = vsel %vm1018_vm1, %v1942_v11, %v7154_v49 }
 0xa25   : > { %v7158_v37 = vpop.permute.xlu1 %7157 }
 0xa26   : > { %v7160_v9 = vunpack.i.h.bf16 %v7158_v37  ;;  %v7159_v57 = vunpack.i.l.bf16 %v7158_v37 }
 0xa29   : > { %v7163_v30 = vpop.permute.xlu1 %7162 }
 0xa2a   : > { %v7165_v7 = vunpack.i.h.bf16 %v7163_v30  ;;  %v7164_v18 = vunpack.i.l.bf16 %v7163_v30  ;;  %v10276_v30 = vld [vmem:[#allocation48_spill] sm:$0xff] }
 0xa2c   : > { %v5143_v17 = vsel %vm5132_vm3, %v5126_v2, %v7164_v18  ;;  %v5144_v34 = vsel %vm5132_vm3, %v5127_v36, %v7165_v7  ;;  %v10277_v7 = vld [vmem:[#allocation49_spill] sm:$0xff] }
 0xa2d   : > { %v7173_v12 = vpop.permute.xlu1 %7172 }
 0xa2e   : > { %v7175_v8 = vunpack.i.h.bf16 %v7173_v12  ;;  %v7174_v54 = vunpack.i.l.bf16 %v7173_v12 }
 0xa30   : > { %v5161_v31 = vsel %vm5149_vm4, %v5144_v34, %v7175_v8  ;;  %v5160_v44 = vsel %vm5149_vm4, %v5143_v17, %v7174_v54 }
 0xa31   : > { %v5171_v22 = vpack.c.bf16 %v5161_v31, %v5160_v44  ;;  %v7183_v62 = vpop.permute.xlu1 %7182 }
 0xa32   : > { %v7185_v41 = vunpack.i.h.bf16 %v7183_v62  ;;  %v7184_v3 = vunpack.i.l.bf16 %v7183_v62  ;;  %v9815_v62 = vld [vmem:[%s10108_s4] ss:$0 sm:$0xff] }
 0xa35   : > { %v7193_v10 = vpop.permute.xlu1 %7192 }
 0xa36   : > { %v7194_v37 = vunpack.i.l.bf16 %v7193_v10 }
 0xa39   : > { %v7203_v5 = vpop.permute.xlu1 %7202 }
 0xa3a   : > { %v7205_v13 = vunpack.i.h.bf16 %v7203_v5  ;;  %v7204_v11 = vunpack.i.l.bf16 %v7203_v5  ;;  %v7263_v5 = vld [vmem:[#allocation10 + $0x24] ss:$8 sps:$4 sm:$0xff]  }
 0xa3d   : > { %v1539_v24 = vpop.xlane.xlu0 %1538 }
 0xa3e   : > { %7566 = vrcp.f32 %v1539_v24 }
 0xa3f   : > { %7568 = vrcp.f32 %v9678_v21 }
 0xa40   : > { %7570 = vrcp.f32 %v1533_v19  ;;  %v7195_v19 = vunpack.i.h.bf16 %v7193_v10  ;;  %v7249_v10 = vld [vmem:[#allocation10 + $0x60] ss:$8 sps:$4 sm:$0xff]  }
 0xa41   : > { %7572 = vrcp.f32 %v1536_v56  ;;  %v7143_v63 = vpop.permute.xlu0 %7142 }
 0xa42   : > { %v7145_v43 = vunpack.i.h.bf16 %v7143_v63  ;;  %v7144_v46 = vunpack.i.l.bf16 %v7143_v63 }
 0xa44   : > { %v5125_v58 = vsel %vm1018_vm1, %v1941_v59, %v7145_v43  ;;  %v5124_v14 = vsel %vm1018_vm1, %v1940_v40, %v7144_v46  ;;  %v7246_v43 = vld [vmem:[#allocation10 + $0x70] ss:$8 sps:$4 sm:$0xff]   ;;  %v7248_v46 = vld [vmem:[#allocation10 + $0x74] ss:$8 sps:$4 sm:$0xff]  }
 0xa45   : > { %v7168_v42 = vpop.permute.xlu0 %7167  ;;  %v5141_v21 = vsel %vm5132_vm3, %v5124_v14, %v7159_v57  ;;  %v5142_v27 = vsel %vm5132_vm3, %v5125_v58, %v7160_v9  ;;  %v7606_v58 = vld [vmem:[%s8069_s10] sm:$0xff]  ;;  %5588 = vmatprep.subr.bf16.mxu1 %v7248_v46 }
 0xa46   : > { %v7170_v1 = vunpack.i.h.bf16 %v7168_v42  ;;  %v7169_v32 = vunpack.i.l.bf16 %v7168_v42  ;;  %v7251_v9 = vld [vmem:[#allocation10 + $0x64] ss:$8 sps:$4 sm:$0xff]   ;;  %v7607_v42 = vld [vmem:[%s8069_s10 + $0x10] sm:$0xff]  ;;  %5589 = vmatpush1.bf16.msra.mxu1 %v7246_v43 }
 0xa47   : > { %5590 = vmatprep.subr.bf16.mxu1 %v7251_v9 }
 0xa48   : > { %v5158_v45 = vsel %vm5149_vm4, %v5141_v21, %v7169_v32  ;;  %v5159_v39 = vsel %vm5149_vm4, %v5142_v27, %v7170_v1 }
 0xa49   : > { %v7178_v26 = vpop.permute.xlu0 %7177  ;;  %v5170_v60 = vpack.c.bf16 %v5159_v39, %v5158_v45  ;;  %v7608_v45 = vld [vmem:[%s8069_s10 + $0x8] sm:$0xff] }
 0xa4a   : > { %v7180_v23 = vunpack.i.h.bf16 %v7178_v26  ;;  %v7179_v51 = vunpack.i.l.bf16 %v7178_v26  ;;  %v7609_v26 = vld [vmem:[%s8069_s10 + $0x18] sm:$0xff]  ;;  %5591 = vmatpush1.bf16.msra.mxu1 %v7249_v10 }
 0xa4b   : > { %v7567_v15 = vpop.eup %7566  ;;  %6961 = vmatprep.mubr.bf16.mxu0 %v5170_v60 }
 0xa4c   : > { %v7569_v56 = vpop.eup %7568  ;;  %v1947_v4 = vmul.f32 %v7567_v15, %v10274_v6  ;;  %6962 = vmatmul.mubr.bf16.gmra.mxu0 %v5171_v22  ;;  %v7254_v6 = vld [vmem:[#allocation10 + $0x54] ss:$8 sps:$4 sm:$0xff]  }
 0xa4d   : > { %v7571_v20 = vpop.eup %7570  ;;  %v7188_v55 = vpop.permute.xlu0 %7187  ;;  %v1944_v50 = vmul.f32 %v7569_v56, %v10275_v33  ;;  %5592 = vmatprep.subr.bf16.mxu1 %v7254_v6 }
 0xa4e   : > { %v7573_v48 = vpop.eup %7572  ;;  %v5131_v25 = vsel %vm1018_vm1, %v1947_v4, %v7185_v41  ;;  %v7190_v61 = vunpack.i.h.bf16 %v7188_v55  ;;  %v7189_v16 = vunpack.i.l.bf16 %v7188_v55  ;;  %v1945_v35 = vmul.f32 %v7571_v20, %v10276_v30  ;;  %v7252_v4 = vld [vmem:[#allocation10 + $0x50] ss:$8 sps:$4 sm:$0xff]   ;;  %v7257_v20 = vld [vmem:[#allocation10 + $0x44] ss:$8 sps:$4 sm:$0xff]   ;;  %v7255_v55 = vld [vmem:[#allocation10 + $0x40] ss:$8 sps:$4 sm:$0xff]  }
 0xa4f   : > { %v5148_v49 = vsel %vm5132_vm3, %v5131_v25, %v7195_v19  ;;  %v1946_v18 = vmul.f32 %v7573_v48, %v10277_v7  ;;  %v5128_v28 = vsel %vm1018_vm1, %v1944_v50, %v7179_v51  ;;  %5593 = vmatpush1.bf16.msra.mxu1 %v7252_v4  ;;  %v7260_v48 = vld [vmem:[#allocation10 + $0x34] ss:$8 sps:$4 sm:$0xff]   ;;  %v7258_v19 = vld [vmem:[#allocation10 + $0x30] ss:$8 sps:$4 sm:$0xff]  }
 0xa50   : > { %v5129_v12 = vsel %vm1018_vm1, %v1945_v35, %v7180_v23  ;;  %v5145_v54 = vsel %vm5132_vm3, %v5128_v28, %v7189_v16  ;;  %v5165_v34 = vsel %vm5149_vm4, %v5148_v49, %v7205_v13  ;;  %5594 = vmatprep.subr.bf16.mxu1 %v7257_v20  ;;  %v7261_v23 = vld [vmem:[#allocation10 + $0x20] ss:$8 sps:$4 sm:$0xff]   ;;  %v7266_v51 = vld [vmem:[#allocation10 + $0x14] ss:$8 sps:$4 sm:$0xff]   ;;  %v7264_v25 = vld [vmem:[#allocation10 + $0x10] ss:$8 sps:$4 sm:$0xff]  }
 0xa51   : > { %v7198_v38 = vpop.permute.xlu0 %7197  ;;  %v5130_v8 = vsel %vm1018_vm1, %v1946_v18, %v7184_v3  ;;  %v5146_v17 = vsel %vm5132_vm3, %v5129_v12, %v7190_v61  ;;  %v7267_v3 = vld [vmem:[#allocation10] ss:$8 sps:$4 sm:$0xff]   ;;  %v7269_v61 = vld [vmem:[#allocation10 + $0x4] ss:$8 sps:$4 sm:$0xff]   ;;  %v7611_v18 = vld [vmem:[%s8069_s10 + $0x30] sm:$0xff] }
 0xa52   : > { %v7200_v36 = vunpack.i.h.bf16 %v7198_v38  ;;  %v7199_v2 = vunpack.i.l.bf16 %v7198_v38  ;;  %v5147_v31 = vsel %vm5132_vm3, %v5130_v8, %v7194_v37  ;;  %v7610_v35 = vld [vmem:[%s8069_s10 + $0x20] sm:$0xff]  ;;  %v7612_v12 = vld [vmem:[%s8069_s10 + $0x28] sm:$0xff]  ;;  %v7619_v20 = vld [vmem:[%s8069_s10 + $0x70] sm:$0xff] }
 0xa53   : > { %v5164_v24 = vsel %vm5149_vm4, %v5147_v31, %v7204_v11  ;;  %5595 = vmatpush1.bf16.msra.mxu1 %v7255_v55 }
 0xa54   : > { %v5162_v44 = vsel %vm5149_vm4, %v5145_v54, %v7199_v2  ;;  %v5163_v22 = vsel %vm5149_vm4, %v5146_v17, %v7200_v36  ;;  %v5173_v53 = vpack.c.bf16 %v5165_v34, %v5164_v24  ;;  %5596 = vmatprep.subr.bf16.mxu1 %v7260_v48  ;;  %v7613_v2 = vld [vmem:[%s8069_s10 + $0x38] sm:$0xff] }
 0xa55   : > { %v5172_v29 = vpack.c.bf16 %v5163_v22, %v5162_v44 }
 0xa57   : > { %6965 = vmatprep.mubr.bf16.mxu0 %v5172_v29  ;;  %5597 = vmatpush1.bf16.msra.mxu1 %v7258_v19 }
 0xa58   : > { %6966 = vmatmul.mubr.bf16.gmra.mxu0 %v5173_v53  ;;  %5598 = vmatprep.subr.bf16.mxu1 %v7263_v5  ;;  %v7614_v53 = vld [vmem:[%s8069_s10 + $0x40] sm:$0xff] }
 0xa5b   : > { %5599 = vmatpush1.bf16.msra.mxu1 %v7261_v23  ;;  %v7620_v23 = vld [vmem:[%s8069_s10 + $0x68] sm:$0xff] }
 0xa5c   : > { %5600 = vmatprep.subr.bf16.mxu1 %v7266_v51 }
 0xa5f   : > { %5601 = vmatpush1.bf16.msra.mxu1 %v7264_v25  ;;  %v7621_v25 = vld [vmem:[%s8069_s10 + $0x78] sm:$0xff] }
 0xa60   : > { %5602 = vmatprep.subr.bf16.mxu1 %v7269_v61 }
 0xa63   : > { %5603 = vmatpush1.bf16.msra.mxu1 %v7267_v3 }
 0xaa4   : > { %v6955_v63 = vpop.f32.mrf.mxu0 }
 0xaa5   : > { %v5288_v40 = vadd.f32 %v6955_v63, %v9815_v62 }
 0xaa6   : > { %v5279_v52 = vpop.f32.mrf.mxu0 }
 0xaa7   : > { %v5280_v47 = vadd.f32 %v9815_v62, %v5279_v52  ;;  %v9823_v1 = vadd.f32 %v7607_v42, %v5288_v40  ;;  %v7615_v40 = vld [vmem:[%s8069_s10 + $0x50] sm:$0xff] }
 0xaa8   : > { %v6956_v59 = vpop.f32.mrf.mxu0 }
 0xaa9   : > { %v9820_v14 = vadd.f32 %v7606_v58, %v5280_v47  ;;  %v5291_v32 = vadd.f32 %v6956_v59, %v9815_v62  ;;  %v5360_v15 = vmul.f32 %v9823_v1, %v9823_v1  ;;  %v7616_v58 = vld [vmem:[%s8069_s10 + $0x48] sm:$0xff] }
 0xaaa   : > { %v5282_v57 = vpop.f32.mrf.mxu0 }
 0xaab   : > { %v5283_v21 = vadd.f32 %v9815_v62, %v5282_v57  ;;  %v5358_v27 = vmul.f32 %v9820_v14, %v9820_v14  ;;  %v9833_v60 = vadd.f32 %v7609_v26, %v5291_v32  ;;  %v7617_v57 = vld [vmem:[%s8069_s10 + $0x58] sm:$0xff] }
 0xaad   : > { %v9830_v39 = vadd.f32 %v7608_v45, %v5283_v21  ;;  %5374 = vadd.xlane.f32.xlu0 %v5358_v27  ;;  %v5361_v41 = vmul.f32 %v9833_v60, %v9833_v60 }
 0xaaf   : > { %v5359_v56 = vmul.f32 %v9830_v39, %v9830_v39 }
 0xab1   : > { %5378 = vadd.xlane.f32.xlu0 %v5360_v15  ;;  %5376 = vadd.xlane.f32.xlu1 %v5359_v56 }
 0xab5   : > { %5380 = vadd.xlane.f32.xlu0 %v5361_v41  ;;  %v7618_v41 = vld [vmem:[%s8069_s10 + $0x60] sm:$0xff] }
 0xae3   : > { %v6959_v16 = vpop.f32.mrf.mxu0 }
 0xae4   : > { %v5304_v33 = vadd.f32 %v6959_v16, %v9815_v62 }
 0xae5   : > { %v5295_v37 = vpop.f32.mrf.mxu0 }
 0xae6   : > { %v5296_v50 = vadd.f32 %v9815_v62, %v5295_v37  ;;  %v9847_v13 = vadd.f32 %v7611_v18, %v5304_v33 }
 0xae7   : > { %v6960_v30 = vpop.f32.mrf.mxu0 }
 0xae8   : > { %v9844_v49 = vadd.f32 %v7610_v35, %v5296_v50  ;;  %v5307_v11 = vadd.f32 %v6960_v30, %v9815_v62  ;;  %v5364_v54 = vmul.f32 %v9847_v13, %v9847_v13 }
 0xae9   : > { %v5298_v7 = vpop.f32.mrf.mxu0 }
 0xaea   : > { %v5299_v38 = vadd.f32 %v9815_v62, %v5298_v7  ;;  %v5362_v28 = vmul.f32 %v9844_v49, %v9844_v49  ;;  %v9857_v8 = vadd.f32 %v7613_v2, %v5307_v11 }
 0xaec   : > { %v9854_v36 = vadd.f32 %v7612_v12, %v5299_v38  ;;  %5382 = vadd.xlane.f32.xlu0 %v5362_v28  ;;  %v5365_v34 = vmul.f32 %v9857_v8, %v9857_v8  ;;  %v9913_v28 = vstv %s5406_s16  ;;  %s7760_s16 = scalar_lea.vmem %s7759_s29, 4096 }
 0xaed   : > { %p7762_p10 = scmp.lt.s32.totalorder %s7760_s16, %s7754_s30 }
 0xaee   : > { %v5363_v17 = vmul.f32 %v9854_v36, %v9854_v36 }
 0xaef   : > { %p7763_p1 = por %p7762_p10, %p7761_p5 }
 0xaf0   : > { %5386 = vadd.xlane.f32.xlu0 %v5364_v54  ;;  %5384 = vadd.xlane.f32.xlu1 %v5363_v17 }
 0xaf1   : > { %p7764_p6 = pnand %p7763_p1, %p7757_p13 }
 0xaf4   : > { %5388 = vadd.xlane.f32.xlu1 %v5365_v34 }
 0xb0c   : > { %v6963_v31 = vpop.f32.mrf.mxu0 }
 0xb0d   : > { %v5320_v22 = vadd.f32 %v6963_v31, %v9815_v62 }
 0xb0e   : > { %v5311_v44 = vpop.f32.mrf.mxu0 }
 0xb0f   : > { %v5312_v24 = vadd.f32 %v9815_v62, %v5311_v44  ;;  %v9871_v47 = vadd.f32 %v7615_v40, %v5320_v22 }
 0xb10   : > { %v6964_v29 = vpop.f32.mrf.mxu0 }
 0xb11   : > { %v9868_v63 = vadd.f32 %v7614_v53, %v5312_v24  ;;  %v5323_v59 = vadd.f32 %v6964_v29, %v9815_v62  ;;  %v5368_v32 = vmul.f32 %v9871_v47, %v9871_v47  ;;  %v7270_v29 = vld [vmem:[#allocation12 + $0x78] sm:$0xff]  }
 0xb12   : > { %v5314_v52 = vpop.f32.mrf.mxu0  ;;  %v7271_v53 = vld [vmem:[#allocation12 + $0x38] sm:$0xff]   ;;  %6457 = vmatprep.subr.bf16.mxu0 %v7270_v29  ;;  %6969 = vmatprep.subr.bf16.mxu1 %v7270_v29 }
 0xb13   : > { %v5315_v43 = vadd.f32 %v9815_v62, %v5314_v52  ;;  %v5366_v46 = vmul.f32 %v9868_v63, %v9868_v63  ;;  %v9881_v42 = vadd.f32 %v7617_v57, %v5323_v59  ;;  %v7272_v52 = vld [vmem:[#allocation12 + $0x70] sm:$0xff]   ;;  %6458 = vmatpush3.bf16.msra.mxu0 %v7271_v53 }
 0xb14   : > { %6459 = vmatprep.subr.bf16.mxu0 %v7272_v52 }
 0xb15   : > { %v9878_v9 = vadd.f32 %v7616_v58, %v5315_v43  ;;  %5390 = vadd.xlane.f32.xlu0 %v5366_v46  ;;  %v5369_v15 = vmul.f32 %v9881_v42, %v9881_v42  ;;  %v7273_v43 = vld [vmem:[#allocation12 + $0x30] sm:$0xff]   ;;  %v7274_v46 = vld [vmem:[#allocation12 + $0x68] sm:$0xff]  }
 0xb17   : > { %v5367_v21 = vmul.f32 %v9878_v9, %v9878_v9  ;;  %6460 = vmatpush3.bf16.msra.mxu0 %v7273_v43 }
 0xb18   : > { %v6967_v27 = vpop.f32.mrf.mxu0  ;;  %6461 = vmatprep.subr.bf16.mxu0 %v7274_v46 }
 0xb19   : > { %5394 = vadd.xlane.f32.xlu0 %v5368_v32  ;;  %5392 = vadd.xlane.f32.xlu1 %v5367_v21  ;;  %v5336_v45 = vadd.f32 %v6967_v27, %v9815_v62  ;;  %v7275_v32 = vld [vmem:[#allocation12 + $0x28] sm:$0xff]   ;;  %v7276_v21 = vld [vmem:[#allocation12 + $0x60] sm:$0xff]  }
 0xb1a   : > { %v5327_v10 = vpop.f32.mrf.mxu0  ;;  %v7277_v27 = vld [vmem:[#allocation12 + $0x20] sm:$0xff]  }
 0xb1b   : > { %v5328_v26 = vadd.f32 %v9815_v62, %v5327_v10  ;;  %v9895_v55 = vadd.f32 %v7619_v20, %v5336_v45  ;;  %6462 = vmatpush3.bf16.msra.mxu0 %v7275_v32  ;;  %v7278_v10 = vld [vmem:[#allocation12 + $0x58] sm:$0xff]  }
 0xb1c   : > { %v6968_v56 = vpop.f32.mrf.mxu0  ;;  %6463 = vmatprep.subr.bf16.mxu0 %v7276_v21  ;;  %v7279_v45 = vld [vmem:[#allocation12 + $0x18] sm:$0xff]  }
 0xb1d   : > { %v9892_v6 = vadd.f32 %v7618_v41, %v5328_v26  ;;  %5396 = vadd.xlane.f32.xlu1 %v5369_v15  ;;  %v5339_v48 = vadd.f32 %v6968_v56, %v9815_v62  ;;  %v5372_v16 = vmul.f32 %v9895_v55, %v9895_v55 }
 0xb1e   : > { %v5330_v4 = vpop.f32.mrf.mxu0 }
 0xb1f   : > { %v5331_v19 = vadd.f32 %v9815_v62, %v5330_v4  ;;  %v5370_v5 = vmul.f32 %v9892_v6, %v9892_v6  ;;  %v9905_v3 = vadd.f32 %v7621_v25, %v5339_v48  ;;  %6464 = vmatpush3.bf16.msra.mxu0 %v7277_v27 }
 0xb20   : > { %6465 = vmatprep.subr.bf16.mxu0 %v7278_v10 }
 0xb21   : > { %v9902_v51 = vadd.f32 %v7620_v23, %v5331_v19  ;;  %5398 = vadd.xlane.f32.xlu0 %v5370_v5  ;;  %v5373_v62 = vmul.f32 %v9905_v3, %v9905_v3 }
 0xb23   : > { %v5371_v61 = vmul.f32 %v9902_v51, %v9902_v51  ;;  %6466 = vmatpush3.bf16.msra.mxu0 %v7279_v45 }
 0xb25   : > { %5400 = vadd.xlane.f32.xlu1 %v5371_v61  ;;  %5402 = vadd.xlane.f32.xlu0 %v5372_v16 }
 0xb29   : > { %5404 = vadd.xlane.f32.xlu1 %v5373_v62 }
 0xb36   : > { %v5375_v37 = vpop.xlane.xlu0 %5374 }
 0xb37   : > { %v5407_v33 = vmax.f32 %v5375_v37, 1e-10 }
 0xb39   : > { %7574 = vrsqrt.f32 %v5407_v33 }
 0xb3a   : > { %v5379_v50 = vpop.xlane.xlu0 %5378  ;;  %v5377_v30 = vpop.xlane.xlu1 %5376 }
 0xb3b   : > { %v5408_v35 = vmax.f32 %v5377_v30, 1e-10  ;;  %v5409_v7 = vmax.f32 %v5379_v50, 1e-10 }
 0xb3d   : > { %7576 = vrsqrt.f32 %v5408_v35 }
 0xb3e   : > { %v5381_v18 = vpop.xlane.xlu0 %5380 }
 0xb3f   : > { %v5410_v11 = vmax.f32 %v5381_v18, 1e-10  ;;  %v7280_v18 = vld [vmem:[#allocation12 + $0x50] sm:$0xff]  }
 0xb40   : > { %6467 = vmatprep.subr.bf16.mxu0 %v7280_v18 }
 0xb41   : > { %7578 = vrsqrt.f32 %v5410_v11  ;;  %v7281_v11 = vld [vmem:[#allocation12 + $0x10] sm:$0xff]  }
 0xb42   : > { %7580 = vrsqrt.f32 %v5409_v7  ;;  %6468 = vmatpush3.bf16.msra.mxu0 %v7281_v11 }
 0xb46   : > { %v7575_v38 = vpop.eup %7574 }
 0xb47   : > { %v5440_v12 = vmul.f32 %v7575_v38, %v9913_v28 }
 0xb49   : > { %v5456_v34 = vmul.f32 %v5440_v12, %v9820_v14 }
 0xb4a   : > { %v7577_v2 = vpop.eup %7576 }
 0xb4b   : > { %v5441_v54 = vmul.f32 %v7577_v2, %v9913_v28  ;;  %v7282_v2 = vld [vmem:[#allocation12 + $0x48] sm:$0xff]  }
 0xb4c   : > { %6469 = vmatprep.subr.bf16.mxu0 %v7282_v2 }
 0xb4d   : > { %v5457_v31 = vmul.f32 %v5441_v54, %v9830_v39  ;;  %v7283_v54 = vld [vmem:[#allocation12 + $0x8] sm:$0xff]  }
 0xb4e   : > { %v7579_v17 = vpop.eup %7578  ;;  %6470 = vmatpush3.bf16.msra.mxu0 %v7283_v54 }
 0xb4f   : > { %v7581_v44 = vpop.eup %7580  ;;  %v5472_v22 = vpack.c.bf16 %v5457_v31, %v5456_v34  ;;  %v5443_v24 = vmul.f32 %v7579_v17, %v9913_v28  ;;  %v7284_v17 = vld [vmem:[#allocation12 + $0x40] sm:$0xff]  }
 0xb50   : > { %v5442_v40 = vmul.f32 %v7581_v44, %v9913_v28  ;;  %v7285_v34 = vld [vmem:[#allocation12] sm:$0xff]   ;;  %6471 = vmatprep.subr.bf16.mxu0 %v7284_v17 }
 0xb51   : > { %5621 = vmatmul.mubr.bf16.vlgmr.msra.gmra.mxu1 %v5472_v22  ;;  %v5459_v59 = vmul.f32 %v5443_v24, %v9833_v60 }
 0xb52   : > { %5630 = vmatprep.mubr.bf16.mxu1 %v10252_v0  ;;  %6977 = vmatpush3.bf16.msra.mxu1 %v7271_v53  ;;  %v5458_v58 = vmul.f32 %v5442_v40, %v9823_v1 }
 0xb53   : > { %6970 = vmatprep.subr.bf16.mxu1 %v7272_v52  ;;  %6472 = vmatpush3.bf16.msra.mxu0 %v7285_v34 }
 0xb54   : > { %v5473_v57 = vpack.c.bf16 %v5459_v59, %v5458_v58 }
 0xb56   : > { %6978 = vmatpush3.bf16.msra.mxu1 %v7273_v43 }
 0xb57   : > { %6971 = vmatprep.subr.bf16.mxu1 %v7274_v46 }
 0xb59   : > { %5631 = vmatmul.mubr.bf16.gmra.mxu1 %v5473_v57 }
 0xb5a   : > { %5640 = vmatprep.mubr.bf16.mxu1 %v10252_v0  ;;  %6979 = vmatpush3.bf16.msra.mxu1 %v7275_v32 }
 0xb5b   : > { %6972 = vmatprep.subr.bf16.mxu1 %v7276_v21 }
 0xb5e   : > { %6980 = vmatpush3.bf16.msra.mxu1 %v7277_v27 }
 0xb5f   : > { %6973 = vmatprep.subr.bf16.mxu1 %v7278_v10 }
 0xb62   : > { %6981 = vmatpush3.bf16.msra.mxu1 %v7279_v45 }
 0xb63   : > { %6974 = vmatprep.subr.bf16.mxu1 %v7280_v18 }
 0xb66   : > { %6982 = vmatpush3.bf16.msra.mxu1 %v7281_v11 }
 0xb67   : > { %6975 = vmatprep.subr.bf16.mxu1 %v7282_v2 }
 0xb6a   : > { %6983 = vmatpush3.bf16.msra.mxu1 %v7283_v54 }
 0xb6b   : > { %6976 = vmatprep.subr.bf16.mxu1 %v7284_v17  ;;  %v5496_v17 = vld [vmem:[%s10110_s6] sm:$0x3] }
 0xb6e   : > { %6984 = vmatpush3.bf16.msra.mxu1 %v7285_v34 }
 0xb75   : > { %v5383_v26 = vpop.xlane.xlu0 %5382 }
 0xb76   : > { %v5411_v15 = vmax.f32 %v5383_v26, 1e-10 }
 0xb78   : > { %7582 = vrsqrt.f32 %v5411_v15 }
 0xb79   : > { %v5385_v56 = vpop.xlane.xlu1 %5384  ;;  %v5387_v41 = vpop.xlane.xlu0 %5386 }
 0xb7a   : > { %v5412_v4 = vmax.f32 %v5385_v56, 1e-10  ;;  %v5413_v20 = vmax.f32 %v5387_v41, 1e-10 }
 0xb7c   : > { %7584 = vrsqrt.f32 %v5412_v4 }
 0xb7d   : > { %v5389_v48 = vpop.xlane.xlu1 %5388 }
 0xb7e   : > { %v5414_v19 = vmax.f32 %v5389_v48, 1e-10 }
 0xb80   : > { %7586 = vrsqrt.f32 %v5414_v19 }
 0xb81   : > { %7588 = vrsqrt.f32 %v5413_v20 }
 0xb85   : > { %v7583_v5 = vpop.eup %7582 }
 0xb86   : > { %v5444_v23 = vmul.f32 %v7583_v5, %v9913_v28 }
 0xb88   : > { %v5460_v62 = vmul.f32 %v5444_v23, %v9844_v49 }
 0xb89   : > { %v7585_v25 = vpop.eup %7584 }
 0xb8a   : > { %v5445_v61 = vmul.f32 %v7585_v25, %v9913_v28 }
 0xb8c   : > { %v5461_v37 = vmul.f32 %v5445_v61, %v9854_v36 }
 0xb8d   : > { %v7587_v16 = vpop.eup %7586 }
 0xb8e   : > { %v7589_v33 = vpop.eup %7588  ;;  %v5474_v50 = vpack.c.bf16 %v5461_v37, %v5460_v62  ;;  %v5447_v30 = vmul.f32 %v7587_v16, %v9913_v28 }
 0xb8f   : > { %v5446_v35 = vmul.f32 %v7589_v33, %v9913_v28 }
 0xb90   : > { %5641 = vmatmul.mubr.bf16.gmra.mxu1 %v5474_v50  ;;  %v5463_v7 = vmul.f32 %v5447_v30, %v9857_v8 }
 0xb91   : > { %5650 = vmatprep.mubr.bf16.mxu1 %v10252_v0  ;;  %v5462_v38 = vmul.f32 %v5446_v35, %v9847_v13 }
 0xb93   : > { %v5475_v12 = vpack.c.bf16 %v5463_v7, %v5462_v38 }
 0xb98   : > { %5651 = vmatmul.mubr.bf16.gmra.mxu1 %v5475_v12 }
 0xb99   : > { %5660 = vmatprep.mubr.bf16.mxu1 %v10252_v0 }
 0xb9e   : > { %v5391_v31 = vpop.xlane.xlu0 %5390 }
 0xb9f   : > { %v5415_v44 = vmax.f32 %v5391_v31, 1e-10  ;;  %v10278_v31 = vld [vmem:[#allocation18_spill] sm:$0xff] }
 0xba1   : > { %7590 = vrsqrt.f32 %v5415_v44  ;;  %v10279_v44 = vsub.s32 1, %v10278_v31 }
 0xba2   : > { %v5393_v22 = vpop.xlane.xlu1 %5392  ;;  %v5395_v24 = vpop.xlane.xlu0 %5394 }
 0xba3   : > { %v5416_v29 = vmax.f32 %v5393_v22, 1e-10  ;;  %v5417_v53 = vmax.f32 %v5395_v24, 1e-10  ;;  %v9959_v22 = vrot.slane %v5496_v17, %v10279_v44  ;;  %v10280_v24 = vsub.s32 0, %v10278_v31 }
 0xba5   : > { %7592 = vrsqrt.f32 %v5416_v29 }
 0xba6   : > { %v5397_v52 = vpop.xlane.xlu1 %5396 }
 0xba7   : > { %v5418_v40 = vmax.f32 %v5397_v52, 1e-10 }
 0xba9   : > { %7594 = vrsqrt.f32 %v5418_v40 }
 0xbaa   : > { %7596 = vrsqrt.f32 %v5417_v53  ;;  %v5399_v59 = vpop.xlane.xlu0 %5398 }
 0xbab   : > { %v5419_v43 = vmax.f32 %v5399_v59, 1e-10 }
 0xbae   : > { %v5401_v46 = vpop.xlane.xlu1 %5400  ;;  %v7591_v58 = vpop.eup %7590 }
 0xbaf   : > { %v5420_v57 = vmax.f32 %v5401_v46, 1e-10  ;;  %v5448_v21 = vmul.f32 %v7591_v58, %v9913_v28  ;;  %v5403_v10 = vpop.xlane.xlu0 %5402 }
 0xbb0   : > { %v5421_v56 = vmax.f32 %v5403_v10, 1e-10 }
 0xbb1   : > { %7598 = vrsqrt.f32 %v5420_v57  ;;  %v5464_v41 = vmul.f32 %v5448_v21, %v9868_v63 }
 0xbb2   : > { %7600 = vrsqrt.f32 %v5419_v43  ;;  %v5405_v32 = vpop.xlane.xlu1 %5404  ;;  %v7593_v27 = vpop.eup %7592 }
 0xbb3   : > { %v5422_v45 = vmax.f32 %v5405_v32, 1e-10  ;;  %v5449_v26 = vmul.f32 %v7593_v27, %v9913_v28 }
 0xbb5   : > { %v5465_v4 = vmul.f32 %v5449_v26, %v9878_v9  ;;  %7602 = vrsqrt.f32 %v5422_v45 }
 0xbb6   : > { %v7595_v15 = vpop.eup %7594  ;;  %7604 = vrsqrt.f32 %v5421_v56 }
 0xbb7   : > { %v7597_v20 = vpop.eup %7596  ;;  %v5476_v48 = vpack.c.bf16 %v5465_v4, %v5464_v41  ;;  %v5451_v19 = vmul.f32 %v7595_v15, %v9913_v28 }
 0xbb8   : > { %v5450_v5 = vmul.f32 %v7597_v20, %v9913_v28 }
 0xbb9   : > { %5661 = vmatmul.mubr.bf16.gmra.mxu1 %v5476_v48  ;;  %v5467_v23 = vmul.f32 %v5451_v19, %v9881_v42 }
 0xbba   : > { %5670 = vmatprep.mubr.bf16.mxu1 %v10252_v0  ;;  %v5466_v61 = vmul.f32 %v5450_v5, %v9871_v47 }
 0xbbc   : > { %v5477_v62 = vpack.c.bf16 %v5467_v23, %v5466_v61 }
 0xbbe   : > { %v7599_v25 = vpop.eup %7598 }
 0xbbf   : > { %v7601_v16 = vpop.eup %7600  ;;  %v5453_v37 = vmul.f32 %v7599_v25, %v9913_v28 }
 0xbc0   : > { %v5452_v33 = vmul.f32 %v7601_v16, %v9913_v28 }
 0xbc1   : > { %5671 = vmatmul.mubr.bf16.gmra.mxu1 %v5477_v62  ;;  %v5469_v50 = vmul.f32 %v5453_v37, %v9902_v51 }
 0xbc2   : > { %5680 = vmatprep.mubr.bf16.mxu1 %v10252_v0  ;;  %v7603_v30 = vpop.eup %7602  ;;  %v5468_v35 = vmul.f32 %v5452_v33, %v9892_v6 }
 0xbc3   : > { %v7605_v7 = vpop.eup %7604  ;;  %v5455_v11 = vmul.f32 %v7603_v30, %v9913_v28 }
 0xbc4   : > { %v5478_v18 = vpack.c.bf16 %v5469_v50, %v5468_v35  ;;  %v5454_v38 = vmul.f32 %v7605_v7, %v9913_v28  ;;  %v9963_v28 = vrot.slane %v5496_v17, %v10280_v24 }
 0xbc5   : > { %v5471_v12 = vmul.f32 %v5455_v11, %v9905_v3 }
 0xbc6   : > { %v5470_v2 = vmul.f32 %v5454_v38, %v9895_v55 }
 0xbc8   : > { %v5479_v54 = vpack.c.bf16 %v5471_v12, %v5470_v2 }
 0xbc9   : > { %5681 = vmatmul.mubr.bf16.gmra.mxu1 %v5478_v18 }
 0xbca   : > { %5690 = vmatprep.mubr.bf16.mxu1 %v10252_v0 }
 0xbd1   : > { %5691 = vmatmul.mubr.bf16.gmra.mxu1 %v5479_v54 }
 0xc11   : > { %v5622_v34 = vpop.f32.mrf.mxu1 }
 0xc12   : > { %v5623_v40 = vadd.f32 %v5622_v34, %v9963_v28 }
 0xc13   : > { %v5624_v0 = vpop.f32.mrf.mxu1 }
 0xc14   : > { %v5625_v53 = vadd.f32 %v5624_v0, %v9959_v22  ;;  %v5701_v21 = vmax.f32 %v5623_v40, 0.0 }
 0xc15   : > { %v5626_v29 = vpop.f32.mrf.mxu1 }
 0xc16   : > { %v5627_v52 = vadd.f32 %v5626_v29, %v9963_v28  ;;  %v5702_v57 = vmax.f32 %v5625_v53, 0.0 }
 0xc17   : > { %v5628_v59 = vpop.f32.mrf.mxu1 }
 0xc18   : > { %v5629_v43 = vadd.f32 %v5628_v59, %v9959_v22  ;;  %v5703_v46 = vmax.f32 %v5627_v52, 0.0 }
 0xc19   : > { %v5632_v58 = vpop.f32.mrf.mxu1 }
 0xc1a   : > { %v5704_v32 = vmax.f32 %v5629_v43, 0.0  ;;  %v5733_v45 = vpack.c.bf16 %v5703_v46, %v5701_v21  ;;  %v5633_v41 = vadd.f32 %v5632_v58, %v9963_v28 }
 0xc1b   : > { %v5634_v27 = vpop.f32.mrf.mxu1 }
 0xc1c   : > { %v5734_v10 = vpack.c.bf16 %v5704_v32, %v5702_v57  ;;  %v5635_v15 = vadd.f32 %v5634_v27, %v9959_v22  ;;  %v5705_v23 = vmax.f32 %v5633_v41, 0.0 }
 0xc1d   : > { %v5636_v26 = vpop.f32.mrf.mxu1 }
 0xc1e   : > { %v5637_v56 = vadd.f32 %v5636_v26, %v9963_v28  ;;  %5916 = vmatprep.mubr.bf16.mxu0 %v5734_v10  ;;  %v5706_v19 = vmax.f32 %v5635_v15, 0.0 }
 0xc1f   : > { %v5638_v4 = vpop.f32.mrf.mxu1  ;;  %5917 = vmatmul.mubr.bf16.vlgmr.msra.gmra.mxu0 %v5733_v45 }
 0xc20   : > { %v5639_v20 = vadd.f32 %v5638_v4, %v9959_v22  ;;  %v5707_v48 = vmax.f32 %v5637_v56, 0.0 }
 0xc22   : > { %v5708_v5 = vmax.f32 %v5639_v20, 0.0  ;;  %v5735_v61 = vpack.c.bf16 %v5707_v48, %v5705_v23 }
 0xc24   : > { %v5736_v25 = vpack.c.bf16 %v5708_v5, %v5706_v19 }
 0xc26   : > { %5924 = vmatprep.mubr.bf16.mxu0 %v5736_v25 }
 0xc27   : > { %5925 = vmatmul.mubr.bf16.gmra.mxu0 %v5735_v61 }
 0xc50   : > { %v5642_v16 = vpop.f32.mrf.mxu1 }
 0xc51   : > { %v5643_v30 = vadd.f32 %v5642_v16, %v9963_v28 }
 0xc52   : > { %v5644_v62 = vpop.f32.mrf.mxu1 }
 0xc53   : > { %v5645_v33 = vadd.f32 %v5644_v62, %v9959_v22  ;;  %v5709_v2 = vmax.f32 %v5643_v30, 0.0 }
 0xc54   : > { %v5646_v37 = vpop.f32.mrf.mxu1 }
 0xc55   : > { %v5647_v50 = vadd.f32 %v5646_v37, %v9963_v28  ;;  %v5710_v38 = vmax.f32 %v5645_v33, 0.0 }
 0xc56   : > { %v5648_v35 = vpop.f32.mrf.mxu1 }
 0xc57   : > { %v5649_v7 = vadd.f32 %v5648_v35, %v9959_v22  ;;  %v5711_v18 = vmax.f32 %v5647_v50, 0.0 }
 0xc58   : > { %v5652_v11 = vpop.f32.mrf.mxu1 }
 0xc59   : > { %v5712_v12 = vmax.f32 %v5649_v7, 0.0  ;;  %v5737_v34 = vpack.c.bf16 %v5711_v18, %v5709_v2  ;;  %v5653_v0 = vadd.f32 %v5652_v11, %v9963_v28 }
 0xc5a   : > { %v5654_v54 = vpop.f32.mrf.mxu1 }
 0xc5b   : > { %v5738_v17 = vpack.c.bf16 %v5712_v12, %v5710_v38  ;;  %v5655_v44 = vadd.f32 %v5654_v54, %v9959_v22  ;;  %v5713_v43 = vmax.f32 %v5653_v0, 0.0 }
 0xc5c   : > { %v5656_v31 = vpop.f32.mrf.mxu1 }
 0xc5d   : > { %v5657_v24 = vadd.f32 %v5656_v31, %v9963_v28  ;;  %5932 = vmatprep.mubr.bf16.mxu0 %v5738_v17  ;;  %v5714_v40 = vmax.f32 %v5655_v44, 0.0 }
 0xc5e   : > { %v5658_v29 = vpop.f32.mrf.mxu1  ;;  %5933 = vmatmul.mubr.bf16.gmra.mxu0 %v5737_v34 }
 0xc5f   : > { %v5659_v53 = vadd.f32 %v5658_v29, %v9959_v22  ;;  %v5715_v52 = vmax.f32 %v5657_v24, 0.0 }
 0xc61   : > { %v5716_v59 = vmax.f32 %v5659_v53, 0.0  ;;  %v5739_v58 = vpack.c.bf16 %v5715_v52, %v5713_v43 }
 0xc63   : > { %v5740_v46 = vpack.c.bf16 %v5716_v59, %v5714_v40 }
 0xc65   : > { %5940 = vmatprep.mubr.bf16.mxu0 %v5740_v46 }
 0xc66   : > { %5941 = vmatmul.mubr.bf16.gmra.mxu0 %v5739_v58 }
 0xc79   : > { %v5662_v57 = vpop.f32.mrf.mxu1 }
 0xc7a   : > { %v5663_v45 = vadd.f32 %v5662_v57, %v9963_v28 }
 0xc7b   : > { %v5664_v32 = vpop.f32.mrf.mxu1 }
 0xc7c   : > { %v5665_v27 = vadd.f32 %v5664_v32, %v9959_v22  ;;  %v5717_v48 = vmax.f32 %v5663_v45, 0.0 }
 0xc7d   : > { %v5666_v21 = vpop.f32.mrf.mxu1 }
 0xc7e   : > { %v5667_v10 = vadd.f32 %v5666_v21, %v9963_v28  ;;  %v5718_v4 = vmax.f32 %v5665_v27, 0.0 }
 0xc7f   : > { %v5668_v26 = vpop.f32.mrf.mxu1 }
 0xc80   : > { %v5669_v15 = vadd.f32 %v5668_v26, %v9959_v22  ;;  %v5719_v56 = vmax.f32 %v5667_v10, 0.0 }
 0xc81   : > { %v5672_v41 = vpop.f32.mrf.mxu1 }
 0xc82   : > { %v5720_v20 = vmax.f32 %v5669_v15, 0.0  ;;  %v5741_v23 = vpack.c.bf16 %v5719_v56, %v5717_v48  ;;  %v5673_v62 = vadd.f32 %v5672_v41, %v9963_v28 }
 0xc83   : > { %v5674_v19 = vpop.f32.mrf.mxu1 }
 0xc84   : > { %v5742_v5 = vpack.c.bf16 %v5720_v20, %v5718_v4  ;;  %v5675_v61 = vadd.f32 %v5674_v19, %v9959_v22  ;;  %v5721_v18 = vmax.f32 %v5673_v62, 0.0  ;;  %v10000_v20 = vld [vmem:[%s10112_s8] ss:$0 sm:$0xff] }
 0xc85   : > { %v5676_v25 = vpop.f32.mrf.mxu1 }
 0xc86   : > { %v5677_v16 = vadd.f32 %v5676_v25, %v9963_v28  ;;  %5948 = vmatprep.mubr.bf16.mxu0 %v5742_v5  ;;  %v5722_v35 = vmax.f32 %v5675_v61, 0.0 }
 0xc87   : > { %v5678_v37 = vpop.f32.mrf.mxu1  ;;  %5949 = vmatmul.mubr.bf16.gmra.mxu0 %v5741_v23 }
 0xc88   : > { %v5679_v33 = vadd.f32 %v5678_v37, %v9959_v22  ;;  %v5723_v50 = vmax.f32 %v5677_v16, 0.0 }
 0xc89   : > { %v5682_v30 = vpop.f32.mrf.mxu1 }
 0xc8a   : > { %v5724_v7 = vmax.f32 %v5679_v33, 0.0  ;;  %v5743_v12 = vpack.c.bf16 %v5723_v50, %v5721_v18  ;;  %v5683_v34 = vadd.f32 %v5682_v30, %v9963_v28 }
 0xc8b   : > { %v5684_v11 = vpop.f32.mrf.mxu1 }
 0xc8c   : > { %v5744_v38 = vpack.c.bf16 %v5724_v7, %v5722_v35  ;;  %v5685_v54 = vadd.f32 %v5684_v11, %v9959_v22  ;;  %v5725_v52 = vmax.f32 %v5683_v34, 0.0 }
 0xc8d   : > { %v5686_v2 = vpop.f32.mrf.mxu1 }
 0xc8e   : > { %v5687_v17 = vadd.f32 %v5686_v2, %v9963_v28  ;;  %5956 = vmatprep.mubr.bf16.mxu0 %v5744_v38  ;;  %v5726_v29 = vmax.f32 %v5685_v54, 0.0 }
 0xc8f   : > { %v5688_v31 = vpop.f32.mrf.mxu1  ;;  %5957 = vmatmul.mubr.bf16.gmra.mxu0 %v5743_v12 }
 0xc90   : > { %v5689_v44 = vadd.f32 %v5688_v31, %v9959_v22  ;;  %v5727_v24 = vmax.f32 %v5687_v17, 0.0 }
 0xc91   : > { %v5692_v0 = vpop.f32.mrf.mxu1 }
 0xc92   : > { %v5728_v53 = vmax.f32 %v5689_v44, 0.0  ;;  %v5745_v43 = vpack.c.bf16 %v5727_v24, %v5725_v52  ;;  %v5693_v32 = vadd.f32 %v5692_v0, %v9963_v28 }
 0xc93   : > { %v5694_v40 = vpop.f32.mrf.mxu1 }
 0xc94   : > { %v5746_v59 = vpack.c.bf16 %v5728_v53, %v5726_v29  ;;  %v5695_v58 = vadd.f32 %v5694_v40, %v9959_v22  ;;  %v5729_v15 = vmax.f32 %v5693_v32, 0.0 }
 0xc95   : > { %v5696_v46 = vpop.f32.mrf.mxu1 }
 0xc96   : > { %v5697_v57 = vadd.f32 %v5696_v46, %v9963_v28  ;;  %5964 = vmatprep.mubr.bf16.mxu1 %v5746_v59  ;;  %v5730_v45 = vmax.f32 %v5695_v58, 0.0 }
 0xc97   : > { %v5698_v21 = vpop.f32.mrf.mxu1  ;;  %5965 = vmatmul.mubr.bf16.vlgmr.msra.gmra.mxu1 %v5745_v43 }
 0xc98   : > { %v5699_v27 = vadd.f32 %v5698_v21, %v9959_v22  ;;  %v5731_v10 = vmax.f32 %v5697_v57, 0.0 }
 0xc9a   : > { %v5732_v26 = vmax.f32 %v5699_v27, 0.0  ;;  %v5747_v41 = vpack.c.bf16 %v5731_v10, %v5729_v15 }
 0xc9c   : > { %v5748_v56 = vpack.c.bf16 %v5732_v26, %v5730_v45 }
 0xc9e   : > { %5972 = vmatprep.mubr.bf16.mxu1 %v5748_v56 }
 0xc9f   : > { %5973 = vmatmul.mubr.bf16.gmra.mxu1 %v5747_v41 }
 0xcdf   : > { %v6473_v4 = vpop.f32.mrf.mxu0 }
 0xce1   : > { %v6474_v28 = vpop.f32.mrf.mxu0 }
 0xce2   : > { %v6475_v48 = vadd.f32 %v6474_v28, %v6473_v4 }
 0xce3   : > { %v6476_v19 = vpop.f32.mrf.mxu0 }
 0xce4   : > { %v5919_v22 = vadd.f32 %v6475_v48, %v10000_v20 }
 0xce5   : > { %v6477_v5 = vpop.f32.mrf.mxu0 }
 0xce6   : > { %v5981_v23 = vadd.f32 %v5919_v22, %v9820_v14  ;;  %v6478_v25 = vadd.f32 %v6477_v5, %v6476_v19 }
 0xce7   : > { %v6479_v61 = vpop.f32.mrf.mxu0 }
 0xce8   : > { %5997 = vst [vmem:[%s10006_s25] sm:$0xff] %v5981_v23  ;;  %v5922_v16 = vadd.f32 %v6478_v25, %v10000_v20 }
 0xce9   : > { %v6480_v62 = vpop.f32.mrf.mxu0 }
 0xcea   : > { %v5982_v37 = vadd.f32 %v5922_v16, %v9830_v39  ;;  %v6481_v33 = vadd.f32 %v6480_v62, %v6479_v61 }
 0xceb   : > { %v6482_v50 = vpop.f32.mrf.mxu0 }
 0xcec   : > { %5998 = vst [vmem:[%s10006_s25 + $0x8] sm:$0xff] %v5982_v37  ;;  %v5927_v14 = vadd.f32 %v6481_v33, %v10000_v20 }
 0xced   : > { %v6483_v30 = vpop.f32.mrf.mxu0 }
 0xcee   : > { %v5983_v35 = vadd.f32 %v5927_v14, %v9823_v1  ;;  %v6484_v7 = vadd.f32 %v6483_v30, %v6482_v50 }
 0xcf0   : > { %5999 = vst [vmem:[%s10006_s25 + $0x10] sm:$0xff] %v5983_v35  ;;  %v5930_v18 = vadd.f32 %v6484_v7, %v10000_v20 }
 0xcf2   : > { %v5984_v11 = vadd.f32 %v5930_v18, %v9833_v60 }
 0xcf4   : > { %6000 = vst [vmem:[%s10006_s25 + $0x18] sm:$0xff] %v5984_v11 }
 0xd1e   : > { %v6485_v38 = vpop.f32.mrf.mxu0 }
 0xd20   : > { %v6486_v12 = vpop.f32.mrf.mxu0 }
 0xd21   : > { %v6487_v39 = vadd.f32 %v6486_v12, %v6485_v38 }
 0xd22   : > { %v6488_v2 = vpop.f32.mrf.mxu0 }
 0xd23   : > { %v5935_v54 = vadd.f32 %v6487_v39, %v10000_v20 }
 0xd24   : > { %v6489_v17 = vpop.f32.mrf.mxu0 }
 0xd25   : > { %v5985_v34 = vadd.f32 %v5935_v54, %v9844_v49  ;;  %v6490_v31 = vadd.f32 %v6489_v17, %v6488_v2 }
 0xd26   : > { %v6491_v1 = vpop.f32.mrf.mxu0 }
 0xd27   : > { %6001 = vst [vmem:[%s10006_s25 + $0x20] sm:$0xff] %v5985_v34  ;;  %v5938_v44 = vadd.f32 %v6490_v31, %v10000_v20 }
 0xd28   : > { %v6492_v24 = vpop.f32.mrf.mxu0 }
 0xd29   : > { %v5986_v60 = vadd.f32 %v5938_v44, %v9854_v36  ;;  %v6493_v0 = vadd.f32 %v6492_v24, %v6491_v1 }
 0xd2a   : > { %v6494_v29 = vpop.f32.mrf.mxu0 }
 0xd2b   : > { %6002 = vst [vmem:[%s10006_s25 + $0x28] sm:$0xff] %v5986_v60  ;;  %v5943_v53 = vadd.f32 %v6493_v0, %v10000_v20 }
 0xd2c   : > { %v6495_v52 = vpop.f32.mrf.mxu0 }
 0xd2d   : > { %v5987_v40 = vadd.f32 %v5943_v53, %v9847_v13  ;;  %v6496_v59 = vadd.f32 %v6495_v52, %v6494_v29 }
 0xd2f   : > { %6003 = vst [vmem:[%s10006_s25 + $0x30] sm:$0xff] %v5987_v40  ;;  %v5946_v49 = vadd.f32 %v6496_v59, %v10000_v20 }
 0xd31   : > { %v5988_v43 = vadd.f32 %v5946_v49, %v9857_v8 }
 0xd33   : > { %6004 = vst [vmem:[%s10006_s25 + $0x38] sm:$0xff] %v5988_v43 }
 0xd47   : > { %v6497_v46 = vpop.f32.mrf.mxu0 }
 0xd49   : > { %v6498_v58 = vpop.f32.mrf.mxu0 }
 0xd4a   : > { %v6499_v36 = vadd.f32 %v6498_v58, %v6497_v46 }
 0xd4b   : > { %v6500_v57 = vpop.f32.mrf.mxu0 }
 0xd4c   : > { %v5951_v32 = vadd.f32 %v6499_v36, %v10000_v20 }
 0xd4d   : > { %v6501_v21 = vpop.f32.mrf.mxu0 }
 0xd4e   : > { %v5989_v27 = vadd.f32 %v5951_v32, %v9868_v63  ;;  %v6502_v10 = vadd.f32 %v6501_v21, %v6500_v57 }
 0xd4f   : > { %v6503_v13 = vpop.f32.mrf.mxu0 }
 0xd50   : > { %6005 = vst [vmem:[%s10006_s25 + $0x40] sm:$0xff] %v5989_v27  ;;  %v5954_v45 = vadd.f32 %v6502_v10, %v10000_v20 }
 0xd51   : > { %v6504_v26 = vpop.f32.mrf.mxu0 }
 0xd52   : > { %v5990_v8 = vadd.f32 %v5954_v45, %v9878_v9  ;;  %v6505_v15 = vadd.f32 %v6504_v26, %v6503_v13 }
 0xd53   : > { %v6506_v56 = vpop.f32.mrf.mxu0 }
 0xd54   : > { %6006 = vst [vmem:[%s10006_s25 + $0x48] sm:$0xff] %v5990_v8  ;;  %v5959_v41 = vadd.f32 %v6505_v15, %v10000_v20 }
 0xd55   : > { %v6507_v4 = vpop.f32.mrf.mxu0 }
 0xd56   : > { %v5991_v28 = vadd.f32 %v5959_v41, %v9871_v47  ;;  %v6508_v48 = vadd.f32 %v6507_v4, %v6506_v56 }
 0xd57   : > { %v6509_v63 = vpop.f32.mrf.mxu1 }
 0xd58   : > { %6007 = vst [vmem:[%s10006_s25 + $0x50] sm:$0xff] %v5991_v28  ;;  %v5962_v19 = vadd.f32 %v6508_v48, %v10000_v20 }
 0xd59   : > { %v6510_v22 = vpop.f32.mrf.mxu1 }
 0xd5a   : > { %v5992_v5 = vadd.f32 %v5962_v19, %v9881_v42  ;;  %v6511_v23 = vadd.f32 %v6510_v22, %v6509_v63 }
 0xd5b   : > { %v6512_v9 = vpop.f32.mrf.mxu1 }
 0xd5c   : > { %6008 = vst [vmem:[%s10006_s25 + $0x58] sm:$0xff] %v5992_v5  ;;  %v5967_v25 = vadd.f32 %v6511_v23, %v10000_v20 }
 0xd5d   : > { %v6513_v61 = vpop.f32.mrf.mxu1 }
 0xd5e   : > { %v5993_v16 = vadd.f32 %v5967_v25, %v9892_v6  ;;  %v6514_v47 = vadd.f32 %v6513_v61, %v6512_v9 }
 0xd5f   : > { %v6515_v62 = vpop.f32.mrf.mxu1 }
 0xd60   : > { %6009 = vst [vmem:[%s10006_s25 + $0x60] sm:$0xff] %v5993_v16  ;;  %v5970_v37 = vadd.f32 %v6514_v47, %v10000_v20 }
 0xd61   : > { %v6516_v33 = vpop.f32.mrf.mxu1 }
 0xd62   : > { %v5994_v42 = vadd.f32 %v5970_v37, %v9902_v51  ;;  %v6517_v50 = vadd.f32 %v6516_v33, %v6515_v62 }
 0xd63   : > { %v6518_v14 = vpop.f32.mrf.mxu1 }
 0xd64   : > { %6010 = vst [vmem:[%s10006_s25 + $0x68] sm:$0xff] %v5994_v42  ;;  %v5975_v30 = vadd.f32 %v6517_v50, %v10000_v20 }
 0xd65   : > { %v6519_v35 = vpop.f32.mrf.mxu1 }
 0xd66   : > { %v5995_v6 = vadd.f32 %v5975_v30, %v9895_v55  ;;  %v6520_v7 = vadd.f32 %v6519_v35, %v6518_v14 }
 0xd68   : > { %6011 = vst [vmem:[%s10006_s25 + $0x70] sm:$0xff] %v5995_v6  ;;  %v5978_v18 = vadd.f32 %v6520_v7, %v10000_v20 }
 0xd6a   : > { %v5996_v51 = vadd.f32 %v5978_v18, %v9905_v3 }
 0xd6c   : > { %6012 = vst [vmem:[%s10006_s25 + $0x78] sm:$0xff] %v5996_v51 }
 0xd6d   : > { %7767 = shalt.err (!%p7764_p6)
}
 0xd6e   : > { %s7768_s1 = scalar_lea.hbm %s10057_s13, 2048  ;;  %s7772_s10 = scalar_lea.hbm %s10115_s11, 4096 }
 0xd6f   : > { %p7769_p2 = scmp.ne.s32.totalorder %s10057_s13, %s7768_s1  ;;  %p7773_p0 = scmp.lt.s32.totalorder %s10057_s13, %s10115_s11 }
 0xd70   : > { %p7774_p11 = scmp.lt.s32.totalorder %s7772_s10, %s7768_s1 }
 0xd71   : > { %p7770_p4 = pnand %p7769_p2, %p10281_p7 }
 0xd72   : > { %p7775_p3 = por %p7774_p11, %p7773_p0 }
 0xd73   : > { %p7771_p8 = pneg %p7770_p4 }
 0xd75   : > { %p7776_p12 = pnand %p7775_p3, %p7771_p8 }
 0xd77   : > { %7779 = shalt.err (!%p7776_p12)
}
 0xd78   : > { %s7846_s20 = smov 128   ;;  %s7847_s15 = smov 8  }
 0xd79   : > { %7003 = dma.vmem_to_hbm [thread:$0]  (%p10281_p7), %s10059_s27, 2048, %s10057_s13, %s6014_s28, %s7846_s20, %s7846_s20, %s7847_s15  }
 0xd7a PF: > { %s6043_s30 = sand.u32 1, %s7814_s21   ;;  %p10282_p9 = scmp.ne.s32.totalorder %s10150_s26, 0 }
 0xd7b   : > { %p10283_p13 = scmp.ge.s32.totalorder %s7826_s24, 2  ;;  %s6044_s9 = scalar_lea.sflag [#allocation6], %s6043_s30 }
 0xd7d   : > { %p7023_p5 = pnand %p10283_p13, %p10282_p9 }
 0xd7f   : > { %p7024_p10 = pneg %p7023_p5 }
 0xd81   : > { %7809 = dma.done.wait (%p7024_p10), %s6044_s9, 2048  }
 0xd82   : > { %7811 = vsyncadd (%p7024_p10), %s6044_s9, 4294965248  ;;  %p28_p1 = scmp.ge.s32.totalorder %s8005_s14, 4   ;;  %s10284_s21 = smov %s7818_s22 }
 0xd83   : > { %s10285_s22 = smov %s7822_s23  ;;  %s10286_s23 = smov %s8021_s19 }
 0xd84   : > { %s10287_s24 = smov %s8005_s14  ;;  %30 = sbr.rel (!%p28_p1) target bundleno = 13 (0xd), region = 125 }
 0xd89   :  { %6049 = vsyncpa [#allocation5], 1 }
 0xd8a   :  { %6051 = vsyncpa [#allocation5 + $0x1], 1 }
 0xd8b   :  { %6052 = vsyncpa [#allocation8], 1 }
 0xd8c   :  { %6053 = vsyncpa [#allocation11], 1 }
 0xd8d   :  { %6054 = vsyncpa [#allocation6], 1 }
 0xd8e   :  { %6056 = vsyncpa [#allocation6 + $0x1], 1 }

</bundles_post_ra>
